<compile_context>
chip_gen: v7x
topology: tpu7x:2x2x1
jax: 0.10.0
libtpu: 0.0.40
codegen_flags: <defaults>
</compile_context>

<pallas_src>
import jax
import jax.numpy as jnp
import numpy as np
from jax.experimental import pallas as pl
from jax.experimental.pallas import tpu as pltpu

_HI = jax.lax.Precision.HIGHEST


def _erf(x):
    # Abramowitz & Stegun 7.1.26 rational approximation (|err| < 1.5e-7 ~ f32 eps).
    # TODO(synk): Mosaic has no erf primitive; exact (erf-based) GELU uses this poly.
    p = 0.3275911
    a1, a2, a3, a4, a5 = 0.254829592, -0.284496736, 1.421413741, -1.453152027, 1.061405429
    s = jnp.where(x >= 0.0, 1.0, -1.0)
    ax = jnp.abs(x)
    t = 1.0 / (1.0 + p * ax)
    poly = ((((a5 * t + a4) * t + a3) * t + a2) * t + a1) * t
    return s * (1.0 - poly * jnp.exp(-ax * ax))


def _gelu(x):
    # matches torch.nn.GELU() (approximate='none', erf-based)
    return 0.5 * x * (1.0 + _erf(x * 0.7071067811865476))


# ----------------------------------------------------------------------------------
# Kernel A: streams edge tiles, gathers q/k/v via one-hot MXU matmuls, scatters the
# messages into a per-core-block partial aggregate (output block = accumulator).
# ----------------------------------------------------------------------------------
def _edge_scatter_kernel(
    nf_ref, gamma_ref, beta_ref, wq_ref, bq_ref, wkv_ref, bkv_ref, ss_ref,   # node-resident
    ef_ref, row_ref, col_ref, rad_ref,                                        # per-edge-tile
    agg_ref,                                                                  # output (accumulator)
    q_sc, kv_sc,                                                              # scratch
):
    f32 = jnp.float32
    N = nf_ref.shape[0]
    D = q_sc.shape[1]
    TE = ef_ref.shape[0]
    et = pl.program_id(1)

    # ---- once per core block: LayerNorm + q / [k|v] projection, zero accumulator ----
    @pl.when(et == 0)
    def _init():
        x = nf_ref[...]
        mu = jnp.mean(x, axis=-1, keepdims=True)
        xc = x - mu
        var = jnp.mean(xc * xc, axis=-1, keepdims=True)
        xn = xc * jax.lax.rsqrt(var + 1e-5) * gamma_ref[...] + beta_ref[...]
        q_sc[...] = jnp.dot(xn, wq_ref[...], preferred_element_type=f32, precision=_HI) + bq_ref[...]
        kv_sc[...] = jnp.dot(xn, wkv_ref[...], preferred_element_type=f32, precision=_HI) + bkv_ref[...]
        agg_ref[...] = jnp.zeros_like(agg_ref)

    # ---- one-hot matrices for this edge tile (lane-dense [1,TE] indices) ----
    row_ids = row_ref[...]                                     # [1, TE] int32
    col_ids = col_ref[...]                                     # [1, TE] int32
    rad = rad_ref[...]                                         # [1, TE] f32 (0 on padded edges)
    node_iota = jax.lax.broadcasted_iota(jnp.int32, (N, TE), 0)
    row_hit = node_iota == row_ids                             # [N, TE]
    col_hit = node_iota == col_ids
    row_oh = row_hit.astype(f32)
    col_oh = col_hit.astype(f32)
    # radial folded into the scatter one-hot: scatter-with-scale, keeps radial lane-dense.
    row_oh_rad = jnp.where(row_hit, rad, 0.0)                  # [N, TE]

    # ---- gathers: q[row] and fused [k|v][col] via (one-hot)^T @ values ----
    dn = (((0,), (0,)), ((), ()))                              # contract dim 0 with dim 0
    q_row = jax.lax.dot_general(row_oh, q_sc[...], dn, preferred_element_type=f32,
                                precision=_HI)                 # [TE, D]
    kv_col = jax.lax.dot_general(col_oh, kv_sc[...], dn, preferred_element_type=f32,
                                 precision=_HI)                # [TE, 2D]
    k_col = kv_col[:, :D]
    v_col = kv_col[:, D:]

    # ---- per-head (q.k) sums broadcast back to D lanes with one block-diag matmul ----
    hs = jnp.dot(q_row * k_col, ss_ref[...], preferred_element_type=f32, precision=_HI)  # [TE, D]
    m = v_col * ef_ref[...] * _gelu(hs)                                                   # [TE, D]

    # ---- scatter-add into the resident accumulator (one [N,TE]x[TE,D] MXU op) ----
    agg_ref[...] += jnp.dot(row_oh_rad, m, preferred_element_type=f32, precision=_HI)     # [N, D]


# ----------------------------------------------------------------------------------
# Kernel B: combine the per-core partial aggregates, vector branch, output projection.
# ----------------------------------------------------------------------------------
def _finalize_kernel(part_ref, nv_ref, wvec_ref, wout_ref, bout_ref, out_ref):
    f32 = jnp.float32
    C = part_ref.shape[0]
    N, D = out_ref.shape

    agg = part_ref[0]
    for c in range(1, C):
        agg = agg + part_ref[c]                                 # [N, D]

    # vector branch: one fused [L*N, D] x [D, 2D] matmul, then reduce over the L groups
    iv = jnp.dot(nv_ref[...], wvec_ref[...], preferred_element_type=f32, precision=_HI)   # [L*N, 2D]
    prod = iv[:, :D] * iv[:, D:]                                                           # [L*N, D]
    L = nv_ref.shape[0] // N
    input_dot = prod[0:N, :]
    for a in range(1, L):
        input_dot = input_dot + prod[a * N:(a + 1) * N, :]

    # output projection: one fused [N, D] x [D, 2D] matmul
    op = jnp.dot(agg, wout_ref[...], preferred_element_type=f32, precision=_HI) + bout_ref[...]
    out_ref[...] = input_dot * op[:, :D] + op[:, D:]


def linear_attn_last(node_feat, edge_feat, node_vec, row, col, radial, params, num_heads,
                     *, edge_tile=128, num_core_blocks=2):
    """Pallas implementation of LinearAttnLast.forward (natoms == node_feat.shape[0])."""
    f32, i32 = jnp.float32, jnp.int32
    N, D = node_feat.shape
    E = row.shape[0]
    L = node_vec.shape[1]
    assert D % num_heads == 0
    dh = D // num_heads

    TE = edge_tile                   # edges per tile  (raise to 512-2048 on real workloads)
    C = num_core_blocks              # "parallel" grid axis -> megacore sharding on v7x
    N_pad = -(-N // 8) * 8                                   # sublane multiple
    E_pad = -(-E // (C * TE)) * (C * TE)                     # pad edges to a C*TE multiple
    ET = E_pad // (C * TE)                                   # edge tiles per core block

    # ---- padded, lane-dense inputs (padded edges: row=col=0, radial=0 => no-op) ----
    nf = jnp.pad(node_feat.astype(f32), ((0, N_pad - N), (0, 0)))
    nv_flat = jnp.pad(jnp.transpose(node_vec, (1, 0, 2)).astype(f32),
                      ((0, 0), (0, N_pad - N), (0, 0))).reshape(L * N_pad, D)
    ef = jnp.pad(edge_feat.reshape(E, D).astype(f32), ((0, E_pad - E), (0, 0)))
    row_p = jnp.pad(row.astype(i32), (0, E_pad - E)).reshape(1, E_pad)
    col_p = jnp.pad(col.astype(i32), (0, E_pad - E)).reshape(1, E_pad)
    rad_p = jnp.pad(radial.astype(f32), (0, E_pad - E)).reshape(1, E_pad)

    # ---- permute / split qkv weights so q and [k|v] are contiguous head-major blocks ----
    base = (np.arange(D) // dh) * (3 * dh) + (np.arange(D) % dh)
    q_cols = base
    kv_cols = np.concatenate([base + dh, base + 2 * dh])
    wq = params["Wqkv"][:, q_cols].astype(f32)
    bq = params["bqkv"][q_cols].astype(f32).reshape(1, D)
    wkv = params["Wqkv"][:, kv_cols].astype(f32)
    bkv = params["bqkv"][kv_cols].astype(f32).reshape(1, 2 * D)

    wvec = params["Wvec"].astype(f32)                         # [D, 2D] (no bias)
    wout = params["Wout"].astype(f32)                         # [D, 2D]
    bout = params["bout"].astype(f32).reshape(1, 2 * D)
    gamma = params["gamma"].astype(f32).reshape(1, D)
    beta = params["beta"].astype(f32).reshape(1, D)

    # block-diagonal "same head" matrix: (q*k) @ ss = per-head sums broadcast over dh lanes
    head_of = np.arange(D) // dh
    ss = jnp.asarray((head_of[:, None] == head_of[None, :]).astype(np.float32))    # [D, D]

    const = lambda c, e: (0, 0)
    node_specs = [
        pl.BlockSpec((N_pad, D), const),        # node_feat
        pl.BlockSpec((1, D), const),            # gamma
        pl.BlockSpec((1, D), const),            # beta
        pl.BlockSpec((D, D), const),            # Wq
        pl.BlockSpec((1, D), const),            # bq
        pl.BlockSpec((D, 2 * D), const),        # Wkv
        pl.BlockSpec((1, 2 * D), const),        # bkv
        pl.BlockSpec((D, D), const),            # ss
    ]
    edge_specs = [
        pl.BlockSpec((TE, D), lambda c, e: (c * ET + e, 0)),    # edge_feat tile
        pl.BlockSpec((1, TE), lambda c, e: (0, c * ET + e)),    # row  (lane-dense)
        pl.BlockSpec((1, TE), lambda c, e: (0, c * ET + e)),    # col  (lane-dense)
        pl.BlockSpec((1, TE), lambda c, e: (0, c * ET + e)),    # radial (lane-dense)
    ]

    flops = (8 * E_pad * N_pad * D            # one-hot gathers (q + fused kv) + scatter
             + 2 * E_pad * D * D              # per-head sum/broadcast matmul
             + C * 2 * N_pad * D * 3 * D)     # qkv projection (per core block)
    bytes_accessed = (nf.size + ef.size + row_p.size + col_p.size + rad_p.size
                      + C * N_pad * D) * 4
    cost = pl.CostEstimate(flops=int(flops),
                           transcendentals=int(E_pad * D),
                           bytes_accessed=int(bytes_accessed))

    partial = pl.pallas_call(
        _edge_scatter_kernel,
        out_shape=jax.ShapeDtypeStruct((C, N_pad, D), f32),
        grid=(C, ET),
        in_specs=node_specs + edge_specs,
        out_specs=pl.BlockSpec((None, N_pad, D), lambda c, e: (c, 0, 0)),
        scratch_shapes=[pltpu.VMEM((N_pad, D), f32),        # q
                        pltpu.VMEM((N_pad, 2 * D), f32)],   # k|v
        compiler_params=pltpu.CompilerParams(
            dimension_semantics=("parallel", "arbitrary"),
            # sized for v7x (64 MiB physical); also raises the v5e 16 MiB scoped default
            vmem_limit_bytes=32 * 1024 * 1024,
        ),
        cost_estimate=cost,
    )(nf, gamma, beta, wq, bq, wkv, bkv, ss, ef, row_p, col_p, rad_p)

    vmem = pl.BlockSpec(memory_space=pltpu.MemorySpace.VMEM)
    out = pl.pallas_call(
        _finalize_kernel,
        out_shape=jax.ShapeDtypeStruct((N_pad, D), f32),
        in_specs=[vmem] * 5,
        out_specs=vmem,
    )(partial, nv_flat, wvec, wout, bout)

    return out[:N]


def reference(node_feat, edge_feat, node_vec, row, col, radial, params, num_heads):
    """Pure-JAX reference mirroring the PyTorch forward (same erf poly as the kernel)."""
    N, D = node_feat.shape
    dh = D // num_heads
    x = node_feat
    mu = x.mean(-1, keepdims=True)
    var = ((x - mu) ** 2).mean(-1, keepdims=True)
    xn = (x - mu) / jnp.sqrt(var + 1e-5) * params["gamma"] + params["beta"]
    qkv = (jnp.dot(xn, params["Wqkv"], precision=_HI) + params["bqkv"]).reshape(N, num_heads, 3 * dh)
    q, k, v = qkv[..., :dh], qkv[..., dh:2 * dh], qkv[..., 2 * dh:]
    q_row, k_col, v_col = q[row], k[col], v[col]
    attn = _gelu((q_row * k_col).sum(-1)) * radial[:, None]
    iv = jnp.dot(node_vec, params["Wvec"], precision=_HI)
    input_dot = (iv[..., :D] * iv[..., D:]).sum(-2)
    m = v_col * edge_feat * attn[..., None]
    agg = jnp.zeros((N, num_heads, dh), jnp.float32).at[row].add(m).reshape(N, D)
    out = jnp.dot(agg, params["Wout"], precision=_HI) + params["bout"]
    return input_dot * out[:, :D] + out[:, D:]


if __name__ == "__main__":
    # module defaults: dim=64, num_heads=16; small graph with multiple edge tiles
    N, E, D, H, L = 32, 384, 64, 16, 3
    key = jax.random.PRNGKey(0)
    ks = jax.random.split(key, 12)

    node_feat = jax.random.normal(ks[0], (N, D), jnp.float32)
    node_vec = jax.random.normal(ks[1], (N, L, D), jnp.float32)
    edge_feat = jax.random.normal(ks[2], (E, H, D // H), jnp.float32)
    radial = jax.random.normal(ks[3], (E,), jnp.float32)
    row = jax.random.randint(ks[4], (E,), 0, N)
    col = jax.random.randint(ks[5], (E,), 0, N)

    params = {
        "Wqkv": 0.1 * jax.random.normal(ks[6], (D, 3 * D), jnp.float32),
        "bqkv": 0.1 * jax.random.normal(ks[7], (3 * D,), jnp.float32),
        "Wvec": 0.1 * jax.random.normal(ks[8], (D, 2 * D), jnp.float32),   # no bias
        "Wout": 0.1 * jax.random.normal(ks[9], (D, 2 * D), jnp.float32),
        "bout": 0.1 * jax.random.normal(ks[10], (2 * D,), jnp.float32),
        "gamma": 1.0 + 0.1 * jax.random.normal(ks[11], (D,), jnp.float32),
        "beta": jnp.zeros((D,), jnp.float32),
    }

    out = jax.block_until_ready(
        linear_attn_last(node_feat, edge_feat, node_vec, row, col, radial, params, H,
                         edge_tile=128, num_core_blocks=2)
    )
    ref = reference(node_feat, edge_feat, node_vec, row, col, radial, params, H)
    # f32-level tolerance with margin for MXU pass-count / accumulation-order differences.
    np.testing.assert_allclose(np.asarray(out), np.asarray(ref), atol=2e-3, rtol=2e-3)
    print("KERNEL_OK")
</pallas_src>

<mosaic_0001>
module attributes {stable_mosaic.version = 11 : i64} {
  func.func @_edge_scatter_kernel(%arg0: i32, %arg1: i32, %arg2: memref<32x64xf32, #tpu.memory_space<vmem>>, %arg3: memref<1x64xf32, #tpu.memory_space<vmem>>, %arg4: memref<1x64xf32, #tpu.memory_space<vmem>>, %arg5: memref<64x64xf32, #tpu.memory_space<vmem>>, %arg6: memref<1x64xf32, #tpu.memory_space<vmem>>, %arg7: memref<64x128xf32, #tpu.memory_space<vmem>>, %arg8: memref<1x128xf32, #tpu.memory_space<vmem>>, %arg9: memref<64x64xf32, #tpu.memory_space<vmem>>, %arg10: memref<128x64xf32, #tpu.memory_space<vmem>>, %arg11: memref<1x128xi32, #tpu.memory_space<vmem>>, %arg12: memref<1x128xi32, #tpu.memory_space<vmem>>, %arg13: memref<1x128xf32, #tpu.memory_space<vmem>>, %arg14: memref<1x32x64xf32, #tpu.memory_space<vmem>>, %arg15: memref<32x64xf32, #tpu.memory_space<vmem>>, %arg16: memref<32x128xf32, #tpu.memory_space<vmem>>) attributes {dimension_semantics = [#tpu.dimension_semantics<parallel>, #tpu.dimension_semantics<arbitrary>], iteration_bounds = array<i64: 2, 2>, scalar_prefetch = 0 : i64, scratch_operands = 2 : i64, tpu.core_type = #tpu.core_type<tc>, window_params = [{pipeline_mode = #tpu.pipeline_mode<synchronous>, transform_indices = @transform_0, window_bounds = array<i64: 32, 64>}, {pipeline_mode = #tpu.pipeline_mode<synchronous>, transform_indices = @transform_1, window_bounds = array<i64: 1, 64>}, {pipeline_mode = #tpu.pipeline_mode<synchronous>, transform_indices = @transform_2, window_bounds = array<i64: 1, 64>}, {pipeline_mode = #tpu.pipeline_mode<synchronous>, transform_indices = @transform_3, window_bounds = array<i64: 64, 64>}, {pipeline_mode = #tpu.pipeline_mode<synchronous>, transform_indices = @transform_4, window_bounds = array<i64: 1, 64>}, {pipeline_mode = #tpu.pipeline_mode<synchronous>, transform_indices = @transform_5, window_bounds = array<i64: 64, 128>}, {pipeline_mode = #tpu.pipeline_mode<synchronous>, transform_indices = @transform_6, window_bounds = array<i64: 1, 128>}, {pipeline_mode = #tpu.pipeline_mode<synchronous>, transform_indices = @transform_7, window_bounds = array<i64: 64, 64>}, {transform_indices = @transform_8, window_bounds = array<i64: 128, 64>}, {transform_indices = @transform_9, window_bounds = array<i64: 1, 128>}, {transform_indices = @transform_10, window_bounds = array<i64: 1, 128>}, {transform_indices = @transform_11, window_bounds = array<i64: 1, 128>}, {transform_indices = @transform_12, window_bounds = array<i64: 1, 32, 64>}]} {
    %c0_i32 = arith.constant 0 : i32
    %0 = arith.cmpi eq, %arg1, %c0_i32 : i32
    %1 = arith.extui %0 : i1 to i32
    %c0_i32_0 = arith.constant 0 : i32
    %2 = arith.cmpi ne, %1, %c0_i32_0 : i32
    scf.if %2 {
      %c0_40 = arith.constant 0 : index
      %c0_41 = arith.constant 0 : index
      %79 = vector.load %arg2[%c0_40, %c0_41] : memref<32x64xf32, #tpu.memory_space<vmem>>, vector<32x64xf32>
      %cst_42 = arith.constant dense<0.000000e+00> : vector<32xf32>
      %80 = vector.multi_reduction <add>, %79, %cst_42 [1] : vector<32x64xf32> to vector<32xf32>
      %81 = vector.shape_cast %80 : vector<32xf32> to vector<32x1xf32>
      %cst_43 = arith.constant 6.400000e+01 : f32
      %82 = vector.broadcast %cst_43 : f32 to vector<32x1xf32>
      %83 = arith.divf %81, %82 : vector<32x1xf32>
      %84 = vector.broadcast %83 : vector<32x1xf32> to vector<32x64xf32>
      %85 = arith.subf %79, %84 : vector<32x64xf32>
      %86 = arith.mulf %85, %85 : vector<32x64xf32>
      %cst_44 = arith.constant dense<0.000000e+00> : vector<32xf32>
      %87 = vector.multi_reduction <add>, %86, %cst_44 [1] : vector<32x64xf32> to vector<32xf32>
      %88 = vector.shape_cast %87 : vector<32xf32> to vector<32x1xf32>
      %cst_45 = arith.constant 6.400000e+01 : f32
      %89 = vector.broadcast %cst_45 : f32 to vector<32x1xf32>
      %90 = arith.divf %88, %89 : vector<32x1xf32>
      %cst_46 = arith.constant 9.99999974E-6 : f32
      %91 = vector.broadcast %cst_46 : f32 to vector<32x1xf32>
      %92 = arith.addf %90, %91 : vector<32x1xf32>
      %93 = math.rsqrt %92 : vector<32x1xf32>
      %94 = vector.broadcast %93 : vector<32x1xf32> to vector<32x64xf32>
      %95 = arith.mulf %85, %94 : vector<32x64xf32>
      %c0_47 = arith.constant 0 : index
      %c0_48 = arith.constant 0 : index
      %96 = vector.load %arg3[%c0_47, %c0_48] : memref<1x64xf32, #tpu.memory_space<vmem>>, vector<1x64xf32>
      %97 = vector.broadcast %96 : vector<1x64xf32> to vector<32x64xf32>
      %98 = arith.mulf %95, %97 : vector<32x64xf32>
      %c0_49 = arith.constant 0 : index
      %c0_50 = arith.constant 0 : index
      %99 = vector.load %arg4[%c0_49, %c0_50] : memref<1x64xf32, #tpu.memory_space<vmem>>, vector<1x64xf32>
      %100 = vector.broadcast %99 : vector<1x64xf32> to vector<32x64xf32>
      %101 = arith.addf %98, %100 : vector<32x64xf32>
      %c0_51 = arith.constant 0 : index
      %c0_52 = arith.constant 0 : index
      %102 = vector.load %arg5[%c0_51, %c0_52] : memref<64x64xf32, #tpu.memory_space<vmem>>, vector<64x64xf32>
      %cst_53 = arith.constant dense<0.000000e+00> : vector<32x64xf32>
      %103 = tpu.matmul %101, %102, %cst_53 {dimension_numbers = #tpu.dot_dimension_numbers<[1], [0], [0], [1], [0, 0, 1, 1], [], []>, precision = #tpu.contract_precision<fp32>} : vector<32x64xf32>, vector<64x64xf32>, vector<32x64xf32> -> vector<32x64xf32>
      %c0_54 = arith.constant 0 : index
      %c0_55 = arith.constant 0 : index
      %104 = vector.load %arg6[%c0_54, %c0_55] : memref<1x64xf32, #tpu.memory_space<vmem>>, vector<1x64xf32>
      %105 = vector.broadcast %104 : vector<1x64xf32> to vector<32x64xf32>
      %106 = arith.addf %103, %105 : vector<32x64xf32>
      %c0_56 = arith.constant 0 : index
      %c0_57 = arith.constant 0 : index
      %107 = vector.load %arg15[%c0_56, %c0_57] : memref<32x64xf32, #tpu.memory_space<vmem>>, vector<32x64xf32>
      tpu.vector_store %arg15[%c0_56, %c0_57], %106 {strides = array<i32>} : memref<32x64xf32, #tpu.memory_space<vmem>>, vector<32x64xf32>,
      %c0_58 = arith.constant 0 : index
      %c0_59 = arith.constant 0 : index
      %108 = vector.load %arg7[%c0_58, %c0_59] : memref<64x128xf32, #tpu.memory_space<vmem>>, vector<64x128xf32>
      %cst_60 = arith.constant dense<0.000000e+00> : vector<32x128xf32>
      %109 = tpu.matmul %101, %108, %cst_60 {dimension_numbers = #tpu.dot_dimension_numbers<[1], [0], [0], [1], [0, 0, 1, 1], [], []>, precision = #tpu.contract_precision<fp32>} : vector<32x64xf32>, vector<64x128xf32>, vector<32x128xf32> -> vector<32x128xf32>
      %c0_61 = arith.constant 0 : index
      %c0_62 = arith.constant 0 : index
      %110 = vector.load %arg8[%c0_61, %c0_62] : memref<1x128xf32, #tpu.memory_space<vmem>>, vector<1x128xf32>
      %111 = vector.broadcast %110 : vector<1x128xf32> to vector<32x128xf32>
      %112 = arith.addf %109, %111 : vector<32x128xf32>
      %c0_63 = arith.constant 0 : index
      %c0_64 = arith.constant 0 : index
      %113 = vector.load %arg16[%c0_63, %c0_64] : memref<32x128xf32, #tpu.memory_space<vmem>>, vector<32x128xf32>
      tpu.vector_store %arg16[%c0_63, %c0_64], %112 {strides = array<i32>} : memref<32x128xf32, #tpu.memory_space<vmem>>, vector<32x128xf32>,
      %cst_65 = arith.constant 0.000000e+00 : f32
      %114 = vector.broadcast %cst_65 : f32 to vector<32x64xf32>
      %c0_66 = arith.constant 0 : index
      %c0_67 = arith.constant 0 : index
      %c0_68 = arith.constant 0 : index
      %115 = vector.load %arg14[%c0_66, %c0_67, %c0_68] : memref<1x32x64xf32, #tpu.memory_space<vmem>>, vector<1x32x64xf32>
      %116 = vector.shape_cast %115 : vector<1x32x64xf32> to vector<32x64xf32>
      %117 = vector.shape_cast %114 : vector<32x64xf32> to vector<1x32x64xf32>
      tpu.vector_store %arg14[%c0_66, %c0_67, %c0_68], %117 {strides = array<i32>} : memref<1x32x64xf32, #tpu.memory_space<vmem>>, vector<1x32x64xf32>,
    } else {
    }
    %c0 = arith.constant 0 : index
    %c0_1 = arith.constant 0 : index
    %3 = vector.load %arg11[%c0, %c0_1] : memref<1x128xi32, #tpu.memory_space<vmem>>, vector<1x128xi32>
    %c0_2 = arith.constant 0 : index
    %c0_3 = arith.constant 0 : index
    %4 = vector.load %arg12[%c0_2, %c0_3] : memref<1x128xi32, #tpu.memory_space<vmem>>, vector<1x128xi32>
    %c0_4 = arith.constant 0 : index
    %c0_5 = arith.constant 0 : index
    %5 = vector.load %arg13[%c0_4, %c0_5] : memref<1x128xf32, #tpu.memory_space<vmem>>, vector<1x128xf32>
    %6 = tpu.iota {dimensions = array<i32: 0>} : vector<32x128xi32>
    %7 = vector.broadcast %3 : vector<1x128xi32> to vector<32x128xi32>
    %8 = arith.cmpi eq, %6, %7 : vector<32x128xi32>
    %9 = vector.broadcast %4 : vector<1x128xi32> to vector<32x128xi32>
    %10 = arith.cmpi eq, %6, %9 : vector<32x128xi32>
    %11 = arith.extui %8 : vector<32x128xi1> to vector<32x128xi32>
    %12 = arith.sitofp %11 : vector<32x128xi32> to vector<32x128xf32>
    %13 = arith.extui %10 : vector<32x128xi1> to vector<32x128xi32>
    %14 = arith.sitofp %13 : vector<32x128xi32> to vector<32x128xf32>
    %cst = arith.constant 0.000000e+00 : f32
    %15 = vector.shape_cast %5 : vector<1x128xf32> to vector<1x128xf32>
    %16 = vector.broadcast %15 : vector<1x128xf32> to vector<32x128xf32>
    %17 = vector.broadcast %cst : f32 to vector<32x128xf32>
    %18 = arith.select %8, %16, %17 : vector<32x128xi1>, vector<32x128xf32>
    %c0_6 = arith.constant 0 : index
    %c0_7 = arith.constant 0 : index
    %19 = vector.load %arg15[%c0_6, %c0_7] : memref<32x64xf32, #tpu.memory_space<vmem>>, vector<32x64xf32>
    %cst_8 = arith.constant dense<0.000000e+00> : vector<128x64xf32>
    %20 = tpu.matmul %12, %19, %cst_8 {dimension_numbers = #tpu.dot_dimension_numbers<[0], [0], [1], [1], [0, 1, 1, 1], [], []>, precision = #tpu.contract_precision<fp32>} : vector<32x128xf32>, vector<32x64xf32>, vector<128x64xf32> -> vector<128x64xf32>
    %c0_9 = arith.constant 0 : index
    %c0_10 = arith.constant 0 : index
    %21 = vector.load %arg16[%c0_9, %c0_10] : memref<32x128xf32, #tpu.memory_space<vmem>>, vector<32x128xf32>
    %cst_11 = arith.constant dense<0.000000e+00> : vector<128x128xf32>
    %22 = tpu.matmul %14, %21, %cst_11 {dimension_numbers = #tpu.dot_dimension_numbers<[0], [0], [1], [1], [0, 1, 1, 1], [], []>, precision = #tpu.contract_precision<fp32>} : vector<32x128xf32>, vector<32x128xf32>, vector<128x128xf32> -> vector<128x128xf32>
    %23 = vector.extract_strided_slice %22 {offsets = [0, 0], sizes = [128, 64], strides = [1, 1]} : vector<128x128xf32> to vector<128x64xf32>
    %24 = vector.extract_strided_slice %22 {offsets = [0, 64], sizes = [128, 64], strides = [1, 1]} : vector<128x128xf32> to vector<128x64xf32>
    %25 = arith.mulf %20, %23 : vector<128x64xf32>
    %c0_12 = arith.constant 0 : index
    %c0_13 = arith.constant 0 : index
    %26 = vector.load %arg9[%c0_12, %c0_13] : memref<64x64xf32, #tpu.memory_space<vmem>>, vector<64x64xf32>
    %cst_14 = arith.constant dense<0.000000e+00> : vector<128x64xf32>
    %27 = tpu.matmul %25, %26, %cst_14 {dimension_numbers = #tpu.dot_dimension_numbers<[1], [0], [0], [1], [0, 0, 1, 1], [], []>, precision = #tpu.contract_precision<fp32>} : vector<128x64xf32>, vector<64x64xf32>, vector<128x64xf32> -> vector<128x64xf32>
    %c0_15 = arith.constant 0 : index
    %c0_16 = arith.constant 0 : index
    %28 = vector.load %arg10[%c0_15, %c0_16] : memref<128x64xf32, #tpu.memory_space<vmem>>, vector<128x64xf32>
    %29 = arith.mulf %24, %28 : vector<128x64xf32>
    %cst_17 = arith.constant 5.000000e-01 : f32
    %30 = vector.broadcast %cst_17 : f32 to vector<128x64xf32>
    %31 = arith.mulf %30, %27 : vector<128x64xf32>
    %cst_18 = arith.constant 0.707106769 : f32
    %32 = vector.broadcast %cst_18 : f32 to vector<128x64xf32>
    %33 = arith.mulf %27, %32 : vector<128x64xf32>
    %cst_19 = arith.constant 0.000000e+00 : f32
    %34 = vector.broadcast %cst_19 : f32 to vector<128x64xf32>
    %35 = arith.cmpf oge, %33, %34 : vector<128x64xf32>
    %cst_20 = arith.constant 1.000000e+00 : f32
    %cst_21 = arith.constant -1.000000e+00 : f32
    %36 = vector.broadcast %cst_20 : f32 to vector<128x64xf32>
    %37 = vector.broadcast %cst_21 : f32 to vector<128x64xf32>
    %38 = arith.select %35, %36, %37 : vector<128x64xi1>, vector<128x64xf32>
    %39 = math.absf %33 : vector<128x64xf32>
    %cst_22 = arith.constant 0.327591091 : f32
    %40 = vector.broadcast %cst_22 : f32 to vector<128x64xf32>
    %41 = arith.mulf %40, %39 : vector<128x64xf32>
    %cst_23 = arith.constant 1.000000e+00 : f32
    %42 = vector.broadcast %cst_23 : f32 to vector<128x64xf32>
    %43 = arith.addf %42, %41 : vector<128x64xf32>
    %cst_24 = arith.constant 1.000000e+00 : f32
    %44 = vector.broadcast %cst_24 : f32 to vector<128x64xf32>
    %45 = arith.divf %44, %43 : vector<128x64xf32>
    %cst_25 = arith.constant 1.06140542 : f32
    %46 = vector.broadcast %cst_25 : f32 to vector<128x64xf32>
    %47 = arith.mulf %46, %45 : vector<128x64xf32>
    %cst_26 = arith.constant -1.45315206 : f32
    %48 = vector.broadcast %cst_26 : f32 to vector<128x64xf32>
    %49 = arith.addf %47, %48 : vector<128x64xf32>
    %50 = arith.mulf %49, %45 : vector<128x64xf32>
    %cst_27 = arith.constant 1.42141378 : f32
    %51 = vector.broadcast %cst_27 : f32 to vector<128x64xf32>
    %52 = arith.addf %50, %51 : vector<128x64xf32>
    %53 = arith.mulf %52, %45 : vector<128x64xf32>
    %cst_28 = arith.constant -0.284496725 : f32
    %54 = vector.broadcast %cst_28 : f32 to vector<128x64xf32>
    %55 = arith.addf %53, %54 : vector<128x64xf32>
    %56 = arith.mulf %55, %45 : vector<128x64xf32>
    %cst_29 = arith.constant 0.254829586 : f32
    %57 = vector.broadcast %cst_29 : f32 to vector<128x64xf32>
    %58 = arith.addf %56, %57 : vector<128x64xf32>
    %59 = arith.mulf %58, %45 : vector<128x64xf32>
    %cst_30 = arith.constant 0.000000e+00 : f32
    %60 = vector.broadcast %cst_30 : f32 to vector<128x64xf32>
    %61 = arith.subf %60, %39 : vector<128x64xf32>
    %62 = arith.mulf %61, %39 : vector<128x64xf32>
    %63 = math.exp %62 : vector<128x64xf32>
    %64 = arith.mulf %59, %63 : vector<128x64xf32>
    %cst_31 = arith.constant 1.000000e+00 : f32
    %65 = vector.broadcast %cst_31 : f32 to vector<128x64xf32>
    %66 = arith.subf %65, %64 : vector<128x64xf32>
    %67 = arith.mulf %38, %66 : vector<128x64xf32>
    %cst_32 = arith.constant 1.000000e+00 : f32
    %68 = vector.broadcast %cst_32 : f32 to vector<128x64xf32>
    %69 = arith.addf %68, %67 : vector<128x64xf32>
    %70 = arith.mulf %31, %69 : vector<128x64xf32>
    %71 = arith.mulf %29, %70 : vector<128x64xf32>
    %c0_33 = arith.constant 0 : index
    %c0_34 = arith.constant 0 : index
    %c0_35 = arith.constant 0 : index
    %72 = vector.load %arg14[%c0_33, %c0_34, %c0_35] : memref<1x32x64xf32, #tpu.memory_space<vmem>>, vector<1x32x64xf32>
    %73 = vector.shape_cast %72 : vector<1x32x64xf32> to vector<32x64xf32>
    %cst_36 = arith.constant dense<0.000000e+00> : vector<32x64xf32>
    %74 = tpu.matmul %18, %71, %cst_36 {dimension_numbers = #tpu.dot_dimension_numbers<[1], [0], [0], [1], [0, 0, 1, 1], [], []>, precision = #tpu.contract_precision<fp32>} : vector<32x128xf32>, vector<128x64xf32>, vector<32x64xf32> -> vector<32x64xf32>
    %75 = arith.addf %73, %74 : vector<32x64xf32>
    %c0_37 = arith.constant 0 : index
    %c0_38 = arith.constant 0 : index
    %c0_39 = arith.constant 0 : index
    %76 = vector.load %arg14[%c0_37, %c0_38, %c0_39] : memref<1x32x64xf32, #tpu.memory_space<vmem>>, vector<1x32x64xf32>
    %77 = vector.shape_cast %76 : vector<1x32x64xf32> to vector<32x64xf32>
    %78 = vector.shape_cast %75 : vector<32x64xf32> to vector<1x32x64xf32>
    tpu.vector_store %arg14[%c0_37, %c0_38, %c0_39], %78 {strides = array<i32>} : memref<1x32x64xf32, #tpu.memory_space<vmem>>, vector<1x32x64xf32>,
    return
  }
  func.func @transform_0(%arg0: i32, %arg1: i32) -> (i32, i32) {
    %c0_i32 = arith.constant 0 : i32
    %c0_i32_0 = arith.constant 0 : i32
    %c0_i32_1 = arith.constant 0 : i32
    return %c0_i32, %c0_i32_0 : i32, i32
  }
  func.func @transform_1(%arg0: i32, %arg1: i32) -> (i32, i32) {
    %c0_i32 = arith.constant 0 : i32
    %c0_i32_0 = arith.constant 0 : i32
    %c0_i32_1 = arith.constant 0 : i32
    return %c0_i32, %c0_i32_0 : i32, i32
  }
  func.func @transform_2(%arg0: i32, %arg1: i32) -> (i32, i32) {
    %c0_i32 = arith.constant 0 : i32
    %c0_i32_0 = arith.constant 0 : i32
    %c0_i32_1 = arith.constant 0 : i32
    return %c0_i32, %c0_i32_0 : i32, i32
  }
  func.func @transform_3(%arg0: i32, %arg1: i32) -> (i32, i32) {
    %c0_i32 = arith.constant 0 : i32
    %c0_i32_0 = arith.constant 0 : i32
    %c0_i32_1 = arith.constant 0 : i32
    return %c0_i32, %c0_i32_0 : i32, i32
  }
  func.func @transform_4(%arg0: i32, %arg1: i32) -> (i32, i32) {
    %c0_i32 = arith.constant 0 : i32
    %c0_i32_0 = arith.constant 0 : i32
    %c0_i32_1 = arith.constant 0 : i32
    return %c0_i32, %c0_i32_0 : i32, i32
  }
  func.func @transform_5(%arg0: i32, %arg1: i32) -> (i32, i32) {
    %c0_i32 = arith.constant 0 : i32
    %c0_i32_0 = arith.constant 0 : i32
    %c0_i32_1 = arith.constant 0 : i32
    return %c0_i32, %c0_i32_0 : i32, i32
  }
  func.func @transform_6(%arg0: i32, %arg1: i32) -> (i32, i32) {
    %c0_i32 = arith.constant 0 : i32
    %c0_i32_0 = arith.constant 0 : i32
    %c0_i32_1 = arith.constant 0 : i32
    return %c0_i32, %c0_i32_0 : i32, i32
  }
  func.func @transform_7(%arg0: i32, %arg1: i32) -> (i32, i32) {
    %c0_i32 = arith.constant 0 : i32
    %c0_i32_0 = arith.constant 0 : i32
    %c0_i32_1 = arith.constant 0 : i32
    return %c0_i32, %c0_i32_0 : i32, i32
  }
  func.func @transform_8(%arg0: i32, %arg1: i32) -> (i32, i32) {
    %c2_i32 = arith.constant 2 : i32
    %0 = arith.muli %arg0, %c2_i32 : i32
    %1 = arith.addi %0, %arg1 : i32
    %c0_i32 = arith.constant 0 : i32
    %c0_i32_0 = arith.constant 0 : i32
    return %1, %c0_i32 : i32, i32
  }
  func.func @transform_9(%arg0: i32, %arg1: i32) -> (i32, i32) {
    %c2_i32 = arith.constant 2 : i32
    %0 = arith.muli %arg0, %c2_i32 : i32
    %1 = arith.addi %0, %arg1 : i32
    %c0_i32 = arith.constant 0 : i32
    %c0_i32_0 = arith.constant 0 : i32
    return %c0_i32, %1 : i32, i32
  }
  func.func @transform_10(%arg0: i32, %arg1: i32) -> (i32, i32) {
    %c2_i32 = arith.constant 2 : i32
    %0 = arith.muli %arg0, %c2_i32 : i32
    %1 = arith.addi %0, %arg1 : i32
    %c0_i32 = arith.constant 0 : i32
    %c0_i32_0 = arith.constant 0 : i32
    return %c0_i32, %1 : i32, i32
  }
  func.func @transform_11(%arg0: i32, %arg1: i32) -> (i32, i32) {
    %c2_i32 = arith.constant 2 : i32
    %0 = arith.muli %arg0, %c2_i32 : i32
    %1 = arith.addi %0, %arg1 : i32
    %c0_i32 = arith.constant 0 : i32
    %c0_i32_0 = arith.constant 0 : i32
    return %c0_i32, %1 : i32, i32
  }
  func.func @transform_12(%arg0: i32, %arg1: i32) -> (i32, i32, i32) {
    %c0_i32 = arith.constant 0 : i32
    %c0_i32_0 = arith.constant 0 : i32
    %c0_i32_1 = arith.constant 0 : i32
    return %arg0, %c0_i32, %c0_i32_0 : i32, i32, i32
  }
}

</mosaic_0001>

<bundles_post_ra>
// kernel: tpu_custom_call.1
= control target key start
LH: loop header
LB: loop body
LE: loop exit
PB: predicated region body
PF: predicated region fallthrough
CT: control target
= control target key end

     0   :  { %s12811_s0 = inlined_call_operand.vmem [shape: f32[32,64], index: 0, kind: input, shape index: {}]   ;;  %s12812_s1 = inlined_call_operand.vmem [shape: f32[1,64], index: 1, kind: input, shape index: {}]   ;;  %s12813_s2 = inlined_call_operand.vmem [shape: f32[1,64], index: 2, kind: input, shape index: {}]   ;;  %s12814_s3 = inlined_call_operand.vmem [shape: f32[64,64], index: 3, kind: input, shape index: {}]   ;;  %s12815_s4 = inlined_call_operand.vmem [shape: f32[1,64], index: 4, kind: input, shape index: {}]   ;;  %s12816_s5 = inlined_call_operand.vmem [shape: f32[64,128], index: 5, kind: input, shape index: {}]   ;;  %s12817_s6 = inlined_call_operand.vmem [shape: f32[1,128], index: 6, kind: input, shape index: {}]   ;;  %s12818_s7 = inlined_call_operand.vmem [shape: f32[64,64], index: 7, kind: input, shape index: {}]   ;;  %s12819_s8 = inlined_call_operand.vmem [shape: f32[512,64], index: 8, kind: input, shape index: {}]   ;;  %s12820_s9 = inlined_call_operand.vmem [shape: s32[1,512], index: 9, kind: input, shape index: {}]   ;;  %s12821_s10 = inlined_call_operand.vmem [shape: s32[1,512], index: 10, kind: input, shape index: {}]   ;;  %s12822_s11 = inlined_call_operand.vmem [shape: f32[1,512], index: 11, kind: input, shape index: {}]   ;;  %s12823_s12 = inlined_call_operand.hbm [shape: f32[2,32,64], index: 12, kind: output, shape index: {}]  }
   0x1   :  { %12939 = sst [smem:[#allocation47_spill]] %s12823_s12 }
   0x2   :  { %17 = vsyncpa [#allocation5], 0 }
   0x3   :  { %19 = vsyncpa [#allocation5 + $0x1], 0  ;;  %s10308_s21 = smov 0   ;;  %s10310_s22 = smov 0  }
   0x4   :  { %s10312_s23 = smov 0   ;;  %s10314_s24 = smov 0  }
   0x5   :  { %s10316_s25 = smov 0   ;;  %s10318_s26 = smov 0  }
   0x6   :  { %s10320_s27 = smov 0   ;;  %s10322_s28 = smov 0  }
   0x7 LB: > { %12940 = sst [smem:[#allocation7_spill]] %s10206_s21  ;;  %s7296_s29 = sadd.s32 4294967295, %s10234_s28   ;;  %s10234_s28 = sphi %s10322_s28, %s25_s28   ;;  %s10230_s27 = sphi %s10320_s27, %s13152_s27   ;;  %s10226_s26 = sphi %s10318_s26, %s13151_s26   ;;  %s10222_s25 = sphi %s10316_s25, %s13150_s25   ;;  %s10218_s24 = sphi %s10314_s24, %s13149_s24   ;;  %s10214_s23 = sphi %s10312_s23, %s13148_s23   ;;  %s10210_s22 = sphi %s10310_s22, %s13147_s22   ;;  %s10206_s21 = sphi %s10308_s21, %s13146_s21  }
   0x8   : > { %12941 = sst [smem:[#allocation8_spill]] %s10210_s22  ;;  %s7297_s30 = sadd.s32 4294967294, %s10234_s28  }
   0x9   : > { %12942 = sst [smem:[#allocation9_spill]] %s10214_s23  ;;  %s34_s13 = sadd.s32 1, %s10226_s26 }
   0xa   : > { %12943 = sst [smem:[#allocation10_spill]] %s10226_s26  ;;  %p35_p0 = scmp.ge.s32.totalorder %s34_s13, 2 }
   0xb   : > { %12944 = sst [smem:[#allocation11_spill]] %s10230_s27  ;;  %s37_s14 = sadd.s32 1, %s10230_s27 }
   0xc   : > { %12945 = sst [smem:[#allocation12_spill]] %s10234_s28  ;;  %p342_p1 = scmp.ne.s32.totalorder %s10214_s23, %s10210_s22 }
   0xd   : > { %p343_p2 = scmp.eq.s32.totalorder %s7296_s29, 3  ;;  %s13154_s13 = smov (%p35_p0, %s34_s13), 0 }
   0xe   : > { %12946 = sst [smem:[#allocation13_spill]] %s13154_s13  ;;  %s13156_s14 = smov (!%p35_p0, %s37_s14), %s10230_s27 }
   0xf   : > { %p10357_p3 = por %p343_p2, %p342_p1  ;;  %p348_p4 = scmp.ne.s32.totalorder %s10210_s22, %s10206_s21 }
  0x10   : > { %p39_p5 = scmp.ge.s32.totalorder %s13156_s14, 2  ;;  %p349_p6 = scmp.eq.s32.totalorder %s7297_s30, 3 }
  0x11   : > { %s12947_s15 = scalar_select %p10357_p3, 1, 0 }
  0x12   : > { %p7308_p7 = scmp.ge.s32.totalorder %s10234_s28, 1  ;;  %p434_p8 = scmp.lt.s32.totalorder %s10234_s28, 5 }
  0x13   : > { %12948 = sst [smem:[#allocation14_spill]] %s12947_s15  ;;  %s13158_s14 = smov (%p39_p5, %s13156_s14), 0 }
  0x14   : > { %12949 = sst [smem:[#allocation15_spill]] %s13158_s14  ;;  %p10367_p9 = por %p349_p6, %p348_p4 }
  0x15   : > { %p435_p10 = pnand %p7308_p7, %p434_p8  ;;  %s329_s17 = ssub.s32 %s10230_s27, %s13158_s14 }
  0x16   : > { %s12950_s16 = scalar_select %p10367_p9, 1, 0 }
  0x17   : > { %s332_s18 = sadd.s32 1, %s10214_s23  ;;  %p330_p11 = scmp.eq.s32.totalorder %s329_s17, 0 }
  0x18   : > { %12951 = sst [smem:[#allocation16_spill]] %s12950_s16  ;;  %438 = sbr.rel (%p435_p10) target bundleno = 2392 (0x958), region = 68 }
  0x19   : > { %s10375_s19 = scalar_select %p330_p11, %s10214_s23, %s332_s18  }
  0x1b   : > { %12952 = sst [smem:[#allocation17_spill]] %s10375_s19 }
  0x1f   : > { %s12828_s20 = sand.u32 1, %s10210_s22   ;;  %s7310_s29 = sshll.u32 %s10222_s25, 1 }
  0x20   : > { %s7309_s30 = sshll.u32 %s12828_s20, 5  ;;  %s494_s13 = sadd.s32 %s10218_s24, %s7310_s29 }
  0x21   : > { %s7311_s26 = sshll.u32 %s494_s13, 4  ;;  %p505_p13 = scmp.lt.s32.totalorder %s494_s13, 3 }
  0x22   : > { %p496_p12 = scmp.lt.s32.totalorder %s7311_s26, 63  ;;  %s10403_s22 = scalar_lea.vmem [#allocation4], %s7309_s30 }
  0x23   : > { %s13162_s13 = smov (!%p505_p13, %s494_s13), 3  ;;  %p7316_p0 = scmp.ne.s32.totalorder %s10218_s24, 0 }
  0x24   : > { %s13160_s26 = smov (!%p496_p12, %s7311_s26), 63  ;;  %s507_s20 = scalar_lea.vmem %s12820_s9, %s13162_s13  ;;  %v528_v0 = vld [vmem:[%s12811_s0] sm:$0xff] (!%p7316_p0)  ;;  %vm532_vm0 = vcmask (!%p7316_p0), 523264   ;;  %v530_v1 = vld [vmem:[%s12811_s0 + $0x10] sm:$0xff] (!%p7316_p0)  ;;  %v529_v2 = vld [vmem:[%s12811_s0 + $0x8] sm:$0xff] (!%p7316_p0)  ;;  %v10236_v4 = vmov (!%p7316_p0), 0.0  }
  0x25   : > { %s7312_s17 = sshll.u32 %s13160_s26, 3  ;;  %s514_s21 = scalar_lea.vmem %s12821_s10, %s13162_s13  ;;  %v533_v3 = vsel (!%p7316_p0), %vm532_vm0, %v528_v0, 0.0  ;;  %1990 = vst.msk [vmem:[%s10403_s22] sm:$0xff] (!%p7316_p0), %vm532_vm0, %v10236_v4  ;;  %1991 = vst.msk [vmem:[%s10403_s22 + $0x8] sm:$0xff] (!%p7316_p0), %vm532_vm0, %v10236_v4  ;;  %v539_v5 = vsel (!%p7316_p0), %vm532_vm0, %v530_v1, 0.0  ;;  %v531_v6 = vld [vmem:[%s12811_s0 + $0x18] sm:$0xff] (!%p7316_p0) }
  0x26   : > { %s10387_s27 = scalar_lea.vmem %s12819_s8, %s7312_s17  ;;  %s10401_s15 = scalar_lea.vmem %s12822_s11, %s13162_s13  ;;  %1992 = vst.msk [vmem:[%s10403_s22 + $0x10] sm:$0xff] (!%p7316_p0), %vm532_vm0, %v10236_v4  ;;  %1993 = vst.msk [vmem:[%s10403_s22 + $0x18] sm:$0xff] (!%p7316_p0), %vm532_vm0, %v10236_v4  ;;  %534 = vadd.xlane.f32.xlu0 (!%p7316_p0), %v533_v3  ;;  %540 = vadd.xlane.f32.xlu1 (!%p7316_p0), %v539_v5  ;;  %v536_v7 = vsel (!%p7316_p0), %vm532_vm0, %v529_v2, 0.0  ;;  %v542_v8 = vsel (!%p7316_p0), %vm532_vm0, %v531_v6, 0.0  ;;  %v608_v29 = vld [vmem:[%s12814_s3] sm:$0xff] (!%p7316_p0)  ;;  %v609_v30 = vld [vmem:[%s12814_s3 + $0x8] sm:$0xff] (!%p7316_p0) }
  0x27   : > { %527 = sbr.rel (%p7316_p0) target bundleno = 669 (0x29d), region = 72  ;;  %v1305_v31 = vld [vmem:[%s12816_s5] sm:$0xff] (!%p7316_p0)  ;;  %v636_v32 = vand.u32 (!%p7316_p0), 4294901760, %v608_v29  ;;  %v639_v33 = vand.u32 (!%p7316_p0), 4294901760, %v609_v30  ;;  %v1306_v34 = vld [vmem:[%s12816_s5 + $0x8] sm:$0xff] (!%p7316_p0)  ;;  %v610_v39 = vld [vmem:[%s12814_s3 + $0x10] sm:$0xff] (!%p7316_p0) }
  0x28   : > { %v1321_v35 = vand.u32 (!%p7316_p0), 4294901760, %v1305_v31  ;;  %v1324_v36 = vand.u32 (!%p7316_p0), 4294901760, %v1306_v34  ;;  %v611_v40 = vld [vmem:[%s12814_s3 + $0x18] sm:$0xff] (!%p7316_p0)  ;;  %v1307_v41 = vld [vmem:[%s12816_s5 + $0x10] sm:$0xff] (!%p7316_p0)  ;;  %v642_v42 = vand.u32 (!%p7316_p0), 4294901760, %v610_v39  ;;  %v612_v49 = vld [vmem:[%s12814_s3 + $0x20] sm:$0xff] (!%p7316_p0) }
  0x29   : > { %v10462_v37 = vpack.c.bf16 (!%p7316_p0), %v639_v33, %v636_v32  ;;  %v645_v43 = vand.u32 (!%p7316_p0), 4294901760, %v611_v40  ;;  %v1308_v44 = vld [vmem:[%s12816_s5 + $0x18] sm:$0xff] (!%p7316_p0)  ;;  %v1327_v45 = vand.u32 (!%p7316_p0), 4294901760, %v1307_v41  ;;  %v10492_v50 = vld [vmem:[%s12814_s3 + $0x28] sm:$0xff] (!%p7316_p0)  ;;  %v10497_v51 = vld [vmem:[%s12816_s5 + $0x20] sm:$0xff] (!%p7316_p0)  ;;  %v648_v52 = vand.u32 (!%p7316_p0), 4294901760, %v612_v49 }
  0x2a   : > { %537 = vadd.xlane.f32.xlu0 (!%p7316_p0), %v536_v7  ;;  %543 = vadd.xlane.f32.xlu1 (!%p7316_p0), %v542_v8  ;;  %v10464_v38 = vpack.c.bf16 (!%p7316_p0), %v1324_v36, %v1321_v35  ;;  %v1330_v46 = vand.u32 (!%p7316_p0), 4294901760, %v1308_v44  ;;  %v651_v53 = vand.u32 (!%p7316_p0), 4294901760, %v10492_v50  ;;  %v10504_v54 = vld [vmem:[%s12816_s5 + $0x28] sm:$0xff] (!%p7316_p0)  ;;  %v1333_v55 = vand.u32 (!%p7316_p0), 4294901760, %v10497_v51  ;;  %v10513_v57 = vld [vmem:[%s12814_s3 + $0x30] sm:$0xff] (!%p7316_p0)  ;;  %v10518_v58 = vld [vmem:[%s12814_s3 + $0x38] sm:$0xff] (!%p7316_p0) }
  0x2b   : > { %9103 = vmatprep.subr.bf16.mxu0 (!%p7316_p0), %v10462_v37  ;;  %v10482_v47 = vpack.c.bf16 (!%p7316_p0), %v645_v43, %v642_v42  ;;  %v1336_v56 = vand.u32 (!%p7316_p0), 4294901760, %v10504_v54  ;;  %v10523_v59 = vld [vmem:[%s12816_s5 + $0x30] sm:$0xff] (!%p7316_p0)  ;;  %v654_v61 = vand.u32 (!%p7316_p0), 4294901760, %v10513_v57  ;;  %v657_v62 = vand.u32 (!%p7316_p0), 4294901760, %v10518_v58  ;;  %v10533_v63 = vld [vmem:[%s12816_s5 + $0x38] sm:$0xff] (!%p7316_p0) }
  0x2c   : > { %9199 = vmatprep.subr.bf16.mxu1 (!%p7316_p0), %v10464_v38  ;;  %9105 = vmatpush3.bf16.msra.mxu0 (!%p7316_p0), %v10462_v37  ;;  %v10484_v48 = vpack.c.bf16 (!%p7316_p0), %v1330_v46, %v1327_v45  ;;  %v10526_v60 = vpack.c.bf16 (!%p7316_p0), %v651_v53, %v648_v52  ;;  %v10543_v3 = vsub.f32 (!%p7316_p0), %v608_v29, %v636_v32 }
  0x2d   : > { %9201 = vmatpush3.bf16.msra.mxu1 (!%p7316_p0), %v10464_v38  ;;  %9107 = vmatprep.subr.bf16.mxu0 (!%p7316_p0), %v10482_v47  ;;  %v10545_v4 = vsub.f32 (!%p7316_p0), %v609_v30, %v639_v33  ;;  %v10548_v5 = vpack.c.bf16 (!%p7316_p0), %v657_v62, %v654_v61  ;;  %v10552_v7 = vsub.f32 (!%p7316_p0), %v1306_v34, %v1324_v36 }
  0x2e   : > { %9203 = vmatprep.subr.bf16.mxu1 %v10484_v48 }
  0x30   : > { %9109 = vmatpush3.bf16.msra.mxu0 %v10482_v47 }
  0x31   : > { %9205 = vmatpush3.bf16.msra.mxu1 %v10484_v48  ;;  %9111 = vmatprep.subr.bf16.mxu0 %v10526_v60 }
  0x34   : > { %9113 = vmatpush3.bf16.msra.mxu0 %v10526_v60 }
  0x35   : > { %9115 = vmatprep.subr.bf16.mxu0 %v10548_v5 }
  0x38   : > { %9117 = vmatpush3.bf16.msra.mxu0 %v10548_v5 }
  0xb3   : > { %v535_v9 = vpop.xlane.xlu0 %534  ;;  %v541_v10 = vpop.xlane.xlu1 %540 }
  0xb4   : > { %v546_v11 = vmul.f32 0.015625, %v535_v9  ;;  %v548_v12 = vmul.f32 0.015625, %v541_v10  ;;  %v751_v9 = vand.u32 4294901760, %v10543_v3  ;;  %v758_v10 = vand.u32 4294901760, %v10545_v4 }
  0xb6   : > { %v10430_v13 = vsub.f32 %v528_v0, %v546_v11  ;;  %v10432_v14 = vsub.f32 %v530_v1, %v548_v12  ;;  %v1339_v0 = vand.u32 4294901760, %v10523_v59  ;;  %v10540_v1 = vpack.c.bf16 %v1336_v56, %v1333_v55 }
  0xb7   : > { %v538_v15 = vpop.xlane.xlu0 %537  ;;  %v544_v16 = vpop.xlane.xlu1 %543  ;;  %v1443_v12 = vand.u32 4294901760, %v10552_v7 }
  0xb8   : > { %v547_v17 = vmul.f32 0.015625, %v538_v15  ;;  %v549_v18 = vmul.f32 0.015625, %v544_v16  ;;  %v554_v19 = vmul.f32 %v10430_v13, %v10430_v13  ;;  %v556_v20 = vmul.f32 %v10432_v14, %v10432_v14  ;;  %9207 = vmatprep.subr.bf16.mxu1 %v10540_v1 }
  0xb9   : > { %9209 = vmatpush3.bf16.msra.mxu1 %v10540_v1  ;;  %v10568_v15 = vsub.f32 %v610_v39, %v642_v42  ;;  %v10570_v16 = vsub.f32 %v611_v40, %v645_v43  ;;  %v778_v40 = vsub.f32 %v612_v49, %v648_v52  ;;  %v1470_v52 = vsub.f32 %v10504_v54, %v1336_v56 }
  0xba   : > { %v10438_v21 = vsub.f32 %v529_v2, %v547_v17  ;;  %v10440_v22 = vsub.f32 %v531_v6, %v549_v18  ;;  %v558_v23 = vsel %vm532_vm0, %v554_v19, 0.0  ;;  %v564_v24 = vsel %vm532_vm0, %v556_v20, 0.0 }
  0xbb   : > { %559 = vadd.xlane.f32.xlu0 %v558_v23  ;;  %v1342_v2 = vand.u32 4294901760, %v10533_v63  ;;  %v10550_v6 = vsub.f32 %v1305_v31, %v1321_v35  ;;  %v752_v17 = vsub.f32 %v10543_v3, %v751_v9  ;;  %v759_v18 = vsub.f32 %v10545_v4, %v758_v10 }
  0xbc   : > { %v555_v25 = vmul.f32 %v10438_v21, %v10438_v21  ;;  %v557_v26 = vmul.f32 %v10440_v22, %v10440_v22  ;;  %v10579_v19 = vsub.f32 %v1307_v41, %v1327_v45  ;;  %v10581_v20 = vsub.f32 %v1308_v44, %v1330_v46 }
  0xbd   : > { %v10560_v8 = vpack.c.bf16 %v1342_v2, %v1339_v0  ;;  %v1436_v11 = vand.u32 4294901760, %v10550_v6  ;;  %v785_v44 = vsub.f32 %v10492_v50, %v651_v53  ;;  %v792_v50 = vsub.f32 %v10513_v57, %v654_v61 }
  0xbe   : > { %v561_v27 = vsel %vm532_vm0, %v555_v25, 0.0  ;;  %v567_v28 = vsel %vm532_vm0, %v557_v26, 0.0  ;;  %v765_v25 = vand.u32 4294901760, %v10568_v15  ;;  %v12839_v26 = vand.u32 4294901760, %v10570_v16 }
  0xbf   : > { %565 = vadd.xlane.f32.xlu0 %v564_v24  ;;  %562 = vadd.xlane.f32.xlu1 %v561_v27  ;;  %v1437_v23 = vsub.f32 %v10550_v6, %v1436_v11  ;;  %v1444_v24 = vsub.f32 %v10552_v7, %v1443_v12  ;;  %v753_v27 = vand.u32 4294901760, %v752_v17  ;;  %v12838_v29 = vand.u32 4294901760, %v10579_v19 }
  0xc0   : > { %9211 = vmatprep.subr.bf16.mxu1 %v10560_v8  ;;  %v12837_v30 = vand.u32 4294901760, %v10581_v20  ;;  %v766_v33 = vsub.f32 %v10568_v15, %v765_v25  ;;  %v773_v34 = vsub.f32 %v10570_v16, %v12839_v26  ;;  %v779_v17 = vand.u32 4294901760, %v778_v40 }
  0xc1   : > { %9213 = vmatpush3.bf16.msra.mxu1 %v10560_v8  ;;  %v1438_v31 = vand.u32 4294901760, %v1437_v23  ;;  %v1445_v32 = vand.u32 4294901760, %v1444_v24  ;;  %v1451_v36 = vsub.f32 %v10579_v19, %v12838_v29  ;;  %v786_v49 = vand.u32 4294901760, %v785_v44 }
  0xc2   : > { %v1458_v39 = vsub.f32 %v10581_v20, %v12837_v30  ;;  %v767_v42 = vand.u32 4294901760, %v766_v33  ;;  %v774_v43 = vand.u32 4294901760, %v773_v34  ;;  %v780_v24 = vsub.f32 %v778_v40, %v779_v17 }
  0xc3   : > { %568 = vadd.xlane.f32.xlu1 %v567_v28  ;;  %v760_v28 = vand.u32 4294901760, %v759_v18  ;;  %v10609_v41 = vpack.c.bf16 %v1445_v32, %v1438_v31  ;;  %v1452_v45 = vand.u32 4294901760, %v1451_v36  ;;  %v1463_v18 = vsub.f32 %v10497_v51, %v1333_v55 }
  0xc4   : > { %v1459_v46 = vand.u32 4294901760, %v1458_v39  ;;  %v10617_v23 = vpack.c.bf16 %v774_v43, %v767_v42  ;;  %v787_v31 = vsub.f32 %v785_v44, %v786_v49  ;;  %v1471_v32 = vand.u32 4294901760, %v1470_v52 }
  0xc5   : > { %v10601_v35 = vpack.c.bf16 %v760_v28, %v753_v27  ;;  %9215 = vmatprep.subr.bf16.mxu1 %v10609_v41  ;;  %v1464_v27 = vand.u32 4294901760, %v1463_v18  ;;  %v799_v28 = vsub.f32 %v10518_v58, %v657_v62  ;;  %v793_v51 = vand.u32 4294901760, %v792_v50 }
  0xc6   : > { %v10623_v53 = vpack.c.bf16 %v1459_v46, %v1452_v45  ;;  %v1477_v55 = vsub.f32 %v10523_v59, %v1339_v0  ;;  %v781_v33 = vand.u32 4294901760, %v780_v24  ;;  %v1484_v54 = vsub.f32 %v10533_v63, %v1342_v2 }
  0xc7   : > { %9119 = vmatprep.subr.bf16.mxu0 %v10601_v35  ;;  %v1465_v34 = vsub.f32 %v1463_v18, %v1464_v27  ;;  %v800_v36 = vand.u32 4294901760, %v799_v28  ;;  %v788_v56 = vand.u32 4294901760, %v787_v31  ;;  %v1472_v57 = vsub.f32 %v1470_v52, %v1471_v32 }
  0xc8   : > { %v794_v61 = vsub.f32 %v792_v50, %v793_v51  ;;  %v1478_v39 = vand.u32 4294901760, %v1477_v55  ;;  %v1485_v62 = vand.u32 4294901760, %v1484_v54  ;;  %v10642_v31 = vpack.c.bf16 %v10545_v4, %v10543_v3 }
  0xc9   : > { %v1466_v42 = vand.u32 4294901760, %v1465_v34  ;;  %v801_v58 = vsub.f32 %v799_v28, %v800_v36  ;;  %v10632_v43 = vpack.c.bf16 %v788_v56, %v781_v33  ;;  %v1473_v45 = vand.u32 4294901760, %v1472_v57 }
  0xca   : > { %v795_v46 = vand.u32 4294901760, %v794_v61  ;;  %v1479_v30 = vsub.f32 %v1477_v55, %v1478_v39  ;;  %v1486_v0 = vsub.f32 %v1484_v54, %v1485_v62  ;;  %v10646_v33 = vpack.c.bf16 %v10552_v7, %v10550_v6 }
  0xcb   : > { %v802_v59 = vand.u32 4294901760, %v801_v58  ;;  %v10634_v24 = vpack.c.bf16 %v1473_v45, %v1466_v42  ;;  %v10650_v34 = vpack.c.bf16 %v10570_v16, %v10568_v15  ;;  %v10656_v56 = vpack.c.bf16 %v785_v44, %v778_v40 }
  0xcc   : > { %v1480_v29 = vand.u32 4294901760, %v1479_v30  ;;  %v1487_v63 = vand.u32 4294901760, %v1486_v0  ;;  %v10654_v30 = vpack.c.bf16 %v10581_v20, %v10579_v19  ;;  %v10660_v57 = vpack.c.bf16 %v799_v28, %v792_v50 }
  0xcd   : > { %v10636_v26 = vpack.c.bf16 %v802_v59, %v795_v46  ;;  %v10662_v61 = vpack.c.bf16 %v1484_v54, %v1477_v55  ;;  %v10668_v42 = vpack.c.bf16 %v758_v10, %v751_v9  ;;  %v10674_v58 = vpack.c.bf16 %v1443_v12, %v1436_v11  ;;  %v7318_v55 = vld [vmem:[%s12813_s2] ss:$0 sm:$0xff] }
  0xce   : > { %v10638_v2 = vpack.c.bf16 %v1487_v63, %v1480_v29  ;;  %v10658_v29 = vpack.c.bf16 %v1470_v52, %v1463_v18  ;;  %v12953_v40 = vand.u32 4294901760, %v10570_v16  ;;  %v12954_v18 = vand.u32 4294901760, %v10579_v19 }
  0xcf   : > { %v12955_v3 = vand.u32 4294901760, %v10581_v20  ;;  %v10688_v4 = vpack.c.bf16 %v786_v49, %v779_v17  ;;  %v10690_v9 = vpack.c.bf16 %v1471_v32, %v1464_v27  ;;  %v10692_v6 = vpack.c.bf16 %v800_v36, %v793_v51  ;;  %v7317_v32 = vld [vmem:[%s12812_s1] ss:$0 sm:$0xff] }
  0xd0   : > { %v10680_v44 = vpack.c.bf16 %v12953_v40, %v765_v25  ;;  %v10694_v7 = vpack.c.bf16 %v1485_v62, %v1478_v39 }
  0xd1   : > { %v10686_v52 = vpack.c.bf16 %v12955_v3, %v12954_v18 }
 0x148   : > { %v560_v10 = vpop.xlane.xlu0 %559 }
 0x149   : > { %v570_v11 = vmul.f32 0.015625, %v560_v10 }
 0x14b   : > { %v574_v12 = vadd.f32 1e-05, %v570_v11 }
 0x14c   : > { %v563_v15 = vpop.xlane.xlu1 %562  ;;  %v566_v16 = vpop.xlane.xlu0 %565 }
 0x14d   : > { %10067 = vrsqrt.f32 %v574_v12  ;;  %v571_v25 = vmul.f32 0.015625, %v563_v15  ;;  %v572_v19 = vmul.f32 0.015625, %v566_v16 }
 0x14f   : > { %v575_v50 = vadd.f32 1e-05, %v571_v25  ;;  %v576_v20 = vadd.f32 1e-05, %v572_v19 }
 0x150   : > { %v569_v28 = vpop.xlane.xlu1 %568 }
 0x151   : > { %10069 = vrsqrt.f32 %v575_v50  ;;  %v573_v17 = vmul.f32 0.015625, %v569_v28 }
 0x152   : > { %10071 = vrsqrt.f32 %v576_v20 }
 0x153   : > { %v577_v49 = vadd.f32 1e-05, %v573_v17 }
 0x155   : > { %10073 = vrsqrt.f32 %v577_v49 }
 0x157   : > { %v10068_v27 = vpop.eup %10067 }
 0x158   : > { %v582_v51 = vmul.f32 %v10068_v27, %v10430_v13 }
 0x15a   : > { %v593_v36 = vmul.f32 %v7317_v32, %v582_v51 }
 0x15b   : > { %v10070_v54 = vpop.eup %10069 }
 0x15c   : > { %v10072_v39 = vpop.eup %10071  ;;  %v583_v62 = vmul.f32 %v10070_v54, %v10438_v21  ;;  %v604_v45 = vadd.f32 %v7318_v55, %v593_v36 }
 0x15d   : > { %v584_v46 = vmul.f32 %v10072_v39, %v10432_v14 }
 0x15e   : > { %v594_v59 = vmul.f32 %v7317_v32, %v583_v62  ;;  %v624_v0 = vsel %vm532_vm0, %v604_v45, 0 }
 0x15f   : > { %v10074_v63 = vpop.eup %10073  ;;  %v595_v40 = vmul.f32 %v7317_v32, %v584_v46  ;;  %v10706_v18 = vand.u32 4294901760, %v624_v0 }
 0x160   : > { %v585_v13 = vmul.f32 %v10074_v63, %v10440_v22  ;;  %v605_v3 = vadd.f32 %v7318_v55, %v594_v59 }
 0x161   : > { %v10710_v10 = vsub.f32 %v624_v0, %v10706_v18  ;;  %v606_v11 = vadd.f32 %v7318_v55, %v595_v40 }
 0x162   : > { %v596_v12 = vmul.f32 %v7317_v32, %v585_v13  ;;  %v627_v21 = vsel %vm532_vm0, %v605_v3, 0 }
 0x163   : > { %v10714_v15 = vand.u32 4294901760, %v10710_v10  ;;  %v10716_v14 = vand.u32 4294901760, %v627_v21  ;;  %v630_v16 = vsel %vm532_vm0, %v606_v11, 0 }
 0x164   : > { %v10719_v25 = vand.u32 4294901760, %v630_v16  ;;  %v607_v19 = vadd.f32 %v7318_v55, %v596_v12 }
 0x165   : > { %v711_v22 = vsub.f32 %v10710_v10, %v10714_v15  ;;  %v10724_v50 = vsub.f32 %v627_v21, %v10716_v14 }
 0x166   : > { %v10727_v20 = vsub.f32 %v630_v16, %v10719_v25  ;;  %v633_v28 = vsel %vm532_vm0, %v607_v19, 0 }
 0x167   : > { %v712_v17 = vand.u32 4294901760, %v711_v22  ;;  %v10731_v49 = vand.u32 4294901760, %v10724_v50  ;;  %v10733_v27 = vand.u32 4294901760, %v633_v28 }
 0x168   : > { %v10736_v32 = vand.u32 4294901760, %v10727_v20 }
 0x169   : > { %8002 = vmatprep.mubr.f32.mxu0 %v712_v17  ;;  %8134 = vmatprep.mubr.f32.mxu1 %v712_v17  ;;  %v721_v51 = vsub.f32 %v10724_v50, %v10731_v49  ;;  %v10741_v55 = vsub.f32 %v633_v28, %v10733_v27 }
 0x16a   : > { %v731_v36 = vsub.f32 %v10727_v20, %v10736_v32 }
 0x16b   : > { %v722_v54 = vand.u32 4294901760, %v721_v51  ;;  %v10746_v39 = vand.u32 4294901760, %v10741_v55 }
 0x16c   : > { %v732_v62 = vand.u32 4294901760, %v731_v36 }
 0x16d   : > { %8003 = vmatmul.mubr.f32.vlgmr.msra.gmra.mrb[0].mxu0 %v722_v54  ;;  %8135 = vmatmul.mubr.f32.vlgmr.msra.gmra.mrb[0].mxu1 %v722_v54  ;;  %v741_v45 = vsub.f32 %v10741_v55, %v10746_v39 }
 0x16e   : > { %9121 = vmatpush3.bf16.msra.mxu0 %v10601_v35  ;;  %9217 = vmatpush3.bf16.msra.mxu1 %v10609_v41 }
 0x16f   : > { %8005 = vmatprep.mubr.f32.mxu0 %v732_v62  ;;  %8137 = vmatprep.mubr.f32.mxu1 %v732_v62  ;;  %v742_v46 = vand.u32 4294901760, %v741_v45 }
 0x170   : > { %9123 = vmatprep.subr.bf16.mxu0 %v10617_v23  ;;  %9219 = vmatprep.subr.bf16.mxu1 %v10623_v53 }
 0x171   : > { %8006 = vmatmul.mubr.f32.gmra.mrb[2].mxu0 %v742_v46  ;;  %8138 = vmatmul.mubr.f32.gmra.mrb[2].mxu1 %v742_v46 }
 0x172   : > { %9125 = vmatpush3.bf16.msra.mxu0 %v10617_v23  ;;  %9221 = vmatpush3.bf16.msra.mxu1 %v10623_v53 }
 0x173   : > { %8024 = vmatprep.mubr.f32.mxu0 %v10706_v18  ;;  %8156 = vmatprep.mubr.f32.mxu1 %v10706_v18 }
 0x174   : > { %9127 = vmatprep.subr.bf16.mxu0 %v10632_v43  ;;  %9223 = vmatprep.subr.bf16.mxu1 %v10634_v24 }
 0x176   : > { %9129 = vmatpush3.bf16.msra.mxu0 %v10632_v43  ;;  %9225 = vmatpush3.bf16.msra.mxu1 %v10634_v24 }
 0x177   : > { %9131 = vmatprep.subr.bf16.mxu0 %v10636_v26  ;;  %9227 = vmatprep.subr.bf16.mxu1 %v10638_v2 }
 0x17a   : > { %9133 = vmatpush3.bf16.msra.mxu0 %v10636_v26  ;;  %9229 = vmatpush3.bf16.msra.mxu1 %v10638_v2 }
 0x17b   : > { %9135 = vmatprep.subr.bf16.mxu0 %v10642_v31  ;;  %9231 = vmatprep.subr.bf16.mxu1 %v10646_v33 }
 0x17d   : > { %8025 = vmatmul.mubr.f32.vlgmr.msra.gmra.mrb[0].mxu0 %v10716_v14  ;;  %8157 = vmatmul.mubr.f32.vlgmr.msra.gmra.mrb[0].mxu1 %v10716_v14 }
 0x17e   : > { %8027 = vmatprep.mubr.f32.mxu0 %v10719_v25  ;;  %9137 = vmatpush3.bf16.msra.mxu0 %v10642_v31 }
 0x17f   : > { %8159 = vmatprep.mubr.f32.mxu1 %v10719_v25  ;;  %9233 = vmatpush3.bf16.msra.mxu1 %v10646_v33 }
 0x180   : > { %9139 = vmatprep.subr.bf16.mxu0 %v10650_v34  ;;  %9235 = vmatprep.subr.bf16.mxu1 %v10654_v30 }
 0x181   : > { %8028 = vmatmul.mubr.f32.gmra.mrb[2].mxu0 %v10733_v27  ;;  %8160 = vmatmul.mubr.f32.gmra.mrb[2].mxu1 %v10733_v27 }
 0x182   : > { %9141 = vmatpush3.bf16.msra.mxu0 %v10650_v34  ;;  %8046 = vmatprep.mubr.f32.mxu0 %v10710_v10 }
 0x183   : > { %9237 = vmatpush3.bf16.msra.mxu1 %v10654_v30  ;;  %8178 = vmatprep.mubr.f32.mxu1 %v10710_v10 }
 0x184   : > { %9143 = vmatprep.subr.bf16.mxu0 %v10656_v56  ;;  %9239 = vmatprep.subr.bf16.mxu1 %v10658_v29 }
 0x186   : > { %9145 = vmatpush3.bf16.msra.mxu0 %v10656_v56 }
 0x187   : > { %9241 = vmatpush3.bf16.msra.mxu1 %v10658_v29  ;;  %9147 = vmatprep.subr.bf16.mxu0 %v10660_v57 }
 0x188   : > { %9243 = vmatprep.subr.bf16.mxu1 %v10662_v61 }
 0x18a   : > { %9149 = vmatpush3.bf16.msra.mxu0 %v10660_v57 }
 0x18b   : > { %9245 = vmatpush3.bf16.msra.mxu1 %v10662_v61  ;;  %9151 = vmatprep.subr.bf16.mxu0 %v10462_v37 }
 0x18c   : > { %9247 = vmatprep.subr.bf16.mxu1 %v10464_v38 }
 0x18d   : > { %8047 = vmatmul.mubr.f32.vlgmr.msra.gmra.mrb[0].mxu0 %v10724_v50 }
 0x18e   : > { %8179 = vmatmul.mubr.f32.vlgmr.msra.gmra.mrb[0].mxu1 %v10724_v50  ;;  %8049 = vmatprep.mubr.f32.mxu0 %v10727_v20 }
 0x18f   : > { %9153 = vmatpush3.bf16.msra.mxu0 %v10462_v37  ;;  %8181 = vmatprep.mubr.f32.mxu1 %v10727_v20 }
 0x190   : > { %9249 = vmatpush3.bf16.msra.mxu1 %v10464_v38  ;;  %9155 = vmatprep.subr.bf16.mxu0 %v10482_v47 }
 0x191   : > { %8050 = vmatmul.mubr.f32.gmra.mrb[2].mxu0 %v10741_v55  ;;  %9251 = vmatprep.subr.bf16.mxu1 %v10484_v48 }
 0x192   : > { %8182 = vmatmul.mubr.f32.gmra.mrb[2].mxu1 %v10741_v55  ;;  %8068 = vmatprep.mubr.f32.mxu0 %v10714_v15 }
 0x193   : > { %9157 = vmatpush3.bf16.msra.mxu0 %v10482_v47  ;;  %8200 = vmatprep.mubr.f32.mxu1 %v10714_v15 }
 0x194   : > { %9253 = vmatpush3.bf16.msra.mxu1 %v10484_v48  ;;  %9159 = vmatprep.subr.bf16.mxu0 %v10526_v60 }
 0x195   : > { %9255 = vmatprep.subr.bf16.mxu1 %v10540_v1 }
 0x197   : > { %9161 = vmatpush3.bf16.msra.mxu0 %v10526_v60 }
 0x198   : > { %9257 = vmatpush3.bf16.msra.mxu1 %v10540_v1  ;;  %9163 = vmatprep.subr.bf16.mxu0 %v10548_v5 }
 0x199   : > { %9259 = vmatprep.subr.bf16.mxu1 %v10560_v8 }
 0x19b   : > { %9165 = vmatpush3.bf16.msra.mxu0 %v10548_v5 }
 0x19c   : > { %9261 = vmatpush3.bf16.msra.mxu1 %v10560_v8  ;;  %9167 = vmatprep.subr.bf16.mxu0 %v10668_v42 }
 0x19d   : > { %9263 = vmatprep.subr.bf16.mxu1 %v10674_v58 }
 0x19e   : > { %8069 = vmatmul.mubr.f32.vlgmr.msra.gmra.mrb[0].mxu0 %v10731_v49 }
 0x19f   : > { %8201 = vmatmul.mubr.f32.vlgmr.msra.gmra.mrb[0].mxu1 %v10731_v49  ;;  %8071 = vmatprep.mubr.f32.mxu0 %v10736_v32 }
 0x1a0   : > { %9169 = vmatpush3.bf16.msra.mxu0 %v10668_v42  ;;  %8203 = vmatprep.mubr.f32.mxu1 %v10736_v32 }
 0x1a1   : > { %9265 = vmatpush3.bf16.msra.mxu1 %v10674_v58  ;;  %9171 = vmatprep.subr.bf16.mxu0 %v10680_v44 }
 0x1a2   : > { %8072 = vmatmul.mubr.f32.gmra.mrb[2].mxu0 %v10746_v39  ;;  %9267 = vmatprep.subr.bf16.mxu1 %v10686_v52 }
 0x1a3   : > { %8204 = vmatmul.mubr.f32.gmra.mrb[2].mxu1 %v10746_v39  ;;  %8090 = vmatprep.mubr.f32.mxu0 %v10706_v18 }
 0x1a4   : > { %9173 = vmatpush3.bf16.msra.mxu0 %v10680_v44  ;;  %8222 = vmatprep.mubr.f32.mxu1 %v10706_v18 }
 0x1a5   : > { %9269 = vmatpush3.bf16.msra.mxu1 %v10686_v52  ;;  %9175 = vmatprep.subr.bf16.mxu0 %v10688_v4 }
 0x1a6   : > { %9271 = vmatprep.subr.bf16.mxu1 %v10690_v9 }
 0x1a8   : > { %9177 = vmatpush3.bf16.msra.mxu0 %v10688_v4 }
 0x1a9   : > { %9273 = vmatpush3.bf16.msra.mxu1 %v10690_v9  ;;  %9179 = vmatprep.subr.bf16.mxu0 %v10692_v6 }
 0x1aa   : > { %9275 = vmatprep.subr.bf16.mxu1 %v10694_v7 }
 0x1ac   : > { %9181 = vmatpush3.bf16.msra.mxu0 %v10692_v6 }
 0x1ad   : > { %9277 = vmatpush3.bf16.msra.mxu1 %v10694_v7  ;;  %9183 = vmatprep.subr.bf16.mxu0 %v10462_v37 }
 0x1ae   : > { %9279 = vmatprep.subr.bf16.mxu1 %v10464_v38 }
 0x1af   : > { %8091 = vmatmul.mubr.f32.vlgmr.msra.gmra.mrb[0].mxu0 %v10716_v14 }
 0x1b0   : > { %8223 = vmatmul.mubr.f32.vlgmr.msra.gmra.mrb[0].mxu1 %v10716_v14  ;;  %8093 = vmatprep.mubr.f32.mxu0 %v10719_v25 }
 0x1b1   : > { %9185 = vmatpush3.bf16.msra.mxu0 %v10462_v37  ;;  %8225 = vmatprep.mubr.f32.mxu1 %v10719_v25  ;;  %v7319_v37 = vld [vmem:[%s12815_s4] ss:$0 sm:$0xff] }
 0x1b2   : > { %9281 = vmatpush3.bf16.msra.mxu1 %v10464_v38  ;;  %9187 = vmatprep.subr.bf16.mxu0 %v10482_v47  ;;  %v7320_v38 = vld [vmem:[%s12817_s6] ss:$0 sm:$0xff] }
 0x1b3   : > { %8094 = vmatmul.mubr.f32.gmra.mrb[2].mxu0 %v10733_v27  ;;  %9283 = vmatprep.subr.bf16.mxu1 %v10484_v48 }
 0x1b4   : > { %8226 = vmatmul.mubr.f32.gmra.mrb[2].mxu1 %v10733_v27  ;;  %8112 = vmatprep.mubr.f32.mxu0 %v10706_v18 }
 0x1b5   : > { %9189 = vmatpush3.bf16.msra.mxu0 %v10482_v47  ;;  %8244 = vmatprep.mubr.f32.mxu1 %v10706_v18 }
 0x1b6   : > { %9285 = vmatpush3.bf16.msra.mxu1 %v10484_v48  ;;  %9191 = vmatprep.subr.bf16.mxu0 %v10526_v60 }
 0x1b7   : > { %9287 = vmatprep.subr.bf16.mxu1 %v10540_v1 }
 0x1b9   : > { %9193 = vmatpush3.bf16.msra.mxu0 %v10526_v60 }
 0x1ba   : > { %9289 = vmatpush3.bf16.msra.mxu1 %v10540_v1  ;;  %9195 = vmatprep.subr.bf16.mxu0 %v10548_v5 }
 0x1bb   : > { %9291 = vmatprep.subr.bf16.mxu1 %v10560_v8 }
 0x1bd   : > { %9197 = vmatpush3.bf16.msra.mxu0 %v10548_v5 }
 0x1be   : > { %9293 = vmatpush3.bf16.msra.mxu1 %v10560_v8 }
 0x1c0   : > { %8113 = vmatmul.mubr.f32.vlgmr.msra.gmra.mrb[0].mxu0 %v10716_v14 }
 0x1c1   : > { %8245 = vmatmul.mubr.f32.vlgmr.msra.gmra.mrb[0].mxu1 %v10716_v14  ;;  %8115 = vmatprep.mubr.f32.mxu0 %v10719_v25 }
 0x1c2   : > { %8247 = vmatprep.mubr.f32.mxu1 %v10719_v25 }
 0x1c4   : > { %8116 = vmatmul.mubr.f32.gmra.mrb[2].mxu0 %v10733_v27 }
 0x1c5   : > { %8248 = vmatmul.mubr.f32.gmra.mrb[2].mxu1 %v10733_v27 }
 0x293   : > { %v8114_v47 = vpop.f32.mrb[0].mxu0 }
 0x294   : > { %v9678_v48 = vadd.f32 %v8114_v47, %v7319_v37  ;;  %v8246_v60 = vpop.f32.mrb[0].mxu1  ;;  %v1279_v1 = vpop.f32.mrb[1].mxu0 }
 0x295   : > { %v9682_v5 = vadd.f32 %v8246_v60, %v7320_v38  ;;  %v9679_v8 = vadd.f32 %v7319_v37, %v1279_v1  ;;  %v1964_v26 = vpop.f32.mrb[1].mxu1 }
 0x296   : > { %1302 = vst.msk [vmem:[#allocation2 + $0x8] sm:$0xff] %vm532_vm0, %v9678_v48  ;;  %v9683_v35 = vadd.f32 %v7320_v38, %v1964_v26 }
 0x297   : > { %1987 = vst [vmem:[#allocation3 + $0x8] sm:$0xff] %v9682_v5  ;;  %1301 = vst.msk [vmem:[#allocation2] sm:$0xff] %vm532_vm0, %v9679_v8  ;;  %v8117_v41 = vpop.f32.mrb[2].mxu0 }
 0x298   : > { %1986 = vst [vmem:[#allocation3] sm:$0xff] %v9683_v35  ;;  %v9680_v23 = vadd.f32 %v8117_v41, %v7319_v37  ;;  %v8249_v53 = vpop.f32.mrb[2].mxu1  ;;  %v1291_v43 = vpop.f32.mrb[3].mxu0 }
 0x299   : > { %v9684_v24 = vadd.f32 %v8249_v53, %v7320_v38  ;;  %v9681_v2 = vadd.f32 %v7319_v37, %v1291_v43  ;;  %v1976_v31 = vpop.f32.mrb[3].mxu1 }
 0x29a   : > { %1304 = vst.msk [vmem:[#allocation2 + $0x18] sm:$0xff] %vm532_vm0, %v9680_v23  ;;  %v9685_v33 = vadd.f32 %v7320_v38, %v1976_v31 }
 0x29b   : > { %1989 = vst [vmem:[#allocation3 + $0x18] sm:$0xff] %v9684_v24  ;;  %1303 = vst.msk [vmem:[#allocation2 + $0x10] sm:$0xff] %vm532_vm0, %v9681_v2 }
 0x29c   : > { %1988 = vst [vmem:[#allocation3 + $0x10] sm:$0xff] %v9685_v33 }
 0x29d PF: > { %v1997_v34 = vlaneseq  ;;  %v10883_v30 = vld [vmem:[%s507_s20] ss:$0 sm:$0xff]  ;;  %v10237_v44 = vmov 0.0   ;;  %v2045_v63 = vld [vmem:[#allocation2 + $0x8] sm:$0xff]  ;;  %vm2080_vm9 = vcmask 261120   ;;  %vm4497_vm10 = vcmask 523264  }
 0x29e   : > { %12956 = vst [vmem:[#allocation18_spill] sm:$0xff] %v10883_v30  ;;  %v7322_v29 = vld [vmem:[%s514_s21] ss:$0 sm:$0xff]  ;;  %v2133_v3 = vand.u32 4294901760, %v2045_v63  ;;  %v3260_v48 = vld [vmem:[#allocation3 + $0x8] sm:$0xff]  ;;  %s10238_s21 = smov 64  }
 0x29f   : > { %v10885_v56 = vshrl.u32 %v1997_v34, 7  ;;  %v7331_v57 = vld [vmem:[%s10401_s15] ss:$0 sm:$0xff]  ;;  %v3347_v1 = vand.u32 4294901760, %v3260_v48  ;;  %s7196_s20 = sshll.u32 %s10403_s22, 4  ;;  %s13140_s24 = sld [smem:[#allocation47_spill]]  ;;  %s12751_s20 = int_to_ptr.vmem [resolvable:$true] %s7196_s20 }
 0x2a0   : > { %v2044_v0 = vld [vmem:[#allocation2] sm:$0xff]  ;;  %v10929_v50 = vsub.f32 %v2045_v63, %v2133_v3  ;;  %s10140_s18 = scalar_lea.vmem %s12751_s20, 512  ;;  %s10240_s29 = smov [#allocation4]  }
 0x2a1   : > { %12957 = vst [vmem:[#allocation19_spill] sm:$0xff] %v10885_v56  ;;  %vm2006_vm1 = vcmp.eq.s32.totalorder %v10885_v56, %v10883_v30  ;;  %v1999_v61 = vadd.s32 8, %v10885_v56  ;;  %v2000_v42 = vadd.s32 16, %v10885_v56  ;;  %v2001_v58 = vadd.s32 24, %v10885_v56  ;;  %v2047_v12 = vld [vmem:[#allocation2 + $0x18] sm:$0xff]  ;;  %v3259_v47 = vld [vmem:[#allocation3] sm:$0xff]  ;;  %p10141_p1 = scmp.ne.s32.totalorder %s12751_s20, %s10140_s18 }
 0x2a2   : > { %v7323_v52 = vsel %vm2006_vm1, 1.0, %v10237_v44  ;;  %vm2014_vm4 = vcmp.eq.s32.totalorder %v10885_v56, %v7322_v29  ;;  %v2130_v13 = vand.u32 4294901760, %v2044_v0  ;;  %v2046_v11 = vld [vmem:[#allocation2 + $0x10] sm:$0xff]  ;;  %v2139_v15 = vand.u32 4294901760, %v2047_v12  ;;  %s10144_s26 = sshll.u32 %s10240_s29, 4  ;;  %s10145_s26 = int_to_ptr.vmem [resolvable:$false] %s10144_s26 }
 0x2a3   : > { %2048 = vxpose.xlu0.b32.start [1/4] (short) %v7323_v52, 128  ;;  %vm2007_vm2 = vcmp.eq.s32.totalorder %v1999_v61, %v10883_v30  ;;  %vm2008_vm3 = vcmp.eq.s32.totalorder %v2000_v42, %v10883_v30  ;;  %vm2009_vm5 = vcmp.eq.s32.totalorder %v2001_v58, %v10883_v30  ;;  %v7327_v59 = vsel %vm2014_vm4, 1.0, %v10237_v44  ;;  %p10142_p2 = pnand %p10141_p1, %p10357_p3  ;;  %s10146_s14 = scalar_lea.vmem %s10145_s26, 1024 }
 0x2a4   : > { %v7324_v4 = vsel %vm2007_vm2, 1.0, %v10237_v44  ;;  %v10904_v9 = vsel %vm2007_vm2, %v7331_v57, 0.0  ;;  %v10906_v6 = vsel %vm2008_vm3, %v7331_v57, 0.0  ;;  %v10911_v7 = vsel %vm2009_vm5, %v7331_v57, 0.0  ;;  %3263 = vxpose.xlu1.b32.start [1/4] (short) %v7327_v59, 128  ;;  %p10147_p5 = scmp.lt.s32.totalorder %s12751_s20, %s10145_s26  ;;  %p10148_p6 = scmp.lt.s32.totalorder %s10146_s14, %s10140_s18 }
 0x2a5   : > { %12958 = vst [vmem:[#allocation20_spill] sm:$0xff] %v10904_v9  ;;  %12959 = vst [vmem:[#allocation21_spill] sm:$0xff] %v10906_v6  ;;  %vm2015_vm6 = vcmp.eq.s32.totalorder %v1999_v61, %v7322_v29  ;;  %v7325_v40 = vsel %vm2008_vm3, 1.0, %v10237_v44  ;;  %vm2016_vm7 = vcmp.eq.s32.totalorder %v2000_v42, %v7322_v29  ;;  %v10913_v10 = vpack.c.bf16 %v2133_v3, %v2130_v13  ;;  %s13141_s19 = smov %s13140_s24  ;;  %p10143_p4 = pneg %p10142_p2 }
 0x2a6   : > { %12960 = vst [vmem:[#allocation22_spill] sm:$0xff] %v10911_v7  ;;  %v7328_v18 = vsel %vm2015_vm6, 1.0, %v10237_v44  ;;  %v2136_v21 = vand.u32 4294901760, %v2046_v11  ;;  %v7326_v14 = vsel %vm2009_vm5, 1.0, %v10237_v44  ;;  %v7329_v16 = vsel %vm2016_vm7, 1.0, %v10237_v44  ;;  %p10149_p7 = por %p10148_p6, %p10147_p5 }
 0x2a7   : > { %2049 = vxpose.xlu0.b32.cont [2/4] (short) %v7324_v4, 128  ;;  %9295 = vmatprep.subr.bf16.mxu0 %v10913_v10  ;;  %vm2017_vm8 = vcmp.eq.s32.totalorder %v2001_v58, %v7322_v29  ;;  %v10927_v22 = vsub.f32 %v2044_v0, %v2130_v13  ;;  %v12854_v28 = vand.u32 4294901760, %v10929_v50  ;;  %v10941_v32 = vsub.f32 %v2047_v12, %v2139_v15 }
 0x2a8   : > { %3264 = vxpose.xlu1.b32.cont [2/4] (short) %v7328_v18, 128  ;;  %9726 = vmatprep.subr.bf16.mxu1 %v10913_v10  ;;  %v10920_v25 = vpack.c.bf16 %v2139_v15, %v2136_v21  ;;  %v7330_v19 = vsel %vm2017_vm8, 1.0, %v10237_v44  ;;  %v10939_v27 = vsub.f32 %v2046_v11, %v2136_v21  ;;  %v3344_v60 = vand.u32 4294901760, %v3259_v47  ;;  %p10150_p8 = pnand %p10149_p7, %p10143_p4 }
 0x2a9   : > { %9297 = vmatpush3.bf16.msra.mxu0 %v10913_v10  ;;  %9728 = vmatpush3.bf16.msra.mxu1 %v10913_v10  ;;  %v12855_v20 = vand.u32 4294901760, %v10927_v22  ;;  %v2369_v49 = vsub.f32 %v10929_v50, %v12854_v28  ;;  %12962 = vst [vmem:[#allocation24_spill] sm:$0xff] %v10941_v32  ;;  %v12850_v54 = vand.u32 4294901760, %v10941_v32  ;;  %v10958_v26 = vsub.f32 %v3260_v48, %v3347_v1 }
 0x2aa   : > { %9299 = vmatprep.subr.bf16.mxu0 %v10920_v25  ;;  %9727 = vmatprep.subr.bf16.mxu1 %v10920_v25  ;;  %12961 = vst [vmem:[#allocation23_spill] sm:$0xff] %v10939_v27  ;;  %v12851_v36 = vand.u32 4294901760, %v10939_v27  ;;  %v10953_v5 = vpack.c.bf16 %v3347_v1, %v3344_v60  ;;  %v10956_v8 = vsub.f32 %v3259_v47, %v3344_v60 }
 0x2ab   : > { %2050 = vxpose.xlu0.b32.cont [3/4] (short) %v7325_v40, 128  ;;  %v2362_v17 = vsub.f32 %v10927_v22, %v12855_v20  ;;  %v2370_v55 = vand.u32 4294901760, %v2369_v49  ;;  %v2383_v45 = vsub.f32 %v10941_v32, %v12850_v54  ;;  %12965 = vst [vmem:[#allocation27_spill] sm:$0xff] %v10958_v26  ;;  %v10962_v35 = vpack.c.bf16 %v10929_v50, %v10927_v22 }
 0x2ac   : > { %3265 = vxpose.xlu1.b32.cont [3/4] (short) %v7329_v16, 128  ;;  %v2376_v62 = vsub.f32 %v10939_v27, %v12851_v36  ;;  %12963 = vst [vmem:[#allocation25_spill] sm:$0xff] %v10953_v5  ;;  %12964 = vst [vmem:[#allocation26_spill] sm:$0xff] %v10956_v8  ;;  %v12841_v41 = vand.u32 4294901760, %v10956_v8  ;;  %v12840_v23 = vand.u32 4294901760, %v10958_v26  ;;  %v10974_v31 = vpack.c.bf16 %v10941_v32, %v10939_v27  ;;  %v3261_v36 = vld [vmem:[#allocation3 + $0x10] sm:$0xff] }
 0x2ad   : > { %9301 = vmatpush3.bf16.msra.mxu0 %v10920_v25  ;;  %9729 = vmatpush3.bf16.msra.mxu1 %v10920_v25  ;;  %v2363_v51 = vand.u32 4294901760, %v2362_v17  ;;  %v2384_v37 = vand.u32 4294901760, %v2383_v45  ;;  %v10980_v34 = vpack.c.bf16 %v10958_v26, %v10956_v8 }
 0x2ae   : > { %v2377_v46 = vand.u32 4294901760, %v2376_v62  ;;  %9343 = vmatprep.subr.bf16.mxu1 %v10953_v5  ;;  %v3576_v53 = vsub.f32 %v10956_v8, %v12841_v41  ;;  %v3583_v43 = vsub.f32 %v10958_v26, %v12840_v23 }
 0x2af   : > { %2051 = vxpose.xlu0.b32.end [4/4] (short) %v7326_v14, 128  ;;  %v9302_v39 = vpack.c.bf16 %v2370_v55, %v2363_v51 }
 0x2b0   : > { %3266 = vxpose.xlu1.b32.end [4/4] (short) %v7330_v19, 128  ;;  %v10951_v38 = vpack.c.bf16 %v2384_v37, %v2377_v46  ;;  %v3577_v24 = vand.u32 4294901760, %v3576_v53  ;;  %v3584_v2 = vand.u32 4294901760, %v3583_v43 }
 0x2b1   : > { %9303 = vmatprep.subr.bf16.mxu0 %v9302_v39 }
 0x2b2   : > { %v10976_v33 = vpack.c.bf16 %v3584_v2, %v3577_v24 }
 0x323   : > { %v2064_v29 = vpop.trf.xlu0 }
 0x324   : > { %v2082_v57 = vsel %vm2080_vm9, %v2064_v29, 0  ;;  %v10988_v44 = vpop.trf.xlu1 }
 0x325   : > { %v10983_v61 = vand.u32 4294901760, %v2082_v57 }
 0x327   : > { %12966 = vst [vmem:[#allocation28_spill] sm:$0xff] %v10983_v61  ;;  %v10986_v42 = vsub.f32 %v2082_v57, %v10983_v61  ;;  %v2065_v58 = vpop.trf.xlu0 }
 0x328   : > { %v2085_v52 = vsel %vm2080_vm9, %v2065_v58, 0  ;;  %v11000_v18 = vpop.trf.xlu1 }
 0x329   : > { %v10991_v4 = vand.u32 4294901760, %v2085_v52  ;;  %v12853_v59 = vand.u32 4294901760, %v10986_v42 }
 0x32b   : > { %12967 = vst [vmem:[#allocation29_spill] sm:$0xff] %v10991_v4  ;;  %v10995_v0 = vsub.f32 %v2085_v52, %v10991_v4  ;;  %v2066_v63 = vpop.trf.xlu0  ;;  %v2201_v40 = vsub.f32 %v10986_v42, %v12853_v59 }
 0x32c   : > { %v2088_v13 = vsel %vm2080_vm9, %v2066_v63, 0  ;;  %v11012_v16 = vpop.trf.xlu1 }
 0x32d   : > { %v12849_v3 = vand.u32 4294901760, %v10995_v0  ;;  %v11004_v11 = vand.u32 4294901760, %v2088_v13  ;;  %v2202_v12 = vand.u32 4294901760, %v2201_v40 }
 0x32f   : > { %12968 = vst [vmem:[#allocation30_spill] sm:$0xff] %v11004_v11  ;;  %v11007_v21 = vsub.f32 %v2088_v13, %v11004_v11  ;;  %8258 = vmatprep.mubr.f32.mxu0 %v2202_v12  ;;  %v2067_v15 = vpop.trf.xlu0  ;;  %v2211_v14 = vsub.f32 %v10995_v0, %v12849_v3 }
 0x330   : > { %v2091_v19 = vsel %vm2080_vm9, %v2067_v15, 0  ;;  %v11024_v46 = vpop.trf.xlu1 }
 0x331   : > { %v12847_v17 = vand.u32 4294901760, %v11007_v21  ;;  %v11016_v49 = vand.u32 4294901760, %v2091_v19  ;;  %v2212_v51 = vand.u32 4294901760, %v2211_v14 }
 0x333   : > { %12969 = vst [vmem:[#allocation31_spill] sm:$0xff] %v11016_v49  ;;  %v11019_v55 = vsub.f32 %v2091_v19, %v11016_v49  ;;  %8259 = vmatmul.mubr.f32.vlgmr.msra.gmra.mrb[0].mxu0 %v2212_v51  ;;  %v2068_v62 = vpop.trf.xlu0  ;;  %v2221_v45 = vsub.f32 %v11007_v21, %v12847_v17 }
 0x334   : > { %v2094_v37 = vsel %vm2080_vm9, %v2068_v62, 0  ;;  %9305 = vmatpush3.bf16.msra.mxu0 %v9302_v39  ;;  %v11037_v24 = vpop.trf.xlu1 }
 0x335   : > { %v12846_v47 = vand.u32 4294901760, %v11019_v55  ;;  %v11028_v48 = vand.u32 4294901760, %v2094_v37  ;;  %v2222_v60 = vand.u32 4294901760, %v2221_v45  ;;  %9307 = vmatprep.subr.bf16.mxu0 %v10951_v38 }
 0x337   : > { %12970 = vst [vmem:[#allocation32_spill] sm:$0xff] %v11028_v48  ;;  %v11032_v1 = vsub.f32 %v2094_v37, %v11028_v48  ;;  %8261 = vmatprep.mubr.f32.mxu0 %v2222_v60  ;;  %v2069_v53 = vpop.trf.xlu0  ;;  %v2231_v43 = vsub.f32 %v11019_v55, %v12846_v47 }
 0x338   : > { %v2097_v39 = vsel %vm2080_vm9, %v2069_v53, 0  ;;  %9309 = vmatpush3.bf16.msra.mxu0 %v10951_v38  ;;  %v11051_v40 = vpop.trf.xlu1 }
 0x339   : > { %v12845_v2 = vand.u32 4294901760, %v11032_v1  ;;  %v11042_v29 = vand.u32 4294901760, %v2097_v39  ;;  %v2232_v57 = vand.u32 4294901760, %v2231_v43  ;;  %9311 = vmatprep.subr.bf16.mxu0 %v10962_v35 }
 0x33b   : > { %12971 = vst [vmem:[#allocation33_spill] sm:$0xff] %v11042_v29  ;;  %v11046_v58 = vsub.f32 %v2097_v39, %v11042_v29  ;;  %8262 = vmatmul.mubr.f32.gmra.mrb[2].mxu0 %v2232_v57  ;;  %v2070_v52 = vpop.trf.xlu0  ;;  %v2241_v63 = vsub.f32 %v11032_v1, %v12845_v2 }
 0x33c   : > { %v2100_v38 = vsel %vm2080_vm9, %v2070_v52, 0  ;;  %v11063_v62 = vpop.trf.xlu1 }
 0x33d   : > { %v12843_v13 = vand.u32 4294901760, %v11046_v58  ;;  %v11055_v12 = vand.u32 4294901760, %v2100_v38  ;;  %v2242_v15 = vand.u32 4294901760, %v2241_v63 }
 0x33f   : > { %12972 = vst [vmem:[#allocation34_spill] sm:$0xff] %v11055_v12  ;;  %v11058_v14 = vsub.f32 %v2100_v38, %v11055_v12  ;;  %8264 = vmatprep.mubr.f32.mxu0 %v2242_v15  ;;  %v2071_v19 = vpop.trf.xlu0  ;;  %v2251_v51 = vsub.f32 %v11046_v58, %v12843_v13 }
 0x340   : > { %v2103_v45 = vsel %vm2080_vm9, %v2071_v19, 0  ;;  %v11075_v52 = vpop.trf.xlu1 }
 0x341   : > { %v12842_v37 = vand.u32 4294901760, %v11058_v14  ;;  %v11067_v60 = vand.u32 4294901760, %v2103_v45  ;;  %v2252_v53 = vand.u32 4294901760, %v2251_v51 }
 0x343   : > { %12973 = vst [vmem:[#allocation35_spill] sm:$0xff] %v11067_v60  ;;  %v11070_v43 = vsub.f32 %v2103_v45, %v11067_v60  ;;  %8265 = vmatmul.mubr.f32.gmra.mrb[4].mxu0 %v2252_v53  ;;  %v2072_v39 = vpop.trf.xlu0  ;;  %v2261_v57 = vsub.f32 %v11058_v14, %v12842_v37 }
 0x344   : > { %v2106_v63 = vsel %vm2080_vm9, %v2072_v39, 0  ;;  %v11091_v13 = vpop.trf.xlu1 }
 0x345   : > { %v12844_v38 = vand.u32 4294901760, %v11070_v43  ;;  %v11079_v15 = vand.u32 4294901760, %v2106_v63  ;;  %v2262_v19 = vand.u32 4294901760, %v2261_v57  ;;  %v3320_v32 = vsel %vm2080_vm9, %v11091_v13, 0 }
 0x347   : > { %12974 = vst [vmem:[#allocation36_spill] sm:$0xff] %v11079_v15  ;;  %v11082_v51 = vsub.f32 %v2106_v63, %v11079_v15  ;;  %8267 = vmatprep.mubr.f32.mxu0 %v2262_v19  ;;  %v2073_v45 = vpop.trf.xlu0  ;;  %v2271_v53 = vsub.f32 %v11070_v43, %v12844_v38 }
 0x348   : > { %v2109_v23 = vsel %vm2080_vm9, %v2073_v45, 0 }
 0x349   : > { %v12848_v41 = vand.u32 4294901760, %v11082_v51  ;;  %v11089_v37 = vand.u32 4294901760, %v2109_v23  ;;  %v2272_v39 = vand.u32 4294901760, %v2271_v53 }
 0x34b   : > { %12975 = vst [vmem:[#allocation37_spill] sm:$0xff] %v11089_v37  ;;  %v11094_v57 = vsub.f32 %v2109_v23, %v11089_v37  ;;  %8268 = vmatmul.mubr.f32.gmra.mrb[6].mxu0 %v2272_v39  ;;  %v2074_v63 = vpop.trf.xlu0  ;;  %v2281_v19 = vsub.f32 %v11082_v51, %v12848_v41  ;;  %v11109_v39 = vpop.trf.xlu1 }
 0x34c   : > { %v2112_v38 = vsel %vm2080_vm9, %v2074_v63, 0 }
 0x34d   : > { %v12852_v45 = vand.u32 4294901760, %v11094_v57  ;;  %v11101_v2 = vand.u32 4294901760, %v2112_v38  ;;  %v2282_v47 = vand.u32 4294901760, %v2281_v19  ;;  %v3262_v19 = vld [vmem:[#allocation3 + $0x18] sm:$0xff] }
 0x34e   : > { %v3353_v28 = vand.u32 4294901760, %v3262_v19 }
 0x34f   : > { %12976 = vst [vmem:[#allocation38_spill] sm:$0xff] %v11101_v2  ;;  %v11104_v53 = vsub.f32 %v2112_v38, %v11101_v2  ;;  %8270 = vmatprep.mubr.f32.mxu0 %v2282_v47  ;;  %v2075_v17 = vpop.trf.xlu0  ;;  %v2291_v23 = vsub.f32 %v11094_v57, %v12852_v45  ;;  %v11126_v6 = vpop.trf.xlu1 }
 0x350   : > { %v2115_v41 = vsel %vm2080_vm9, %v2075_v17, 0  ;;  %v3350_v17 = vand.u32 4294901760, %v3261_v36 }
 0x351   : > { %v11112_v3 = vand.u32 4294901760, %v2115_v41  ;;  %v2292_v63 = vand.u32 4294901760, %v2291_v23  ;;  %v12858_v54 = vand.u32 4294901760, %v11104_v53 }
 0x353   : > { %12977 = vst [vmem:[#allocation39_spill] sm:$0xff] %v11112_v3  ;;  %v11116_v38 = vsub.f32 %v2115_v41, %v11112_v3  ;;  %8271 = vmatmul.mubr.f32.gmra.mrb[8].mxu0 %v2292_v63  ;;  %v2076_v47 = vpop.trf.xlu0  ;;  %v2301_v45 = vsub.f32 %v11104_v53, %v12858_v54  ;;  %v3296_v41 = vsel %vm2080_vm9, %v10988_v44, 0  ;;  %v3299_v44 = vsel %vm2080_vm9, %v11000_v18, 0 }
 0x354   : > { %v2118_v59 = vsel %vm2080_vm9, %v2076_v47, 0  ;;  %8290 = vmatprep.mubr.f32.mxu0 %v10983_v61  ;;  %v11148_v56 = vand.u32 4294901760, %v3296_v41 }
 0x355   : > { %v12862_v23 = vand.u32 4294901760, %v11116_v38  ;;  %v11124_v20 = vand.u32 4294901760, %v2118_v59  ;;  %v2302_v7 = vand.u32 4294901760, %v2301_v45  ;;  %v11139_v45 = vpack.c.bf16 %v3353_v28, %v3350_v17 }
 0x357   : > { %12978 = vst [vmem:[#allocation40_spill] sm:$0xff] %v11124_v20  ;;  %v11131_v63 = vsub.f32 %v2118_v59, %v11124_v20  ;;  %8273 = vmatprep.mubr.f32.mxu1 %v2302_v7  ;;  %8291 = vmatmul.mubr.f32.vlgmr.msra.gmra.mrb[0].mxu0 %v10991_v4  ;;  %v2077_v47 = vpop.trf.xlu0  ;;  %v2311_v54 = vsub.f32 %v11116_v38, %v12862_v23  ;;  %12979 = vst [vmem:[#allocation41_spill] sm:$0xff] %v11139_v45  ;;  %v11163_v4 = vand.u32 4294901760, %v3299_v44 }
 0x358   : > { %v2121_v9 = vsel %vm2080_vm9, %v2077_v47, 0  ;;  %8293 = vmatprep.mubr.f32.mxu0 %v11004_v11  ;;  %9313 = vmatpush3.bf16.msra.mxu0 %v10962_v35  ;;  %v11150_v23 = vsub.f32 %v3261_v36, %v3350_v17  ;;  %v11152_v47 = vsub.f32 %v3262_v19, %v3353_v28  ;;  %v3302_v36 = vsel %vm2080_vm9, %v11012_v16, 0 }
 0x359   : > { %v12867_v7 = vand.u32 4294901760, %v11131_v63  ;;  %v11145_v59 = vand.u32 4294901760, %v2121_v9  ;;  %v2312_v30 = vand.u32 4294901760, %v2311_v54  ;;  %9315 = vmatprep.subr.bf16.mxu0 %v10974_v31  ;;  %v11161_v54 = vpop.trf.xlu1  ;;  %v11178_v16 = vsub.f32 %v3296_v41, %v11148_v56 }
 0x35b   : > { %12980 = vst [vmem:[#allocation42_spill] sm:$0xff] %v11145_v59  ;;  %v11155_v11 = vsub.f32 %v2121_v9, %v11145_v59  ;;  %8274 = vmatmul.mubr.f32.vlgmr.msra.gmra.mrb[0].mxu1 %v2312_v30  ;;  %8294 = vmatmul.mubr.f32.gmra.mrb[2].mxu0 %v11016_v49  ;;  %v2078_v35 = vpop.trf.xlu0  ;;  %v2321_v18 = vsub.f32 %v11131_v63, %v12867_v7  ;;  %v3305_v30 = vsel %vm2080_vm9, %v11024_v46, 0  ;;  %12982 = vst [vmem:[#allocation44_spill] sm:$0xff] %v11178_v16 }
 0x35c   : > { %v2124_v28 = vsel %vm2080_vm9, %v2078_v35, 0  ;;  %8296 = vmatprep.mubr.f32.mxu0 %v11028_v48  ;;  %9345 = vmatpush3.bf16.msra.mxu1 %v10953_v5  ;;  %v11183_v48 = vand.u32 4294901760, %v3302_v36  ;;  %v3308_v46 = vsel %vm2080_vm9, %v11037_v24, 0  ;;  %v11195_v7 = vsub.f32 %v3299_v44, %v11163_v4 }
 0x35d   : > { %v12872_v9 = vand.u32 4294901760, %v11155_v11  ;;  %v11173_v19 = vand.u32 4294901760, %v2124_v28  ;;  %v2322_v17 = vand.u32 4294901760, %v2321_v18  ;;  %9347 = vmatprep.subr.bf16.mxu1 %v11139_v45  ;;  %9317 = vmatpush3.bf16.msra.mxu0 %v10974_v31  ;;  %v11197_v35 = vand.u32 4294901760, %v3305_v30 }
 0x35e   : > { %9319 = vmatprep.subr.bf16.mxu0 %v10913_v10  ;;  %v3311_v49 = vsel %vm2080_vm9, %v11051_v40, 0  ;;  %v11211_v40 = vand.u32 4294901760, %v3308_v46  ;;  %v11217_v26 = vsub.f32 %v3302_v36, %v11183_v48  ;;  %v12986_v36 = vand.u32 4294901760, %v11152_v47 }
 0x35f   : > { %12981 = vst [vmem:[#allocation43_spill] sm:$0xff] %v11173_v19  ;;  %v11188_v18 = vsub.f32 %v2124_v28, %v11173_v19  ;;  %8276 = vmatprep.mubr.f32.mxu1 %v2322_v17  ;;  %8297 = vmatmul.mubr.f32.gmra.mrb[4].mxu0 %v11042_v29  ;;  %v2079_v31 = vpop.trf.xlu0  ;;  %v2331_v41 = vsub.f32 %v11155_v11, %v12872_v9  ;;  %v3314_v28 = vsel %vm2080_vm9, %v11063_v62, 0  ;;  %v3291_v29 = vpop.trf.xlu1  ;;  %v11227_v8 = vand.u32 4294901760, %v3311_v49 }
 0x360   : > { %v2127_v24 = vsel %vm2080_vm9, %v2079_v31, 0  ;;  %8299 = vmatprep.mubr.f32.mxu0 %v11055_v12  ;;  %9349 = vmatpush3.bf16.msra.mxu1 %v11139_v45  ;;  %v12984_v31 = vand.u32 4294901760, %v11150_v23  ;;  %v11229_v45 = vand.u32 4294901760, %v3314_v28  ;;  %v11242_v61 = vsub.f32 %v3308_v46, %v11211_v40 }
 0x361   : > { %v12883_v17 = vand.u32 4294901760, %v11188_v18  ;;  %v11207_v9 = vand.u32 4294901760, %v2127_v24  ;;  %v2332_v44 = vand.u32 4294901760, %v2331_v41  ;;  %9351 = vmatprep.subr.bf16.mxu1 %v10976_v33  ;;  %v11255_v46 = vsub.f32 %v3311_v49, %v11227_v8 }
 0x362   : > { %v3590_v12 = vsub.f32 %v11150_v23, %v12984_v31  ;;  %12985 = vst [vmem:[#allocation46_spill] sm:$0xff] %v11229_v45  ;;  %v3317_v31 = vsel %vm2080_vm9, %v11075_v52, 0  ;;  %v11258_v13 = vsub.f32 %v3314_v28, %v11229_v45  ;;  %v3323_v28 = vsel %vm2080_vm9, %v11109_v39, 0 }
 0x363   : > { %12983 = vst [vmem:[#allocation45_spill] sm:$0xff] %v11207_v9  ;;  %v11220_v62 = vsub.f32 %v2127_v24, %v11207_v9  ;;  %8277 = vmatmul.mubr.f32.gmra.mrb[2].mxu1 %v2332_v44  ;;  %8300 = vmatmul.mubr.f32.gmra.mrb[6].mxu0 %v11067_v60  ;;  %v2341_v41 = vsub.f32 %v11188_v18, %v12883_v17  ;;  %v11260_v5 = vand.u32 4294901760, %v3317_v31  ;;  %v3326_v45 = vsel %vm2080_vm9, %v11126_v6, 0 }
 0x364   : > { %8302 = vmatprep.mubr.f32.mxu0 %v11079_v15  ;;  %v3597_v24 = vsub.f32 %v11152_v47, %v12986_v36  ;;  %v11236_v44 = vsub.f32 %v3305_v30, %v11197_v35  ;;  %v12987_v15 = vand.u32 4294901760, %v11178_v16  ;;  %v3292_v30 = vpop.trf.xlu1 }
 0x365   : > { %v12894_v17 = vand.u32 4294901760, %v11220_v62  ;;  %v2342_v60 = vand.u32 4294901760, %v2341_v41  ;;  %v3591_v41 = vand.u32 4294901760, %v3590_v12  ;;  %v11281_v49 = vsub.f32 %v3317_v31, %v11260_v5 }
 0x366   : > { %v3415_v27 = vsub.f32 %v11178_v16, %v12987_v15  ;;  %v3598_v15 = vand.u32 4294901760, %v3597_v24  ;;  %v12989_v24 = vand.u32 4294901760, %v11217_v26  ;;  %v3329_v31 = vsel %vm2080_vm9, %v11161_v54, 0 }
 0x367   : > { %8279 = vmatprep.mubr.f32.mxu1 %v2342_v60  ;;  %8303 = vmatmul.mubr.f32.gmra.mrb[8].mxu0 %v11089_v37  ;;  %v2351_v52 = vsub.f32 %v11220_v62, %v12894_v17  ;;  %v12988_v60 = vand.u32 4294901760, %v11195_v7  ;;  %v11267_v17 = vand.u32 4294901760, %v3320_v32 }
 0x368   : > { %8305 = vmatprep.mubr.f32.mxu0 %v11101_v2  ;;  %v3416_v16 = vand.u32 4294901760, %v3415_v27  ;;  %v9354_v27 = vpack.c.bf16 %v3598_v15, %v3591_v41  ;;  %v3293_v37 = vpop.trf.xlu1  ;;  %v11292_v2 = vand.u32 4294901760, %v3326_v45  ;;  %v12993_v15 = vand.u32 4294901760, %v11258_v13 }
 0x369   : > { %v3425_v36 = vsub.f32 %v11195_v7, %v12988_v60  ;;  %v2352_v12 = vand.u32 4294901760, %v2351_v52  ;;  %v3435_v60 = vsub.f32 %v11217_v26, %v12989_v24  ;;  %v11285_v6 = vsub.f32 %v3320_v32, %v11267_v17 }
 0x36a   : > { %v12991_v52 = vand.u32 4294901760, %v11242_v61 }
 0x36b   : > { %8280 = vmatmul.mubr.f32.gmra.mrb[4].mxu1 %v2352_v12  ;;  %8306 = vmatmul.mubr.f32.gmra.mrb[10].mxu0 %v11112_v3  ;;  %v3426_v39 = vand.u32 4294901760, %v3425_v36  ;;  %v11287_v12 = vand.u32 4294901760, %v3323_v28  ;;  %v12990_v3 = vand.u32 4294901760, %v11236_v44  ;;  %v3332_v36 = vsel %vm2080_vm9, %v3291_v29, 0 }
 0x36c   : > { %8308 = vmatprep.mubr.f32.mxu0 %v11124_v20  ;;  %8450 = vmatprep.mubr.f32.mxu1 %v3416_v16  ;;  %v3455_v16 = vsub.f32 %v11242_v61, %v12991_v52  ;;  %v3436_v32 = vand.u32 4294901760, %v3435_v60  ;;  %v3475_v52 = vsub.f32 %v11258_v13, %v12993_v15  ;;  %v11314_v60 = vand.u32 4294901760, %v3329_v31 }
 0x36d   : > { %v3445_v24 = vsub.f32 %v11236_v44, %v12990_v3  ;;  %v12992_v3 = vand.u32 4294901760, %v11255_v46  ;;  %v11319_v41 = vand.u32 4294901760, %v3332_v36  ;;  %v3338_v15 = vsel %vm2080_vm9, %v3293_v37, 0 }
 0x36e   : > { %v12994_v29 = vand.u32 4294901760, %v11281_v49 }
 0x36f   : > { %8309 = vmatmul.mubr.f32.gmra.mrb[12].mxu0 %v11145_v59  ;;  %8451 = vmatmul.mubr.f32.vlgmr.msra.gmra.mrb[6].mxu1 %v3426_v39  ;;  %v3465_v54 = vsub.f32 %v11255_v46, %v12992_v3  ;;  %v11312_v59 = vsub.f32 %v3323_v28, %v11287_v12  ;;  %v3446_v39 = vand.u32 4294901760, %v3445_v24  ;;  %v3335_v3 = vsel %vm2080_vm9, %v3292_v30, 0  ;;  %v3294_v28 = vpop.trf.xlu1 }
 0x370   : > { %9353 = vmatpush3.bf16.msra.mxu1 %v10976_v33  ;;  %8311 = vmatprep.mubr.f32.mxu0 %v11173_v19  ;;  %v11317_v33 = vsub.f32 %v3326_v45, %v11292_v2  ;;  %v3456_v19 = vand.u32 4294901760, %v3455_v16  ;;  %v3476_v24 = vand.u32 4294901760, %v3475_v52  ;;  %v3485_v45 = vsub.f32 %v11281_v49, %v12994_v29 }
 0x371   : > { %8453 = vmatprep.mubr.f32.mxu1 %v3436_v32  ;;  %9355 = vmatprep.subr.bf16.mxu1 %v9354_v27  ;;  %v3466_v32 = vand.u32 4294901760, %v3465_v54  ;;  %v11330_v30 = vsub.f32 %v3329_v31, %v11314_v60  ;;  %v11332_v16 = vand.u32 4294901760, %v3335_v3  ;;  %v11339_v54 = vsub.f32 %v3332_v36, %v11319_v41 }
 0x372   : > { %v11341_v52 = vand.u32 4294901760, %v3338_v15  ;;  %v3341_v29 = vsel %vm2080_vm9, %v3294_v28, 0  ;;  %v3486_v31 = vand.u32 4294901760, %v3485_v45  ;;  %v12999_v45 = vand.u32 4294901760, %v11317_v33 }
 0x373   : > { %8312 = vmatmul.mubr.f32.gmra.mrb[14].mxu0 %v11207_v9  ;;  %8454 = vmatmul.mubr.f32.gmra.mrb[8].mxu1 %v3446_v39  ;;  %v12995_v39 = vand.u32 4294901760, %v11285_v6  ;;  %v3524_v36 = vand.u32 4294901760, %v11330_v30  ;;  %v11355_v20 = vsub.f32 %v3335_v3, %v11332_v16  ;;  %v11357_v28 = vand.u32 4294901760, %v3341_v29 }
 0x374   : > { %8322 = vmatprep.mubr.f32.mxu0 %v10986_v42  ;;  %8456 = vmatprep.mubr.f32.mxu1 %v3456_v19  ;;  %v12998_v9 = vand.u32 4294901760, %v11312_v59 }
 0x375   : > { %v3495_v37 = vsub.f32 %v11285_v6, %v12995_v39  ;;  %9357 = vmatpush3.bf16.msra.mxu1 %v9354_v27  ;;  %v12996_v27 = vand.u32 4294901760, %v10927_v22  ;;  %v12997_v39 = vand.u32 4294901760, %v10929_v50  ;;  %v11365_v22 = vsub.f32 %v3338_v15, %v11341_v52 }
 0x376   : > { %9359 = vmatprep.subr.bf16.mxu1 %v10980_v34  ;;  %v11375_v3 = vsub.f32 %v3341_v29, %v11357_v28 }
 0x377   : > { %8323 = vmatmul.mubr.f32.vlgmr.msra.gmra.mrb[0].mxu0 %v10995_v0  ;;  %8457 = vmatmul.mubr.f32.gmra.mrb[10].mxu1 %v3466_v32  ;;  %v11351_v19 = vpack.c.bf16 %v12997_v39, %v12996_v27  ;;  %v3505_v32 = vsub.f32 %v11312_v59, %v12998_v9  ;;  %v3496_v50 = vand.u32 4294901760, %v3495_v37  ;;  %v3515_v27 = vsub.f32 %v11317_v33, %v12999_v45 }
 0x378   : > { %8325 = vmatprep.mubr.f32.mxu0 %v11007_v21  ;;  %8459 = vmatprep.mubr.f32.mxu1 %v3476_v24  ;;  %v12911_v24 = vand.u32 4294901760, %v11339_v54  ;;  %v3544_v9 = vand.u32 4294901760, %v11355_v20  ;;  %v3525_v37 = vsub.f32 %v11330_v30, %v3524_v36  ;;  %v3554_v39 = vand.u32 4294901760, %v11365_v22 }
 0x379   : > { %9321 = vmatpush3.bf16.msra.mxu0 %v10913_v10  ;;  %v3506_v15 = vand.u32 4294901760, %v3505_v32  ;;  %v3516_v45 = vand.u32 4294901760, %v3515_v27  ;;  %v12912_v29 = vand.u32 4294901760, %v11375_v3 }
 0x37a   : > { %9323 = vmatprep.subr.bf16.mxu0 %v10920_v25  ;;  %v3526_v32 = vand.u32 4294901760, %v3525_v37 }
 0x37b   : > { %8326 = vmatmul.mubr.f32.gmra.mrb[2].mxu0 %v11019_v55  ;;  %8460 = vmatmul.mubr.f32.gmra.mrb[12].mxu1 %v3486_v31  ;;  %v3535_v31 = vsub.f32 %v11339_v54, %v12911_v24  ;;  %v3555_v24 = vsub.f32 %v11365_v22, %v3554_v39  ;;  %v3565_v37 = vsub.f32 %v11375_v3, %v12912_v29  ;;  %v13007_v29 = vand.u32 4294901760, %v11007_v21 }
 0x37c   : > { %8328 = vmatprep.mubr.f32.mxu0 %v11032_v1  ;;  %8462 = vmatprep.mubr.f32.mxu1 %v3496_v50  ;;  %v3545_v50 = vsub.f32 %v11355_v20, %v3544_v9  ;;  %v13012_v21 = vand.u32 4294901760, %v11058_v14 }
 0x37d   : > { %9325 = vmatpush3.bf16.msra.mxu0 %v10920_v25  ;;  %v3536_v27 = vand.u32 4294901760, %v3535_v31  ;;  %v3566_v31 = vand.u32 4294901760, %v3565_v37 }
 0x37e   : > { %9327 = vmatprep.subr.bf16.mxu0 %v11351_v19 }
 0x37f   : > { %8329 = vmatmul.mubr.f32.gmra.mrb[4].mxu0 %v11046_v58  ;;  %8463 = vmatmul.mubr.f32.gmra.mrb[14].mxu1 %v3506_v15  ;;  %v3546_v15 = vand.u32 4294901760, %v3545_v50  ;;  %v13001_v50 = vld [vmem:[#allocation25_spill] sm:$0xff] }
 0x380   : > { %8331 = vmatprep.mubr.f32.mxu0 %v11058_v14  ;;  %8465 = vmatprep.mubr.f32.mxu1 %v3516_v45  ;;  %v3556_v45 = vand.u32 4294901760, %v3555_v24  ;;  %v13000_v24 = vand.u32 4294901760, %v10986_v42  ;;  %v13008_v42 = vld [vmem:[#allocation46_spill] sm:$0xff]  ;;  %v13016_v14 = vand.u32 4294901760, %v11104_v53 }
 0x383   : > { %8332 = vmatmul.mubr.f32.gmra.mrb[6].mxu0 %v11070_v43  ;;  %8466 = vmatmul.mubr.f32.gmra.mrb[16].mxu1 %v3526_v32  ;;  %v9362_v32 = vpack.c.bf16 %v11152_v47, %v11150_v23 }
 0x384   : > { %8334 = vmatprep.mubr.f32.mxu0 %v11082_v51  ;;  %8468 = vmatprep.mubr.f32.mxu1 %v3536_v27  ;;  %v13002_v27 = vld [vmem:[#allocation23_spill] sm:$0xff] }
 0x387   : > { %8335 = vmatmul.mubr.f32.gmra.mrb[8].mxu0 %v11094_v57  ;;  %8469 = vmatmul.mubr.f32.gmra.mrb[18].mxu1 %v3546_v15  ;;  %v13003_v15 = vand.u32 4294901760, %v13002_v27 }
 0x388   : > { %8337 = vmatprep.mubr.f32.mxu0 %v11104_v53  ;;  %8471 = vmatprep.mubr.f32.mxu1 %v3556_v45  ;;  %v13021_v53 = vand.u32 4294901760, %v11188_v18 }
 0x38b   : > { %8338 = vmatmul.mubr.f32.gmra.mrb[10].mxu0 %v11116_v38  ;;  %8472 = vmatmul.mubr.f32.gmra.mrb[20].mxu1 %v3566_v31  ;;  %v13006_v31 = vand.u32 4294901760, %v10995_v0  ;;  %v13011_v0 = vand.u32 4294901760, %v11046_v58  ;;  %v13015_v58 = vand.u32 4294901760, %v11094_v57  ;;  %v13020_v57 = vand.u32 4294901760, %v11155_v11 }
 0x38c   : > { %8340 = vmatprep.mubr.f32.mxu0 %v11131_v63  ;;  %8482 = vmatprep.mubr.f32.mxu1 %v11148_v56 }
 0x38f   : > { %8341 = vmatmul.mubr.f32.gmra.mrb[12].mxu0 %v11155_v11  ;;  %8483 = vmatmul.mubr.f32.vlgmr.msra.gmra.mrb[6].mxu1 %v11163_v4  ;;  %v13028_v11 = vld [vmem:[#allocation28_spill] sm:$0xff] }
 0x390   : > { %9361 = vmatpush3.bf16.msra.mxu1 %v10980_v34  ;;  %8343 = vmatprep.mubr.f32.mxu0 %v11188_v18  ;;  %v13004_v34 = vld [vmem:[#allocation24_spill] sm:$0xff]  ;;  %v13029_v18 = vld [vmem:[#allocation29_spill] sm:$0xff] }
 0x391   : > { %8485 = vmatprep.mubr.f32.mxu1 %v11183_v48  ;;  %9363 = vmatprep.subr.bf16.mxu1 %v9362_v32  ;;  %v13005_v37 = vand.u32 4294901760, %v13004_v34 }
 0x393   : > { %8344 = vmatmul.mubr.f32.gmra.mrb[14].mxu0 %v11220_v62  ;;  %8486 = vmatmul.mubr.f32.gmra.mrb[8].mxu1 %v11197_v35  ;;  %v9330_v45 = vpack.c.bf16 %v13005_v37, %v13003_v15  ;;  %v13027_v37 = vand.u32 4294901760, %v11220_v62  ;;  %v13031_v62 = vld [vmem:[#allocation31_spill] sm:$0xff] }
 0x394   : > { %8354 = vmatprep.mubr.f32.mxu0 %v13000_v24  ;;  %8488 = vmatprep.mubr.f32.mxu1 %v11211_v40  ;;  %v13010_v24 = vand.u32 4294901760, %v11032_v1  ;;  %v13014_v1 = vand.u32 4294901760, %v11082_v51  ;;  %v13018_v51 = vand.u32 4294901760, %v11131_v63  ;;  %v13025_v63 = vld [vmem:[#allocation27_spill] sm:$0xff] }
 0x395   : > { %9365 = vmatpush3.bf16.msra.mxu1 %v9362_v32  ;;  %v13009_v32 = vand.u32 4294901760, %v11019_v55  ;;  %v13013_v55 = vand.u32 4294901760, %v11070_v43  ;;  %v13017_v43 = vand.u32 4294901760, %v11116_v38  ;;  %v13022_v38 = vld [vmem:[#allocation41_spill] sm:$0xff]  ;;  %v13026_v15 = vand.u32 4294901760, %v13025_v63 }
 0x396   : > { %9367 = vmatprep.subr.bf16.mxu1 %v13001_v50 }
 0x397   : > { %8355 = vmatmul.mubr.f32.vlgmr.msra.gmra.mrb[0].mxu0 %v13006_v31  ;;  %8489 = vmatmul.mubr.f32.gmra.mrb[10].mxu1 %v11227_v8  ;;  %v13032_v31 = vld [vmem:[#allocation32_spill] sm:$0xff] }
 0x398   : > { %8357 = vmatprep.mubr.f32.mxu0 %v13007_v29  ;;  %8491 = vmatprep.mubr.f32.mxu1 %v13008_v42  ;;  %v13023_v29 = vld [vmem:[#allocation26_spill] sm:$0xff] }
 0x399   : > { %9329 = vmatpush3.bf16.msra.mxu0 %v11351_v19  ;;  %v13019_v19 = vld [vmem:[#allocation44_spill] sm:$0xff]  ;;  %v13024_v27 = vand.u32 4294901760, %v13023_v29  ;;  %v13039_v29 = vld [vmem:[#allocation39_spill] sm:$0xff] }
 0x39a   : > { %9331 = vmatprep.subr.bf16.mxu0 %v9330_v45  ;;  %v13041_v63 = vand.u32 4294901760, %v13019_v19 }
 0x39b   : > { %8358 = vmatmul.mubr.f32.gmra.mrb[2].mxu0 %v13009_v32  ;;  %8492 = vmatmul.mubr.f32.gmra.mrb[12].mxu1 %v11260_v5  ;;  %v9374_v34 = vpack.c.bf16 %v13026_v15, %v13024_v27  ;;  %v13033_v32 = vld [vmem:[#allocation33_spill] sm:$0xff]  ;;  %v13040_v27 = vld [vmem:[#allocation40_spill] sm:$0xff]  ;;  %v13042_v15 = vand.u32 4294901760, %v11150_v23  ;;  %v13047_v23 = vand.u32 4294901760, %v11217_v26 }
 0x39c   : > { %8360 = vmatprep.mubr.f32.mxu0 %v13010_v24  ;;  %8494 = vmatprep.mubr.f32.mxu1 %v11267_v17  ;;  %v5728_v24 = vld [vmem:[%s10387_s27] sm:$0xff] }
 0x39d   : > { %9333 = vmatpush3.bf16.msra.mxu0 %v9330_v45  ;;  %v13030_v45 = vld [vmem:[#allocation30_spill] sm:$0xff]  ;;  %5760 = vrot.lane.b32.xlu0 %v5728_v24, %s10238_s21 }
 0x39e   : > { %9335 = vmatprep.subr.bf16.mxu0 %v10913_v10  ;;  %v13044_v24 = vld [vmem:[#allocation42_spill] sm:$0xff] }
 0x39f   : > { %8361 = vmatmul.mubr.f32.gmra.mrb[4].mxu0 %v13011_v0  ;;  %8495 = vmatmul.mubr.f32.gmra.mrb[14].mxu1 %v11287_v12  ;;  %v13034_v0 = vld [vmem:[#allocation34_spill] sm:$0xff] }
 0x3a0   : > { %8363 = vmatprep.mubr.f32.mxu0 %v13012_v21  ;;  %8497 = vmatprep.mubr.f32.mxu1 %v11292_v2  ;;  %v5731_v21 = vld [vmem:[%s10387_s27 + $0x18] sm:$0xff] }
 0x3a1   : > { %5766 = vrot.lane.b32.xlu0 %v5731_v21, %s10238_s21  ;;  %v13045_v21 = vand.u32 4294901760, %v11195_v7 }
 0x3a3   : > { %8364 = vmatmul.mubr.f32.gmra.mrb[6].mxu0 %v13013_v55  ;;  %8498 = vmatmul.mubr.f32.gmra.mrb[16].mxu1 %v11314_v60  ;;  %v13035_v55 = vld [vmem:[#allocation35_spill] sm:$0xff] }
 0x3a4   : > { %8366 = vmatprep.mubr.f32.mxu0 %v13014_v1  ;;  %8500 = vmatprep.mubr.f32.mxu1 %v11319_v41  ;;  %v13036_v1 = vld [vmem:[#allocation36_spill] sm:$0xff] }
 0x3a7   : > { %8367 = vmatmul.mubr.f32.gmra.mrb[8].mxu0 %v13015_v58  ;;  %8501 = vmatmul.mubr.f32.gmra.mrb[18].mxu1 %v11332_v16  ;;  %v5733_v58 = vld [vmem:[%s10387_s27 + $0x28] sm:$0xff] }
 0x3a8   : > { %8369 = vmatprep.mubr.f32.mxu0 %v13016_v14  ;;  %8503 = vmatprep.mubr.f32.mxu1 %v11341_v52  ;;  %v5732_v14 = vld [vmem:[%s10387_s27 + $0x20] sm:$0xff] }
 0x3a9   : > { %5770 = vrot.lane.b32.xlu0 %v5733_v58, %s10238_s21  ;;  %v5736_v58 = vld [vmem:[%s10387_s27 + $0x40] sm:$0xff] }
 0x3ab   : > { %8370 = vmatmul.mubr.f32.gmra.mrb[10].mxu0 %v13017_v43  ;;  %8504 = vmatmul.mubr.f32.gmra.mrb[20].mxu1 %v11357_v28  ;;  %v13037_v43 = vld [vmem:[#allocation37_spill] sm:$0xff] }
 0x3ac   : > { %8372 = vmatprep.mubr.f32.mxu0 %v13018_v51  ;;  %8514 = vmatprep.mubr.f32.mxu1 %v13019_v19  ;;  %v13038_v51 = vld [vmem:[#allocation38_spill] sm:$0xff]  ;;  %v13046_v19 = vld [vmem:[#allocation43_spill] sm:$0xff] }
 0x3af   : > { %8373 = vmatmul.mubr.f32.gmra.mrb[12].mxu0 %v13020_v57  ;;  %8515 = vmatmul.mubr.f32.vlgmr.msra.gmra.mrb[6].mxu1 %v11195_v7  ;;  %v5735_v57 = vld [vmem:[%s10387_s27 + $0x38] sm:$0xff]  ;;  %v13049_v7 = vand.u32 4294901760, %v11236_v44 }
 0x3b0   : > { %9369 = vmatpush3.bf16.msra.mxu1 %v13001_v50  ;;  %8375 = vmatprep.mubr.f32.mxu0 %v13021_v53  ;;  %v5734_v53 = vld [vmem:[%s10387_s27 + $0x30] sm:$0xff] }
 0x3b1   : > { %8517 = vmatprep.mubr.f32.mxu1 %v11217_v26  ;;  %9371 = vmatprep.subr.bf16.mxu1 %v13022_v38  ;;  %v5738_v26 = vld [vmem:[%s10387_s27 + $0x50] sm:$0xff] }
 0x3b2   : > { %5774 = vrot.lane.b32.xlu0 %v5735_v57, %s10238_s21  ;;  %v5741_v57 = vld [vmem:[%s10387_s27 + $0x68] sm:$0xff] }
 0x3b3   : > { %8376 = vmatmul.mubr.f32.gmra.mrb[14].mxu0 %v13027_v37  ;;  %8518 = vmatmul.mubr.f32.gmra.mrb[8].mxu1 %v11236_v44  ;;  %v13043_v37 = vand.u32 4294901760, %v11152_v47  ;;  %v13048_v47 = vld [vmem:[#allocation45_spill] sm:$0xff]  ;;  %v13051_v44 = vand.u32 4294901760, %v11255_v46 }
 0x3b4   : > { %8386 = vmatprep.mubr.f32.mxu0 %v13028_v11  ;;  %8520 = vmatprep.mubr.f32.mxu1 %v11242_v61 }
 0x3b5   : > { %9373 = vmatpush3.bf16.msra.mxu1 %v13022_v38 }
 0x3b6   : > { %9375 = vmatprep.subr.bf16.mxu1 %v9374_v34 }
 0x3b7   : > { %8387 = vmatmul.mubr.f32.vlgmr.msra.gmra.mrb[0].mxu0 %v13029_v18  ;;  %8521 = vmatmul.mubr.f32.gmra.mrb[10].mxu1 %v11255_v46  ;;  %v13054_v46 = vand.u32 4294901760, %v11285_v6 }
 0x3b8   : > { %8389 = vmatprep.mubr.f32.mxu0 %v13030_v45  ;;  %8523 = vmatprep.mubr.f32.mxu1 %v11258_v13 }
 0x3b9   : > { %9337 = vmatpush3.bf16.msra.mxu0 %v10913_v10  ;;  %v5729_v10 = vld [vmem:[%s10387_s27 + $0x8] sm:$0xff] }
 0x3ba   : > { %9339 = vmatprep.subr.bf16.mxu0 %v10920_v25  ;;  %5762 = vrot.lane.b32.xlu1 %v5729_v10, %s10238_s21  ;;  %v9378_v10 = vpack.c.bf16 %v13043_v37, %v13042_v15 }
 0x3bb   : > { %8390 = vmatmul.mubr.f32.gmra.mrb[2].mxu0 %v13031_v62  ;;  %8524 = vmatmul.mubr.f32.gmra.mrb[12].mxu1 %v11281_v49 }
 0x3bc   : > { %8392 = vmatprep.mubr.f32.mxu0 %v13032_v31  ;;  %8526 = vmatprep.mubr.f32.mxu1 %v11285_v6  ;;  %v13057_v6 = vand.u32 4294901760, %v11339_v54 }
 0x3bd   : > { %9341 = vmatpush3.bf16.msra.mxu0 %v10920_v25  ;;  %v5730_v25 = vld [vmem:[%s10387_s27 + $0x10] sm:$0xff] }
 0x3be   : > { %5764 = vrot.lane.b32.xlu1 %v5730_v25, %s10238_s21  ;;  %v5737_v25 = vld [vmem:[%s10387_s27 + $0x48] sm:$0xff] }
 0x3bf   : > { %8393 = vmatmul.mubr.f32.gmra.mrb[4].mxu0 %v13033_v32  ;;  %8527 = vmatmul.mubr.f32.gmra.mrb[14].mxu1 %v11312_v59 }
 0x3c0   : > { %8395 = vmatprep.mubr.f32.mxu0 %v13034_v0  ;;  %8529 = vmatprep.mubr.f32.mxu1 %v11317_v33 }
 0x3c1   : > { %5778 = vrot.lane.b32.xlu0 %v5737_v25, %s10238_s21 }
 0x3c2   : > { %5768 = vrot.lane.b32.xlu1 %v5732_v14, %s10238_s21  ;;  %v5739_v14 = vld [vmem:[%s10387_s27 + $0x58] sm:$0xff] }
 0x3c3   : > { %8396 = vmatmul.mubr.f32.gmra.mrb[6].mxu0 %v13035_v55  ;;  %8530 = vmatmul.mubr.f32.gmra.mrb[16].mxu1 %v11330_v30  ;;  %v4494_v30 = vld [vmem:[%s12818_s7 + $0x28] sm:$0xff] }
 0x3c4   : > { %8398 = vmatprep.mubr.f32.mxu0 %v13036_v1  ;;  %8532 = vmatprep.mubr.f32.mxu1 %v11339_v54 }
 0x3c5   : > { %5782 = vrot.lane.b32.xlu0 %v5739_v14, %s10238_s21 }
 0x3c6   : > { %5772 = vrot.lane.b32.xlu1 %v5734_v53, %s10238_s21  ;;  %v13053_v53 = vand.u32 4294901760, %v11281_v49  ;;  %v13056_v49 = vand.u32 4294901760, %v11317_v33  ;;  %v4493_v33 = vld [vmem:[%s12818_s7 + $0x20] sm:$0xff] }
 0x3c7   : > { %8399 = vmatmul.mubr.f32.gmra.mrb[8].mxu0 %v13037_v43  ;;  %8533 = vmatmul.mubr.f32.gmra.mrb[18].mxu1 %v11355_v20 }
 0x3c8   : > { %8401 = vmatprep.mubr.f32.mxu0 %v13038_v51  ;;  %8535 = vmatprep.mubr.f32.mxu1 %v11365_v22 }
 0x3c9   : > { %5786 = vrot.lane.b32.xlu0 %v5741_v57, %s10238_s21 }
 0x3ca   : > { %5776 = vrot.lane.b32.xlu1 %v5736_v58, %s10238_s21 }
 0x3cb   : > { %8402 = vmatmul.mubr.f32.gmra.mrb[10].mxu0 %v13039_v29  ;;  %8536 = vmatmul.mubr.f32.gmra.mrb[20].mxu1 %v11375_v3 }
 0x3cc   : > { %8404 = vmatprep.mubr.f32.mxu0 %v13040_v27  ;;  %8546 = vmatprep.mubr.f32.mxu1 %v13041_v63 }
 0x3ce   : > { %5780 = vrot.lane.b32.xlu1 %v5738_v26, %s10238_s21 }
 0x3cf   : > { %8405 = vmatmul.mubr.f32.gmra.mrb[12].mxu0 %v13044_v24  ;;  %8547 = vmatmul.mubr.f32.vlgmr.msra.gmra.mrb[6].mxu1 %v13045_v21 }
 0x3d0   : > { %9377 = vmatpush3.bf16.msra.mxu1 %v9374_v34  ;;  %8407 = vmatprep.mubr.f32.mxu0 %v13046_v19  ;;  %v13050_v34 = vand.u32 4294901760, %v11242_v61  ;;  %v5740_v61 = vld [vmem:[%s10387_s27 + $0x60] sm:$0xff] }
 0x3d1   : > { %8549 = vmatprep.mubr.f32.mxu1 %v13047_v23  ;;  %9379 = vmatprep.subr.bf16.mxu1 %v9378_v10 }
 0x3d2   : > { %5784 = vrot.lane.b32.xlu1 %v5740_v61, %s10238_s21 }
 0x3d3   : > { %8408 = vmatmul.mubr.f32.gmra.mrb[14].mxu0 %v13048_v47  ;;  %8550 = vmatmul.mubr.f32.gmra.mrb[8].mxu1 %v13049_v7 }
 0x3d4   : > { %8418 = vmatprep.mubr.f32.mxu0 %v13028_v11  ;;  %8552 = vmatprep.mubr.f32.mxu1 %v13050_v34  ;;  %v13052_v11 = vand.u32 4294901760, %v11258_v13  ;;  %v5742_v13 = vld [vmem:[%s10387_s27 + $0x70] sm:$0xff] }
 0x3d5   : > { %9381 = vmatpush3.bf16.msra.mxu1 %v9378_v10 }
 0x3d6   : > { %9383 = vmatprep.subr.bf16.mxu1 %v13001_v50  ;;  %5788 = vrot.lane.b32.xlu1 %v5742_v13, %s10238_s21 }
 0x3d7   : > { %8419 = vmatmul.mubr.f32.vlgmr.msra.gmra.mrb[0].mxu0 %v13029_v18  ;;  %8553 = vmatmul.mubr.f32.gmra.mrb[10].mxu1 %v13051_v44  ;;  %v5743_v18 = vld [vmem:[%s10387_s27 + $0x78] sm:$0xff] }
 0x3d8   : > { %8421 = vmatprep.mubr.f32.mxu0 %v13030_v45  ;;  %8555 = vmatprep.mubr.f32.mxu1 %v13052_v11  ;;  %v13055_v45 = vand.u32 4294901760, %v11312_v59  ;;  %v13058_v59 = vand.u32 4294901760, %v11375_v3  ;;  %v4496_v3 = vld [vmem:[%s12818_s7 + $0x38] sm:$0xff] }
 0x3d9   : > { %5790 = vrot.lane.b32.xlu0 %v5743_v18, %s10238_s21 }
 0x3db   : > { %8422 = vmatmul.mubr.f32.gmra.mrb[2].mxu0 %v13031_v62  ;;  %8556 = vmatmul.mubr.f32.gmra.mrb[12].mxu1 %v13053_v53 }
 0x3dc   : > { %8424 = vmatprep.mubr.f32.mxu0 %v13032_v31  ;;  %8558 = vmatprep.mubr.f32.mxu1 %v13054_v46 }
 0x3df   : > { %8425 = vmatmul.mubr.f32.gmra.mrb[4].mxu0 %v13033_v32  ;;  %8559 = vmatmul.mubr.f32.gmra.mrb[14].mxu1 %v13055_v45 }
 0x3e0   : > { %8427 = vmatprep.mubr.f32.mxu0 %v13034_v0  ;;  %8561 = vmatprep.mubr.f32.mxu1 %v13056_v49 }
 0x3e3   : > { %8428 = vmatmul.mubr.f32.gmra.mrb[6].mxu0 %v13035_v55  ;;  %8562 = vmatmul.mubr.f32.gmra.mrb[16].mxu1 %v3524_v36  ;;  %v4562_v36 = vand.u32 4294901760, %v4494_v30 }
 0x3e4   : > { %8430 = vmatprep.mubr.f32.mxu0 %v13036_v1  ;;  %8564 = vmatprep.mubr.f32.mxu1 %v13057_v6 }
 0x3e5   : > { %v11708_v21 = vsub.f32 %v4494_v30, %v4562_v36 }
 0x3e7   : > { %8431 = vmatmul.mubr.f32.gmra.mrb[8].mxu0 %v13037_v43  ;;  %8565 = vmatmul.mubr.f32.gmra.mrb[18].mxu1 %v3544_v9  ;;  %v4495_v9 = vld [vmem:[%s12818_s7 + $0x30] sm:$0xff]  ;;  %v12915_v23 = vand.u32 4294901760, %v11708_v21 }
 0x3e8   : > { %8433 = vmatprep.mubr.f32.mxu0 %v13038_v51  ;;  %8567 = vmatprep.mubr.f32.mxu1 %v3554_v39  ;;  %v4565_v39 = vand.u32 4294901760, %v4495_v9 }
 0x3e9   : > { %v4818_v14 = vsub.f32 %v11708_v21, %v12915_v23 }
 0x3ea   : > { %v11720_v34 = vsub.f32 %v4495_v9, %v4565_v39 }
 0x3eb   : > { %8434 = vmatmul.mubr.f32.gmra.mrb[10].mxu0 %v13039_v29  ;;  %8568 = vmatmul.mubr.f32.gmra.mrb[20].mxu1 %v13058_v59  ;;  %v4819_v57 = vand.u32 4294901760, %v4818_v14 }
 0x3ec   : > { %8436 = vmatprep.mubr.f32.mxu0 %v13040_v27  ;;  %8578 = vmatprep.mubr.f32.mxu1 %v11148_v56  ;;  %v12914_v11 = vand.u32 4294901760, %v11720_v34 }
 0x3ee   : > { %v4825_v18 = vsub.f32 %v11720_v34, %v12914_v11 }
 0x3ef   : > { %8437 = vmatmul.mubr.f32.gmra.mrb[12].mxu0 %v13044_v24  ;;  %8579 = vmatmul.mubr.f32.vlgmr.msra.gmra.mrb[6].mxu1 %v11163_v4 }
 0x3f0   : > { %9385 = vmatpush3.bf16.msra.mxu1 %v13001_v50  ;;  %8439 = vmatprep.mubr.f32.mxu0 %v13046_v19  ;;  %v4568_v50 = vand.u32 4294901760, %v4496_v3  ;;  %v4826_v13 = vand.u32 4294901760, %v4825_v18 }
 0x3f1   : > { %8581 = vmatprep.mubr.f32.mxu1 %v11183_v48  ;;  %9387 = vmatprep.subr.bf16.mxu1 %v13022_v38 }
 0x3f2   : > { %v11722_v26 = vsub.f32 %v4496_v3, %v4568_v50 }
 0x3f3   : > { %8440 = vmatmul.mubr.f32.gmra.mrb[14].mxu0 %v13048_v47  ;;  %8582 = vmatmul.mubr.f32.gmra.mrb[8].mxu1 %v11197_v35 }
 0x3f4   : > { %8584 = vmatprep.mubr.f32.mxu1 %v11211_v40  ;;  %9389 = vmatpush3.bf16.msra.mxu1 %v13022_v38  ;;  %v12913_v61 = vand.u32 4294901760, %v11722_v26 }
 0x3f6   : > { %v4832_v46 = vsub.f32 %v11722_v26, %v12913_v61 }
 0x3f7   : > { %8585 = vmatmul.mubr.f32.gmra.mrb[10].mxu1 %v11227_v8 }
 0x3f8   : > { %8587 = vmatprep.mubr.f32.mxu1 %v13008_v42  ;;  %v4833_v45 = vand.u32 4294901760, %v4832_v46 }
 0x3fa   : > { %v11734_v49 = vpack.c.bf16 %v4833_v45, %v4826_v13 }
 0x3fb   : > { %8588 = vmatmul.mubr.f32.gmra.mrb[12].mxu1 %v11260_v5 }
 0x3fc   : > { %8590 = vmatprep.mubr.f32.mxu1 %v11267_v17 }
 0x3ff   : > { %8591 = vmatmul.mubr.f32.gmra.mrb[14].mxu1 %v11287_v12 }
 0x400   : > { %8593 = vmatprep.mubr.f32.mxu1 %v11292_v2 }
 0x403   : > { %8594 = vmatmul.mubr.f32.gmra.mrb[16].mxu1 %v11314_v60 }
 0x404   : > { %8596 = vmatprep.mubr.f32.mxu1 %v11319_v41 }
 0x407   : > { %8597 = vmatmul.mubr.f32.gmra.mrb[18].mxu1 %v11332_v16 }
 0x408   : > { %8599 = vmatprep.mubr.f32.mxu1 %v11341_v52 }
 0x40b   : > { %8600 = vmatmul.mubr.f32.gmra.mrb[20].mxu1 %v11357_v28 }
 0x40c   : > { %8610 = vmatprep.mubr.f32.mxu1 %v11148_v56 }
 0x40f   : > { %8611 = vmatmul.mubr.f32.vlgmr.msra.gmra.mrb[6].mxu1 %v11163_v4 }
 0x410   : > { %8613 = vmatprep.mubr.f32.mxu1 %v11183_v48 }
 0x413   : > { %8614 = vmatmul.mubr.f32.gmra.mrb[8].mxu1 %v11197_v35  ;;  %v4490_v35 = vld [vmem:[%s12818_s7 + $0x8] sm:$0xff] }
 0x414   : > { %8616 = vmatprep.mubr.f32.mxu1 %v11211_v40 }
 0x417   : > { %8617 = vmatmul.mubr.f32.gmra.mrb[10].mxu1 %v11227_v8 }
 0x418   : > { %8619 = vmatprep.mubr.f32.mxu1 %v13008_v42  ;;  %v11675_v42 = vpack.c.bf16 %v4568_v50, %v4565_v39 }
 0x41b   : > { %8620 = vmatmul.mubr.f32.gmra.mrb[12].mxu1 %v11260_v5 }
 0x41c   : > { %8622 = vmatprep.mubr.f32.mxu1 %v11267_v17  ;;  %v4491_v17 = vld [vmem:[%s12818_s7 + $0x10] sm:$0xff] }
 0x41f   : > { %8623 = vmatmul.mubr.f32.gmra.mrb[14].mxu1 %v11287_v12  ;;  %v4550_v12 = vand.u32 4294901760, %v4490_v35 }
 0x420   : > { %8625 = vmatprep.mubr.f32.mxu1 %v11292_v2  ;;  %v4489_v2 = vld [vmem:[%s12818_s7] sm:$0xff] }
 0x421   : > { %v4547_v40 = vand.u32 4294901760, %v4489_v2  ;;  %v11681_v62 = vsub.f32 %v4490_v35, %v4550_v12  ;;  %v11750_v35 = vpack.c.bf16 %v11722_v26, %v11720_v34 }
 0x423   : > { %8626 = vmatmul.mubr.f32.gmra.mrb[16].mxu1 %v11314_v60  ;;  %v4553_v60 = vand.u32 4294901760, %v4491_v17  ;;  %v11657_v54 = vpack.c.bf16 %v4550_v12, %v4547_v40  ;;  %v11679_v38 = vsub.f32 %v4489_v2, %v4547_v40  ;;  %v12919_v32 = vand.u32 4294901760, %v11681_v62 }
 0x424   : > { %8628 = vmatprep.mubr.f32.mxu1 %v11319_v41  ;;  %v4492_v41 = vld [vmem:[%s12818_s7 + $0x18] sm:$0xff] }
 0x425   : > { %9391 = vmatprep.subr.bf16.mxu0 %v11657_v54  ;;  %v12920_v31 = vand.u32 4294901760, %v11679_v38  ;;  %v4790_v55 = vsub.f32 %v11681_v62, %v12919_v32  ;;  %v11693_v29 = vsub.f32 %v4491_v17, %v4553_v60  ;;  %v11738_v6 = vpack.c.bf16 %v11681_v62, %v11679_v38 }
 0x426   : > { %9393 = vmatpush3.bf16.msra.mxu0 %v11657_v54 }
 0x427   : > { %8629 = vmatmul.mubr.f32.gmra.mrb[18].mxu1 %v11332_v16  ;;  %v4556_v16 = vand.u32 4294901760, %v4492_v41  ;;  %v4783_v0 = vsub.f32 %v11679_v38, %v12920_v31  ;;  %v4791_v43 = vand.u32 4294901760, %v4790_v55  ;;  %v12918_v63 = vand.u32 4294901760, %v11693_v29 }
 0x428   : > { %8631 = vmatprep.mubr.f32.mxu1 %v11341_v52  ;;  %v4559_v52 = vand.u32 4294901760, %v4493_v33 }
 0x429   : > { %v4784_v1 = vand.u32 4294901760, %v4783_v0  ;;  %v11695_v27 = vsub.f32 %v4492_v41, %v4556_v16  ;;  %v4797_v37 = vsub.f32 %v11693_v29, %v12918_v63 }
 0x42a   : > { %v11664_v22 = vpack.c.bf16 %v4562_v36, %v4559_v52  ;;  %v11706_v24 = vsub.f32 %v4493_v33, %v4559_v52 }
 0x42b   : > { %8632 = vmatmul.mubr.f32.gmra.mrb[20].mxu1 %v11357_v28  ;;  %v11659_v28 = vpack.c.bf16 %v4556_v16, %v4553_v60  ;;  %v11691_v51 = vpack.c.bf16 %v4791_v43, %v4784_v1  ;;  %v12917_v15 = vand.u32 4294901760, %v11695_v27  ;;  %v4798_v25 = vand.u32 4294901760, %v4797_v37 }
 0x42c   : > { %v12916_v19 = vand.u32 4294901760, %v11706_v24  ;;  %v11742_v59 = vpack.c.bf16 %v11695_v27, %v11693_v29  ;;  %v11746_v2 = vpack.c.bf16 %v11708_v21, %v11706_v24 }
 0x42d   : > { %9395 = vmatprep.subr.bf16.mxu0 %v11659_v28  ;;  %v4804_v10 = vsub.f32 %v11695_v27, %v12917_v15 }
 0x42e   : > { %v11627_v56 = vpop.f32.mrb[0].mxu1  ;;  %9397 = vmatpush3.bf16.msra.mxu0 %v11659_v28  ;;  %v4811_v7 = vsub.f32 %v11706_v24, %v12916_v19 }
 0x42f   : > { %v11629_v20 = vpop.f32.mrb[1].mxu1  ;;  %9399 = vmatprep.subr.bf16.mxu0 %v11664_v22  ;;  %v4805_v58 = vand.u32 4294901760, %v4804_v10 }
 0x430   : > { %v4812_v44 = vand.u32 4294901760, %v4811_v7 }
 0x431   : > { %v11712_v47 = vpack.c.bf16 %v4805_v58, %v4798_v25  ;;  %v11776_v58 = vpop.permute.xlu0 %5760 }
 0x432   : > { %9401 = vmatpush3.bf16.msra.mxu0 %v11664_v22  ;;  %v11726_v53 = vpack.c.bf16 %v4819_v57, %v4812_v44  ;;  %13059 = vst [vmem:[#allocation25_spill] sm:$0xff] %v11776_v58 }
 0x433   : > { %9403 = vmatprep.subr.bf16.mxu0 %v11675_v42 }
 0x435   : > { %v11780_v7 = vpop.permute.xlu0 %5766 }
 0x436   : > { %v11631_v5 = vpop.f32.mrb[2].mxu1  ;;  %9405 = vmatpush3.bf16.msra.mxu0 %v11675_v42  ;;  %13060 = vst [vmem:[#allocation23_spill] sm:$0xff] %v11780_v7 }
 0x437   : > { %v11633_v8 = vpop.f32.mrb[3].mxu1  ;;  %9407 = vmatprep.subr.bf16.mxu0 %v11691_v51 }
 0x439   : > { %v11784_v14 = vpop.permute.xlu0 %5770 }
 0x43a   : > { %13062 = vst [vmem:[#allocation46_spill] sm:$0xff] %v11784_v14 }
 0x43e   : > { %v11635_v4 = vpop.f32.mrb[4].mxu1 }
 0x43f   : > { %v11637_v48 = vpop.f32.mrb[5].mxu1 }
 0x4aa   : > { %v8420_v17 = vpop.f32.mrb[0].mxu0 }
 0x4ab   : > { %v3165_v40 = vpop.f32.mrb[1].mxu0 }
 0x4ae   : > { %v8423_v12 = vpop.f32.mrb[2].mxu0 }
 0x4af   : > { %v3177_v41 = vpop.f32.mrb[3].mxu0 }
 0x4b2   : > { %v8426_v60 = vpop.f32.mrb[4].mxu0 }
 0x4b3   : > { %v3189_v33 = vpop.f32.mrb[5].mxu0 }
 0x4b6   : > { %v8429_v30 = vpop.f32.mrb[6].mxu0 }
 0x4b7   : > { %v11752_v16 = vpop.f32.mrb[7].mxu0 }
 0x4ba   : > { %v11754_v52 = vpop.f32.mrb[8].mxu0 }
 0x4bb   : > { %v11756_v36 = vpop.f32.mrb[9].mxu0 }
 0x4be   : > { %v8435_v9 = vpop.f32.mrb[10].mxu0 }
 0x4bf   : > { %v11759_v3 = vadd.f32 %v8435_v9, %v11627_v56  ;;  %v3225_v39 = vpop.f32.mrb[11].mxu0  ;;  %v11800_v9 = vpop.permute.xlu0 %5774 }
 0x4c0   : > { %v11762_v50 = vadd.f32 %v3225_v39, %v11629_v20  ;;  %v11778_v20 = vpop.permute.xlu1 %5762  ;;  %13065 = vst [vmem:[#allocation26_spill] sm:$0xff] %v11800_v9 }
 0x4c2   : > { %v8438_v0 = vpop.f32.mrb[12].mxu0 }
 0x4c3   : > { %v11765_v55 = vadd.f32 %v8438_v0, %v11631_v5  ;;  %v3237_v1 = vpop.f32.mrb[13].mxu0  ;;  %v11836_v15 = vpop.permute.xlu0 %5778 }
 0x4c4   : > { %v11768_v43 = vadd.f32 %v3237_v1, %v11633_v8  ;;  %v11782_v5 = vpop.permute.xlu1 %5764  ;;  %13070 = vst [vmem:[#allocation31_spill] sm:$0xff] %v11836_v15 }
 0x4c5   : > { %13061 = vst [vmem:[#allocation24_spill] sm:$0xff] %v11782_v5 }
 0x4c6   : > { %v8441_v37 = vpop.f32.mrb[14].mxu0 }
 0x4c7   : > { %v11771_v10 = vadd.f32 %v8441_v37, %v11635_v4  ;;  %v3249_v25 = vpop.f32.mrb[15].mxu0 }
 0x4c8   : > { %v11774_v56 = vadd.f32 %v3249_v25, %v11637_v48  ;;  %v11793_v18 = vpop.permute.xlu1 %5768 }
 0x4c9   : > { %13063 = vst [vmem:[#allocation44_spill] sm:$0xff] %v11793_v18 }
 0x4e2   : > { %v11786_v8 = vpop.f32.mrb[6].mxu1 }
 0x4e3   : > { %v4474_v4 = vmul.f32 %v11786_v8, %v8420_v17  ;;  %v11789_v44 = vpop.f32.mrb[7].mxu1 }
 0x4e4   : > { %v4473_v48 = vmul.f32 %v11789_v44, %v3165_v40 }
 0x4e5   : > { %v4502_v57 = vsel %vm4497_vm10, %v4474_v4, 0 }
 0x4e6   : > { %v11795_v46 = vand.u32 4294901760, %v4502_v57  ;;  %v4499_v13 = vsel %vm4497_vm10, %v4473_v48, 0  ;;  %v11798_v45 = vpop.f32.mrb[8].mxu1 }
 0x4e7   : > { %13064 = vst [vmem:[#allocation41_spill] sm:$0xff] %v11798_v45  ;;  %v11802_v39 = vand.u32 4294901760, %v4499_v13  ;;  %v4476_v17 = vmul.f32 %v11798_v45, %v8423_v12  ;;  %v11805_v0 = vpop.f32.mrb[9].mxu1 }
 0x4e8   : > { %13066 = vst [vmem:[#allocation27_spill] sm:$0xff] %v11805_v0  ;;  %v11808_v40 = vsub.f32 %v4502_v57, %v11795_v46  ;;  %v4475_v1 = vmul.f32 %v11805_v0, %v3177_v41  ;;  %v11826_v41 = vpop.permute.xlu1 %5772 }
 0x4e9   : > { %v11812_v37 = vsub.f32 %v4499_v13, %v11802_v39  ;;  %v4508_v25 = vsel %vm4497_vm10, %v4476_v17, 0  ;;  %13069 = vst [vmem:[#allocation30_spill] sm:$0xff] %v11826_v41 }
 0x4ea   : > { %v12921_v4 = vand.u32 4294901760, %v11808_v40  ;;  %v11816_v48 = vand.u32 4294901760, %v4508_v25  ;;  %v4505_v61 = vsel %vm4497_vm10, %v4475_v1, 0  ;;  %v11819_v11 = vpop.f32.mrb[10].mxu1 }
 0x4eb   : > { %13067 = vst [vmem:[#allocation28_spill] sm:$0xff] %v11819_v11  ;;  %v11821_v12 = vand.u32 4294901760, %v4505_v61  ;;  %v4478_v57 = vmul.f32 %v11819_v11, %v8426_v60  ;;  %v11824_v23 = vpop.f32.mrb[11].mxu1  ;;  %v12922_v13 = vand.u32 4294901760, %v11812_v37 }
 0x4ec   : > { %13068 = vst [vmem:[#allocation29_spill] sm:$0xff] %v11824_v23  ;;  %v4632_v17 = vsub.f32 %v11808_v40, %v12921_v4  ;;  %v11833_v19 = vsub.f32 %v4508_v25, %v11816_v48  ;;  %v4477_v1 = vmul.f32 %v11824_v23, %v3189_v33  ;;  %v5777_v11 = vpop.permute.xlu1 %5776 }
 0x4ed   : > { %v11839_v63 = vsub.f32 %v4505_v61, %v11821_v12  ;;  %v4514_v60 = vsel %vm4497_vm10, %v4478_v57, 0  ;;  %v4622_v32 = vsub.f32 %v11812_v37, %v12922_v13 }
 0x4ee   : > { %v11845_v31 = vand.u32 4294901760, %v4514_v60  ;;  %v4511_v4 = vsel %vm4497_vm10, %v4477_v1, 0  ;;  %v11848_v41 = vpop.f32.mrb[12].mxu1  ;;  %v4633_v57 = vand.u32 4294901760, %v4632_v17 }
 0x4ef   : > { %13071 = vst [vmem:[#allocation32_spill] sm:$0xff] %v11848_v41  ;;  %v11851_v33 = vand.u32 4294901760, %v4511_v4  ;;  %v4480_v15 = vmul.f32 %v11848_v41, %v8429_v30  ;;  %v11854_v61 = vpop.f32.mrb[13].mxu1  ;;  %v4623_v9 = vand.u32 4294901760, %v4622_v32  ;;  %v12927_v1 = vand.u32 4294901760, %v11839_v63 }
 0x4f0   : > { %13072 = vst [vmem:[#allocation33_spill] sm:$0xff] %v11854_v61  ;;  %v11857_v18 = vsub.f32 %v4514_v60, %v11845_v31  ;;  %v4479_v13 = vmul.f32 %v11854_v61, %v11752_v16  ;;  %v13073_v30 = vand.u32 4294901760, %v11833_v19 }
 0x4f1   : > { %v11863_v23 = vsub.f32 %v4511_v4, %v11851_v33  ;;  %v4520_v25 = vsel %vm4497_vm10, %v4480_v15, 0  ;;  %8650 = vmatprep.mubr.f32.mxu0 %v4623_v9  ;;  %v4642_v16 = vsub.f32 %v11839_v63, %v12927_v1  ;;  %v11877_v4 = vpop.permute.xlu0 %5782 }
 0x4f2   : > { %v4652_v32 = vsub.f32 %v11833_v19, %v13073_v30  ;;  %v11869_v17 = vand.u32 4294901760, %v4520_v25  ;;  %v4517_v60 = vsel %vm4497_vm10, %v4479_v13, 0  ;;  %v11872_v41 = vpop.f32.mrb[14].mxu1  ;;  %8651 = vmatmul.mubr.f32.vlgmr.msra.gmra.mrb[16].mxu0 %v4633_v57  ;;  %13075 = vst [vmem:[#allocation35_spill] sm:$0xff] %v11877_v4 }
 0x4f3   : > { %13074 = vst [vmem:[#allocation34_spill] sm:$0xff] %v11872_v41  ;;  %v11880_v9 = vand.u32 4294901760, %v4517_v60  ;;  %v4482_v30 = vmul.f32 %v11872_v41, %v11754_v52  ;;  %9409 = vmatpush3.bf16.msra.mxu0 %v11691_v51  ;;  %v4427_v61 = vpop.f32.mrb[15].mxu1  ;;  %v4643_v1 = vand.u32 4294901760, %v4642_v16  ;;  %v12930_v52 = vand.u32 4294901760, %v11863_v23 }
 0x4f4   : > { %v4653_v13 = vand.u32 4294901760, %v4652_v32  ;;  %v11886_v14 = vsub.f32 %v4520_v25, %v11869_v17  ;;  %v4481_v57 = vmul.f32 %v4427_v61, %v11756_v36  ;;  %v11889_v5 = vmul.f32 %v5777_v11, %v4427_v61  ;;  %9411 = vmatprep.subr.bf16.mxu0 %v11712_v47 }
 0x4f5   : > { %v11893_v15 = vsub.f32 %v4517_v60, %v11880_v9  ;;  %v4526_v4 = vsel %vm4497_vm10, %v4482_v30, 0  ;;  %v13077_v51 = vand.u32 4294901760, %v11857_v18  ;;  %8653 = vmatprep.mubr.f32.mxu0 %v4643_v1  ;;  %v5787_v61 = vpop.permute.xlu0 %5786 }
 0x4f6   : > { %13076 = vst [vmem:[#allocation36_spill] sm:$0xff] %v11889_v5  ;;  %v11900_v25 = vand.u32 4294901760, %v4526_v4  ;;  %v4523_v36 = vsel %vm4497_vm10, %v4481_v57, 0  ;;  %v11903_v11 = vpop.f32.mrb[16].mxu1  ;;  %8654 = vmatmul.mubr.f32.gmra.mrb[18].mxu0 %v4653_v13 }
 0x4f7   : > { %v4672_v32 = vsub.f32 %v11857_v18, %v13077_v51  ;;  %13078 = vst [vmem:[#allocation37_spill] sm:$0xff] %v11903_v11  ;;  %v11906_v16 = vand.u32 4294901760, %v4523_v36  ;;  %v4484_v60 = vmul.f32 %v11759_v3, %v11903_v11  ;;  %v11910_v30 = vpop.f32.mrb[17].mxu1  ;;  %v4662_v51 = vsub.f32 %v11863_v23, %v12930_v52  ;;  %9413 = vmatpush3.bf16.msra.mxu0 %v11712_v47 }
 0x4f8   : > { %13079 = vst [vmem:[#allocation38_spill] sm:$0xff] %v11910_v30  ;;  %v11916_v5 = vsub.f32 %v4526_v4, %v11900_v25  ;;  %v4483_v1 = vmul.f32 %v11762_v50, %v11910_v30  ;;  %9415 = vmatprep.subr.bf16.mxu0 %v11726_v53  ;;  %v13080_v50 = vand.u32 4294901760, %v11886_v14  ;;  %v13083_v30 = vand.u32 4294901760, %v11893_v15 }
 0x4f9   : > { %v4673_v57 = vand.u32 4294901760, %v4672_v32  ;;  %v11922_v41 = vsub.f32 %v4523_v36, %v11906_v16  ;;  %v4532_v3 = vsel %vm4497_vm10, %v4484_v60, 0  ;;  %v4663_v13 = vand.u32 4294901760, %v4662_v51 }
 0x4fa   : > { %v11927_v52 = vand.u32 4294901760, %v4532_v3  ;;  %v4529_v4 = vsel %vm4497_vm10, %v4483_v1, 0  ;;  %v8630_v0 = vpop.f32.mrb[18].mxu1  ;;  %v4692_v47 = vsub.f32 %v11886_v14, %v13080_v50  ;;  %v4682_v1 = vsub.f32 %v11893_v15, %v13083_v30 }
 0x4fb   : > { %v11934_v36 = vand.u32 4294901760, %v4529_v4  ;;  %8656 = vmatprep.mubr.f32.mxu0 %v4663_v13  ;;  %v4486_v60 = vmul.f32 %v11765_v55, %v8630_v0  ;;  %v11937_v51 = vmul.f32 %v8630_v0, %v5787_v61  ;;  %v11939_v11 = vpop.f32.mrb[19].mxu1  ;;  %v12936_v61 = vand.u32 4294901760, %v11922_v41  ;;  %9417 = vmatpush3.bf16.msra.mxu0 %v11726_v53 }
 0x4fc   : > { %13082 = vst [vmem:[#allocation40_spill] sm:$0xff] %v11939_v11  ;;  %v11945_v45 = vsub.f32 %v4532_v3, %v11927_v52  ;;  %8657 = vmatmul.mubr.f32.gmra.mrb[20].mxu0 %v4673_v57  ;;  %v4485_v50 = vmul.f32 %v11768_v43, %v11939_v11  ;;  %v4693_v32 = vand.u32 4294901760, %v4692_v47  ;;  %v4683_v0 = vand.u32 4294901760, %v4682_v1  ;;  %9419 = vmatprep.subr.bf16.mxu0 %v11734_v49 }
 0x4fd   : > { %13081 = vst [vmem:[#allocation39_spill] sm:$0xff] %v11937_v51  ;;  %v11950_v13 = vsub.f32 %v4529_v4, %v11934_v36  ;;  %v4538_v55 = vsel %vm4497_vm10, %v4486_v60, 0  ;;  %v13085_v57 = vand.u32 4294901760, %v11916_v5  ;;  %v4702_v1 = vsub.f32 %v11922_v41, %v12936_v61 }
 0x4fe   : > { %v11955_v51 = vand.u32 4294901760, %v4538_v55  ;;  %v4535_v30 = vsel %vm4497_vm10, %v4485_v50, 0  ;;  %v11958_v3 = vpop.f32.mrb[20].mxu1  ;;  %8659 = vmatprep.mubr.f32.mxu0 %v4683_v0 }
 0x4ff   : > { %13084 = vst [vmem:[#allocation42_spill] sm:$0xff] %v11958_v3  ;;  %v4712_v43 = vsub.f32 %v11916_v5, %v13085_v57  ;;  %v11965_v47 = vand.u32 4294901760, %v4535_v30  ;;  %v4488_v53 = vmul.f32 %v11771_v10, %v11958_v3  ;;  %v11969_v60 = vpop.f32.mrb[21].mxu1  ;;  %v4703_v10 = vand.u32 4294901760, %v4702_v1  ;;  %9421 = vmatpush3.bf16.msra.mxu0 %v11734_v49 }
 0x500   : > { %13086 = vst [vmem:[#allocation43_spill] sm:$0xff] %v11969_v60  ;;  %v11975_v50 = vsub.f32 %v4538_v55, %v11955_v51  ;;  %8660 = vmatmul.mubr.f32.gmra.mrb[22].mxu0 %v4693_v32  ;;  %v4487_v57 = vmul.f32 %v11774_v56, %v11969_v60  ;;  %v12938_v3 = vand.u32 4294901760, %v11950_v13  ;;  %v13087_v32 = vand.u32 4294901760, %v11945_v45  ;;  %9423 = vmatprep.subr.bf16.mxu0 %v11738_v6 }
 0x501   : > { %v4713_v4 = vand.u32 4294901760, %v4712_v43  ;;  %v11980_v11 = vsub.f32 %v4535_v30, %v11965_v47  ;;  %v4544_v0 = vsel %vm4497_vm10, %v4488_v53, 0  ;;  %8662 = vmatprep.mubr.f32.mxu0 %v4703_v10 }
 0x502   : > { %v11985_v7 = vand.u32 4294901760, %v4544_v0  ;;  %v4541_v55 = vsel %vm4497_vm10, %v4487_v57, 0  ;;  %v4732_v61 = vsub.f32 %v11945_v45, %v13087_v32  ;;  %v4722_v43 = vsub.f32 %v11950_v13, %v12938_v3 }
 0x503   : > { %v11993_v30 = vand.u32 4294901760, %v4541_v55  ;;  %v4741_v49 = vand.u32 4294901760, %v11980_v11  ;;  %v13088_v10 = vand.u32 4294901760, %v11975_v50 }
 0x504   : > { %v12000_v53 = vsub.f32 %v4544_v0, %v11985_v7  ;;  %8663 = vmatmul.mubr.f32.gmra.mrb[24].mxu0 %v4713_v4  ;;  %v4723_v57 = vand.u32 4294901760, %v4722_v43  ;;  %v4733_v56 = vand.u32 4294901760, %v4732_v61 }
 0x505   : > { %v12003_v1 = vsub.f32 %v4541_v55, %v11993_v30  ;;  %v4742_v32 = vsub.f32 %v11980_v11, %v4741_v49  ;;  %v4752_v60 = vsub.f32 %v11975_v50, %v13088_v10 }
 0x506   : > { %v4771_v3 = vand.u32 4294901760, %v12000_v53  ;;  %8665 = vmatprep.mubr.f32.mxu0 %v4723_v57  ;;  %v13096_v57 = vand.u32 4294901760, %v11706_v24  ;;  %v13103_v24 = vand.u32 4294901760, %v11893_v15 }
 0x507   : > { %v4743_v58 = vand.u32 4294901760, %v4742_v32  ;;  %v4761_v0 = vand.u32 4294901760, %v12003_v1  ;;  %v4753_v55 = vand.u32 4294901760, %v4752_v60  ;;  %v13094_v60 = vand.u32 4294901760, %v11808_v40 }
 0x508   : > { %8666 = vmatmul.mubr.f32.gmra.mrb[26].mxu0 %v4733_v56  ;;  %v4772_v61 = vsub.f32 %v12000_v53, %v4771_v3  ;;  %v13095_v56 = vand.u32 4294901760, %v11839_v63  ;;  %v13097_v32 = vand.u32 4294901760, %v11708_v21  ;;  %v13104_v21 = vand.u32 4294901760, %v11886_v14 }
 0x509   : > { %8668 = vmatprep.mubr.f32.mxu0 %v4743_v58  ;;  %v4762_v4 = vsub.f32 %v12003_v1, %v4761_v0 }
 0x50a   : > { %v4773_v10 = vand.u32 4294901760, %v4772_v61 }
 0x50b   : > { %v4763_v43 = vand.u32 4294901760, %v4762_v4  ;;  %v9462_v4 = vpack.c.bf16 %v13097_v32, %v13096_v57 }
 0x50c   : > { %8669 = vmatmul.mubr.f32.gmra.mrb[28].mxu0 %v4753_v55  ;;  %v13102_v55 = vand.u32 4294901760, %v11857_v18 }
 0x50d   : > { %8671 = vmatprep.mubr.f32.mxu0 %v4763_v43 }
 0x510   : > { %8672 = vmatmul.mubr.f32.gmra.mrb[30].mxu0 %v4773_v10 }
 0x511   : > { %8690 = vmatprep.mubr.f32.mxu0 %v11802_v39 }
 0x514   : > { %8691 = vmatmul.mubr.f32.vlgmr.msra.gmra.mrb[16].mxu0 %v11795_v46 }
 0x515   : > { %9425 = vmatpush3.bf16.msra.mxu0 %v11738_v6  ;;  %8693 = vmatprep.mubr.f32.mxu0 %v11821_v12  ;;  %v13089_v6 = vand.u32 4294901760, %v11679_v38  ;;  %v13091_v38 = vand.u32 4294901760, %v11812_v37 }
 0x516   : > { %9427 = vmatprep.subr.bf16.mxu0 %v11742_v59 }
 0x518   : > { %8694 = vmatmul.mubr.f32.gmra.mrb[18].mxu0 %v11816_v48 }
 0x519   : > { %8696 = vmatprep.mubr.f32.mxu0 %v11851_v33  ;;  %9429 = vmatpush3.bf16.msra.mxu0 %v11742_v59  ;;  %v13090_v59 = vand.u32 4294901760, %v11681_v62  ;;  %v13092_v62 = vand.u32 4294901760, %v11693_v29  ;;  %v13099_v29 = vand.u32 4294901760, %v11863_v23 }
 0x51a   : > { %9431 = vmatprep.subr.bf16.mxu0 %v11746_v2 }
 0x51c   : > { %8697 = vmatmul.mubr.f32.gmra.mrb[20].mxu0 %v11845_v31 }
 0x51d   : > { %8699 = vmatprep.mubr.f32.mxu0 %v11880_v9  ;;  %9433 = vmatpush3.bf16.msra.mxu0 %v11746_v2  ;;  %v9454_v2 = vpack.c.bf16 %v13090_v59, %v13089_v6 }
 0x51e   : > { %9435 = vmatprep.subr.bf16.mxu0 %v11750_v35 }
 0x520   : > { %8700 = vmatmul.mubr.f32.gmra.mrb[22].mxu0 %v11869_v17 }
 0x521   : > { %8702 = vmatprep.mubr.f32.mxu0 %v11906_v16  ;;  %9437 = vmatpush3.bf16.msra.mxu0 %v11750_v35  ;;  %v13093_v35 = vand.u32 4294901760, %v11695_v27  ;;  %v13100_v27 = vand.u32 4294901760, %v11720_v34  ;;  %v13107_v34 = vand.u32 4294901760, %v11950_v13 }
 0x522   : > { %9439 = vmatprep.subr.bf16.mxu0 %v11657_v54 }
 0x523   : > { %v9458_v58 = vpack.c.bf16 %v13093_v35, %v13092_v62 }
 0x524   : > { %8703 = vmatmul.mubr.f32.gmra.mrb[24].mxu0 %v11900_v25 }
 0x525   : > { %8705 = vmatprep.mubr.f32.mxu0 %v11934_v36 }
 0x528   : > { %8706 = vmatmul.mubr.f32.gmra.mrb[26].mxu0 %v11927_v52 }
 0x529   : > { %8708 = vmatprep.mubr.f32.mxu0 %v11965_v47 }
 0x52c   : > { %8709 = vmatmul.mubr.f32.gmra.mrb[28].mxu0 %v11955_v51 }
 0x52d   : > { %8711 = vmatprep.mubr.f32.mxu0 %v11993_v30 }
 0x530   : > { %8712 = vmatmul.mubr.f32.gmra.mrb[30].mxu0 %v11985_v7 }
 0x531   : > { %8730 = vmatprep.mubr.f32.mxu0 %v11812_v37  ;;  %v13098_v37 = vand.u32 4294901760, %v11833_v19 }
 0x534   : > { %8731 = vmatmul.mubr.f32.vlgmr.msra.gmra.mrb[16].mxu0 %v11808_v40  ;;  %v13101_v40 = vand.u32 4294901760, %v11722_v26  ;;  %v13108_v26 = vand.u32 4294901760, %v11945_v45 }
 0x535   : > { %9441 = vmatpush3.bf16.msra.mxu0 %v11657_v54  ;;  %8733 = vmatprep.mubr.f32.mxu0 %v11839_v63 }
 0x536   : > { %9443 = vmatprep.subr.bf16.mxu0 %v11659_v28  ;;  %v9466_v63 = vpack.c.bf16 %v13101_v40, %v13100_v27 }
 0x538   : > { %8734 = vmatmul.mubr.f32.gmra.mrb[18].mxu0 %v11833_v19  ;;  %v13105_v19 = vand.u32 4294901760, %v11922_v41 }
 0x539   : > { %8736 = vmatprep.mubr.f32.mxu0 %v11863_v23  ;;  %9445 = vmatpush3.bf16.msra.mxu0 %v11659_v28  ;;  %v13106_v23 = vand.u32 4294901760, %v11916_v5 }
 0x53a   : > { %9447 = vmatprep.subr.bf16.mxu0 %v11664_v22 }
 0x53c   : > { %8737 = vmatmul.mubr.f32.gmra.mrb[20].mxu0 %v11857_v18 }
 0x53d   : > { %8739 = vmatprep.mubr.f32.mxu0 %v11893_v15  ;;  %9449 = vmatpush3.bf16.msra.mxu0 %v11664_v22 }
 0x53e   : > { %9451 = vmatprep.subr.bf16.mxu0 %v11675_v42 }
 0x540   : > { %8740 = vmatmul.mubr.f32.gmra.mrb[22].mxu0 %v11886_v14  ;;  %v13109_v14 = vand.u32 4294901760, %v11975_v50 }
 0x541   : > { %8742 = vmatprep.mubr.f32.mxu0 %v11922_v41  ;;  %9453 = vmatpush3.bf16.msra.mxu0 %v11675_v42 }
 0x542   : > { %9455 = vmatprep.subr.bf16.mxu0 %v9454_v2 }
 0x544   : > { %8743 = vmatmul.mubr.f32.gmra.mrb[24].mxu0 %v11916_v5 }
 0x545   : > { %8745 = vmatprep.mubr.f32.mxu0 %v11950_v13 }
 0x548   : > { %8746 = vmatmul.mubr.f32.gmra.mrb[26].mxu0 %v11945_v45 }
 0x549   : > { %8748 = vmatprep.mubr.f32.mxu0 %v11980_v11 }
 0x54c   : > { %8749 = vmatmul.mubr.f32.gmra.mrb[28].mxu0 %v11975_v50 }
 0x54d   : > { %8751 = vmatprep.mubr.f32.mxu0 %v12003_v1 }
 0x550   : > { %8752 = vmatmul.mubr.f32.gmra.mrb[30].mxu0 %v12000_v53 }
 0x551   : > { %8770 = vmatprep.mubr.f32.mxu0 %v13091_v38 }
 0x554   : > { %8771 = vmatmul.mubr.f32.vlgmr.msra.gmra.mrb[16].mxu0 %v13094_v60 }
 0x555   : > { %9457 = vmatpush3.bf16.msra.mxu0 %v9454_v2  ;;  %8773 = vmatprep.mubr.f32.mxu0 %v13095_v56 }
 0x556   : > { %9459 = vmatprep.subr.bf16.mxu0 %v9458_v58 }
 0x558   : > { %8774 = vmatmul.mubr.f32.gmra.mrb[18].mxu0 %v13098_v37 }
 0x559   : > { %8776 = vmatprep.mubr.f32.mxu0 %v13099_v29  ;;  %9461 = vmatpush3.bf16.msra.mxu0 %v9458_v58 }
 0x55a   : > { %9463 = vmatprep.subr.bf16.mxu0 %v9462_v4 }
 0x55c   : > { %8777 = vmatmul.mubr.f32.gmra.mrb[20].mxu0 %v13102_v55 }
 0x55d   : > { %8779 = vmatprep.mubr.f32.mxu0 %v13103_v24  ;;  %9465 = vmatpush3.bf16.msra.mxu0 %v9462_v4 }
 0x55e   : > { %9467 = vmatprep.subr.bf16.mxu0 %v9466_v63 }
 0x560   : > { %8780 = vmatmul.mubr.f32.gmra.mrb[22].mxu0 %v13104_v21 }
 0x561   : > { %8782 = vmatprep.mubr.f32.mxu0 %v13105_v19  ;;  %9469 = vmatpush3.bf16.msra.mxu0 %v9466_v63 }
 0x562   : > { %9471 = vmatprep.subr.bf16.mxu0 %v11657_v54 }
 0x564   : > { %8783 = vmatmul.mubr.f32.gmra.mrb[24].mxu0 %v13106_v23 }
 0x565   : > { %8785 = vmatprep.mubr.f32.mxu0 %v13107_v34 }
 0x568   : > { %8786 = vmatmul.mubr.f32.gmra.mrb[26].mxu0 %v13108_v26 }
 0x569   : > { %8788 = vmatprep.mubr.f32.mxu0 %v4741_v49  ;;  %v10239_v49 = vmov -1.0  }
 0x56c   : > { %8789 = vmatmul.mubr.f32.gmra.mrb[28].mxu0 %v13109_v14 }
 0x56d   : > { %8791 = vmatprep.mubr.f32.mxu0 %v4761_v0 }
 0x570   : > { %8792 = vmatmul.mubr.f32.gmra.mrb[30].mxu0 %v4771_v3 }
 0x571   : > { %8810 = vmatprep.mubr.f32.mxu0 %v11802_v39 }
 0x574   : > { %8811 = vmatmul.mubr.f32.vlgmr.msra.gmra.mrb[16].mxu0 %v11795_v46 }
 0x575   : > { %9473 = vmatpush3.bf16.msra.mxu0 %v11657_v54  ;;  %8813 = vmatprep.mubr.f32.mxu0 %v11821_v12 }
 0x576   : > { %9475 = vmatprep.subr.bf16.mxu0 %v11659_v28 }
 0x578   : > { %8814 = vmatmul.mubr.f32.gmra.mrb[18].mxu0 %v11816_v48 }
 0x579   : > { %8816 = vmatprep.mubr.f32.mxu0 %v11851_v33  ;;  %9477 = vmatpush3.bf16.msra.mxu0 %v11659_v28 }
 0x57a   : > { %9479 = vmatprep.subr.bf16.mxu0 %v11664_v22 }
 0x57c   : > { %8817 = vmatmul.mubr.f32.gmra.mrb[20].mxu0 %v11845_v31 }
 0x57d   : > { %8819 = vmatprep.mubr.f32.mxu0 %v11880_v9  ;;  %9481 = vmatpush3.bf16.msra.mxu0 %v11664_v22 }
 0x57e   : > { %9483 = vmatprep.subr.bf16.mxu0 %v11675_v42 }
 0x580   : > { %8820 = vmatmul.mubr.f32.gmra.mrb[22].mxu0 %v11869_v17 }
 0x581   : > { %8822 = vmatprep.mubr.f32.mxu0 %v11906_v16  ;;  %9485 = vmatpush3.bf16.msra.mxu0 %v11675_v42 }
 0x584   : > { %8823 = vmatmul.mubr.f32.gmra.mrb[24].mxu0 %v11900_v25 }
 0x585   : > { %8825 = vmatprep.mubr.f32.mxu0 %v11934_v36 }
 0x588   : > { %8826 = vmatmul.mubr.f32.gmra.mrb[26].mxu0 %v11927_v52 }
 0x589   : > { %8828 = vmatprep.mubr.f32.mxu0 %v11965_v47 }
 0x58c   : > { %8829 = vmatmul.mubr.f32.gmra.mrb[28].mxu0 %v11955_v51 }
 0x58d   : > { %8831 = vmatprep.mubr.f32.mxu0 %v11993_v30 }
 0x590   : > { %8832 = vmatmul.mubr.f32.gmra.mrb[30].mxu0 %v11985_v7 }
 0x591   : > { %8850 = vmatprep.mubr.f32.mxu0 %v11802_v39 }
 0x594   : > { %8851 = vmatmul.mubr.f32.vlgmr.msra.gmra.mrb[16].mxu0 %v11795_v46 }
 0x595   : > { %8853 = vmatprep.mubr.f32.mxu0 %v11821_v12 }
 0x598   : > { %8854 = vmatmul.mubr.f32.gmra.mrb[18].mxu0 %v11816_v48 }
 0x599   : > { %8856 = vmatprep.mubr.f32.mxu0 %v11851_v33 }
 0x59c   : > { %8857 = vmatmul.mubr.f32.gmra.mrb[20].mxu0 %v11845_v31 }
 0x59d   : > { %8859 = vmatprep.mubr.f32.mxu0 %v11880_v9 }
 0x5a0   : > { %8860 = vmatmul.mubr.f32.gmra.mrb[22].mxu0 %v11869_v17 }
 0x5a1   : > { %8862 = vmatprep.mubr.f32.mxu0 %v11906_v16 }
 0x5a4   : > { %8863 = vmatmul.mubr.f32.gmra.mrb[24].mxu0 %v11900_v25 }
 0x5a5   : > { %8865 = vmatprep.mubr.f32.mxu0 %v11934_v36 }
 0x5a8   : > { %8866 = vmatmul.mubr.f32.gmra.mrb[26].mxu0 %v11927_v52 }
 0x5a9   : > { %8868 = vmatprep.mubr.f32.mxu0 %v11965_v47 }
 0x5ac   : > { %8869 = vmatmul.mubr.f32.gmra.mrb[28].mxu0 %v11955_v51 }
 0x5ad   : > { %8871 = vmatprep.mubr.f32.mxu0 %v11993_v30 }
 0x5b0   : > { %8872 = vmatmul.mubr.f32.gmra.mrb[30].mxu0 %v11985_v7 }
 0x667   : > { %v8852_v54 = vpop.f32.mrb[16].mxu0 }
 0x668   : > { %v5841_v28 = vmul.f32 0.70710677, %v8852_v54  ;;  %v5634_v22 = vpop.f32.mrb[17].mxu0  ;;  %v12158_v16 = vmul.f32 0.5, %v8852_v54 }
 0x669   : > { %v5840_v42 = vmul.f32 0.70710677, %v5634_v22  ;;  %v12165_v47 = vmul.f32 0.5, %v5634_v22 }
 0x66a   : > { %v5889_v31 = vand.u32 2147483647, %v5841_v28  ;;  %vm5857_vm11 = vcmp.ge.f32.partialorder %v5841_v28, 0.0 }
 0x66b   : > { %v5888_v5 = vand.u32 2147483647, %v5840_v42  ;;  %v8855_v18 = vpop.f32.mrb[18].mxu0  ;;  %vm5856_vm12 = vcmp.ge.f32.partialorder %v5840_v42, 0.0  ;;  %v12171_v53 = vsel %vm5857_vm11, 1.0, %v10239_v49 }
 0x66c   : > { %v5905_v46 = vmul.f32 0.3275911, %v5889_v31  ;;  %v5646_v45 = vpop.f32.mrb[19].mxu0  ;;  %v5843_v48 = vmul.f32 0.70710677, %v8855_v18  ;;  %v6113_v9 = vsub.f32 0.0, %v5889_v31 }
 0x66d   : > { %v5904_v39 = vmul.f32 0.3275911, %v5888_v5  ;;  %v5842_v41 = vmul.f32 0.70710677, %v5646_v45  ;;  %v6112_v25 = vsub.f32 0.0, %v5888_v5  ;;  %v12177_v43 = vsel %vm5856_vm12, 1.0, %v10239_v49 }
 0x66e   : > { %v5921_v12 = vadd.f32 1.0, %v5905_v46  ;;  %v5891_v17 = vand.u32 2147483647, %v5843_v48  ;;  %v6129_v3 = vmul.f32 %v6113_v9, %v5889_v31  ;;  %v12179_v2 = vmul.f32 0.5, %v8855_v18 }
 0x66f   : > { %v5920_v33 = vadd.f32 1.0, %v5904_v39  ;;  %v12154_v15 = vpop.f32.mrb[20].mxu0  ;;  %v5890_v11 = vand.u32 2147483647, %v5842_v41  ;;  %v6128_v10 = vmul.f32 %v6112_v25, %v5888_v5  ;;  %vm5859_vm13 = vcmp.ge.f32.partialorder %v5843_v48, 0.0 }
 0x670   : > { %10075 = vrcp.f32 %v5921_v12  ;;  %v12156_v7 = vpop.f32.mrb[21].mxu0  ;;  %v5907_v52 = vmul.f32 0.3275911, %v5891_v17  ;;  %v12161_v51 = vmul.f32 0.70710677, %v12154_v15  ;;  %v6115_v1 = vsub.f32 0.0, %v5891_v17 }
 0x671   : > { %10077 = vrcp.f32 %v5920_v33  ;;  %v5906_v50 = vmul.f32 0.3275911, %v5890_v11  ;;  %v12168_v30 = vmul.f32 0.70710677, %v12156_v7  ;;  %v6114_v59 = vsub.f32 0.0, %v5890_v11 }
 0x672   : > { %v5923_v36 = vadd.f32 1.0, %v5907_v52  ;;  %v5893_v0 = vand.u32 2147483647, %v12161_v51  ;;  %v12181_v38 = vmul.f32 0.5, %v5646_v45  ;;  %v6146_v58 = vmul.f32 1.442695, %v6129_v3 }
 0x673   : > { %v12163_v13 = vpop.f32.mrb[22].mxu0  ;;  %v5922_v6 = vadd.f32 1.0, %v5906_v50  ;;  %v5892_v56 = vand.u32 2147483647, %v12168_v30  ;;  %v6131_v32 = vmul.f32 %v6115_v1, %v5891_v17  ;;  %vm5858_vm14 = vcmp.ge.f32.partialorder %v5842_v41, 0.0 }
 0x674   : > { %10079 = vrcp.f32 %v5923_v36  ;;  %v12174_v61 = vpop.f32.mrb[23].mxu0  ;;  %v5909_v62 = vmul.f32 0.3275911, %v5893_v0  ;;  %v6117_v60 = vsub.f32 0.0, %v5893_v0  ;;  %v12189_v37 = vmul.f32 0.70710677, %v12163_v13 }
 0x675   : > { %10081 = vrcp.f32 %v5922_v6  ;;  %v6144_v27 = vmul.f32 1.442695, %v6128_v10  ;;  %v6130_v40 = vmul.f32 %v6114_v59, %v5890_v11  ;;  %v5908_v63 = vmul.f32 0.3275911, %v5892_v56 }
 0x676   : > { %v5925_v4 = vadd.f32 1.0, %v5909_v62  ;;  %v6116_v55 = vsub.f32 0.0, %v5892_v56  ;;  %v12198_v19 = vsel %vm5859_vm13, 1.0, %v10239_v49  ;;  %v12201_v23 = vmul.f32 0.70710677, %v12174_v61 }
 0x677   : > { %v12183_v35 = vpop.f32.mrb[24].mxu0  ;;  %v12207_v14 = vsel %vm5858_vm14, 1.0, %v10239_v49  ;;  %v6133_v54 = vmul.f32 %v6117_v60, %v5893_v0  ;;  %v5924_v28 = vadd.f32 1.0, %v5908_v63  ;;  %v6150_v31 = vmul.f32 1.442695, %v6131_v32 }
 0x678   : > { %v12186_v57 = vpop.f32.mrb[25].mxu0  ;;  %10083 = vrcp.f32 %v5925_v4  ;;  %v5895_v5 = vand.u32 2147483647, %v12189_v37  ;;  %v6148_v46 = vmul.f32 1.442695, %v6130_v40  ;;  %v6132_v45 = vmul.f32 %v6116_v55, %v5892_v56 }
 0x679   : > { %10085 = vpow2.f32 %v6146_v58  ;;  %v5894_v33 = vand.u32 2147483647, %v12201_v23  ;;  %v12221_v25 = vmul.f32 0.5, %v12154_v15  ;;  %v6154_v11 = vmul.f32 1.442695, %v6133_v54 }
 0x67a   : > { %v12191_v29 = vpop.eup %10075  ;;  %10087 = vrcp.f32 %v5924_v28  ;;  %v5911_v12 = vmul.f32 0.3275911, %v5895_v5  ;;  %v6119_v41 = vsub.f32 0.0, %v5895_v5  ;;  %v6152_v59 = vmul.f32 1.442695, %v6132_v45 }
 0x67b   : > { %v12193_v24 = vpop.eup %10077  ;;  %v5969_v21 = vmul.f32 1.0614054, %v12191_v29  ;;  %v12203_v34 = vpop.f32.mrb[26].mxu0  ;;  %10089 = vpow2.f32 %v6144_v27  ;;  %v5910_v1 = vmul.f32 0.3275911, %v5894_v33  ;;  %v6118_v27 = vsub.f32 0.0, %v5894_v33 }
 0x67c   : > { %v5968_v26 = vmul.f32 1.0614054, %v12193_v24  ;;  %v12209_v22 = vpop.f32.mrb[27].mxu0  ;;  %v5927_v50 = vadd.f32 1.0, %v5911_v12  ;;  %10091 = vpow2.f32 %v6150_v31  ;;  %v6135_v15 = vmul.f32 %v6119_v41, %v5895_v5 }
 0x67d   : > { %v5985_v42 = vadd.f32 -1.4531521, %v5969_v21  ;;  %v5926_v4 = vadd.f32 1.0, %v5910_v1  ;;  %vm5861_vm15 = vcmp.ge.f32.partialorder %v12161_v51, 0.0  ;;  %vm5860_vm0 = vcmp.ge.f32.partialorder %v12168_v30, 0.0 }
 0x67e   : > { %v5984_v18 = vadd.f32 -1.4531521, %v5968_v26  ;;  %v12212_v39 = vpop.eup %10079  ;;  %10093 = vrcp.f32 %v5927_v50  ;;  %v12238_v26 = vmul.f32 0.70710677, %v12183_v35  ;;  %v6158_v45 = vmul.f32 1.442695, %v6135_v15 }
 0x67f   : > { %v6001_v48 = vmul.f32 %v12191_v29, %v5985_v42  ;;  %v12216_v17 = vpop.f32.mrb[28].mxu0  ;;  %v5971_v52 = vmul.f32 1.0614054, %v12212_v39  ;;  %v12225_v0 = vpop.eup %10081  ;;  %10095 = vpow2.f32 %v6148_v46  ;;  %v6134_v50 = vmul.f32 %v6118_v27, %v5894_v33 }
 0x680   : > { %v6000_v9 = vmul.f32 %v12193_v24, %v5984_v18  ;;  %v12223_v36 = vpop.f32.mrb[29].mxu0  ;;  %v5970_v58 = vmul.f32 1.0614054, %v12225_v0  ;;  %10097 = vrcp.f32 %v5926_v4  ;;  %vm5863_vm2 = vcmp.ge.f32.partialorder %v12189_v37, 0.0 }
 0x681   : > { %v6017_v3 = vadd.f32 1.4214138, %v6001_v48  ;;  %v5987_v6 = vadd.f32 -1.4531521, %v5971_v52  ;;  %10099 = vpow2.f32 %v6154_v11  ;;  %v12250_v11 = vand.u32 2147483647, %v12238_v26 }
 0x682   : > { %v6016_v10 = vadd.f32 1.4214138, %v6000_v9  ;;  %v12235_v63 = vpop.eup %10083  ;;  %v5986_v21 = vadd.f32 -1.4531521, %v5970_v58  ;;  %10101 = vpow2.f32 %v6152_v59  ;;  %vm5862_vm3 = vcmp.ge.f32.partialorder %v12201_v23, 0.0 }
 0x683   : > { %v6033_v62 = vmul.f32 %v12191_v29, %v6017_v3  ;;  %v12229_v60 = vpop.f32.mrb[30].mxu0  ;;  %v6003_v32 = vmul.f32 %v12212_v39, %v5987_v6  ;;  %v5973_v42 = vmul.f32 1.0614054, %v12235_v63  ;;  %v10086_v31 = vpop.eup %10085  ;;  %10103 = vpow2.f32 %v6158_v45 }
 0x684   : > { %v6032_v56 = vmul.f32 %v12193_v24, %v6016_v10  ;;  %v12233_v40 = vpop.f32.mrb[31].mxu0  ;;  %v6002_v18 = vmul.f32 %v12225_v0, %v5986_v21  ;;  %v12243_v48 = vpop.eup %10087  ;;  %v5913_v27 = vmul.f32 0.3275911, %v12250_v11  ;;  %vm5865_vm4 = vcmp.ge.f32.partialorder %v12238_v26, 0.0 }
 0x685   : > { %v6049_v55 = vadd.f32 -0.28449672, %v6033_v62  ;;  %v6019_v28 = vadd.f32 1.4214138, %v6003_v32  ;;  %v5989_v41 = vadd.f32 -1.4531521, %v5973_v42  ;;  %v10090_v62 = vpop.eup %10089 }
 0x686   : > { %v6048_v54 = vadd.f32 -0.28449672, %v6032_v56  ;;  %v6018_v52 = vadd.f32 1.4214138, %v6002_v18  ;;  %v5972_v3 = vmul.f32 1.0614054, %v12243_v48  ;;  %v10092_v59 = vpop.eup %10091 }
 0x687   : > { %v6065_v5 = vmul.f32 %v12191_v29, %v6049_v55  ;;  %v6035_v46 = vmul.f32 %v12212_v39, %v6019_v28  ;;  %v6005_v6 = vmul.f32 %v12235_v63, %v5989_v41  ;;  %v6156_v42 = vmul.f32 1.442695, %v6134_v50 }
 0x688   : > { %v6064_v12 = vmul.f32 %v12193_v24, %v6048_v54  ;;  %v6034_v15 = vmul.f32 %v12225_v0, %v6018_v52  ;;  %v5988_v56 = vadd.f32 -1.4531521, %v5972_v3  ;;  %v12257_v55 = vpop.eup %10093 }
 0x689   : > { %v6081_v9 = vadd.f32 0.2548296, %v6065_v5  ;;  %v6051_v10 = vadd.f32 -0.28449672, %v6035_v46  ;;  %v6021_v33 = vadd.f32 1.4214138, %v6005_v6  ;;  %10105 = vpow2.f32 %v6156_v42 }
 0x68a   : > { %v6080_v1 = vadd.f32 0.2548296, %v6064_v12  ;;  %v6050_v54 = vadd.f32 -0.28449672, %v6034_v15  ;;  %v6004_v28 = vmul.f32 %v12243_v48, %v5988_v56  ;;  %v5975_v45 = vmul.f32 1.0614054, %v12257_v55  ;;  %v10096_v12 = vpop.eup %10095 }
 0x68b   : > { %v6097_v58 = vmul.f32 %v12191_v29, %v6081_v9  ;;  %v6067_v4 = vmul.f32 %v12212_v39, %v6051_v10  ;;  %v6037_v18 = vmul.f32 %v12235_v63, %v6021_v33  ;;  %v5929_v9 = vadd.f32 1.0, %v5913_v27  ;;  %v12264_v52 = vpop.eup %10097 }
 0x68c   : > { %v6096_v32 = vmul.f32 %v12193_v24, %v6080_v1  ;;  %v6066_v46 = vmul.f32 %v12225_v0, %v6050_v54  ;;  %v6020_v41 = vadd.f32 1.4214138, %v6004_v28  ;;  %v5991_v1 = vadd.f32 -1.4531521, %v5975_v45  ;;  %v10100_v10 = vpop.eup %10099 }
 0x68d   : > { %v6177_v21 = vmul.f32 %v10086_v31, %v6097_v58  ;;  %v6083_v5 = vadd.f32 0.2548296, %v6067_v4  ;;  %v6053_v50 = vadd.f32 -0.28449672, %v6037_v18  ;;  %v5974_v15 = vmul.f32 1.0614054, %v12264_v52  ;;  %v10102_v56 = vpop.eup %10101 }
 0x68e   : > { %v6176_v29 = vmul.f32 %v10090_v62, %v6096_v32  ;;  %v6082_v62 = vadd.f32 0.2548296, %v6066_v46  ;;  %v6036_v58 = vmul.f32 %v12243_v48, %v6020_v41  ;;  %v6007_v27 = vmul.f32 %v12257_v55, %v5991_v1  ;;  %v10104_v45 = vpop.eup %10103 }
 0x68f   : > { %v6193_v24 = vsub.f32 1.0, %v6177_v21  ;;  %v6099_v3 = vmul.f32 %v12212_v39, %v6083_v5  ;;  %v6069_v33 = vmul.f32 %v12235_v63, %v6053_v50  ;;  %v5990_v28 = vadd.f32 -1.4531521, %v5974_v15 }
 0x690   : > { %v6192_v31 = vsub.f32 1.0, %v6176_v29  ;;  %v6098_v39 = vmul.f32 %v12225_v0, %v6082_v62  ;;  %v6052_v54 = vadd.f32 -0.28449672, %v6036_v58  ;;  %v6023_v18 = vadd.f32 1.4214138, %v6007_v27 }
 0x691   : > { %v6209_v6 = vmul.f32 %v6193_v24, %v12171_v53  ;;  %v6179_v4 = vmul.f32 %v10092_v59, %v6099_v3  ;;  %v6085_v5 = vadd.f32 0.2548296, %v6069_v33  ;;  %v6006_v59 = vmul.f32 %v12264_v52, %v5990_v28 }
 0x692   : > { %v6208_v32 = vmul.f32 %v6192_v31, %v12177_v43  ;;  %v6178_v46 = vmul.f32 %v10096_v12, %v6098_v39  ;;  %v6068_v43 = vmul.f32 %v12243_v48, %v6052_v54  ;;  %v6039_v0 = vmul.f32 %v12257_v55, %v6023_v18 }
 0x693   : > { %v6225_v21 = vadd.f32 1.0, %v6209_v6  ;;  %v6195_v53 = vsub.f32 1.0, %v6179_v4  ;;  %v6101_v31 = vmul.f32 %v12235_v63, %v6085_v5  ;;  %v6022_v1 = vadd.f32 1.4214138, %v6006_v59 }
 0x694   : > { %v6224_v29 = vadd.f32 1.0, %v6208_v32  ;;  %v6194_v3 = vsub.f32 1.0, %v6178_v46  ;;  %v6084_v50 = vadd.f32 0.2548296, %v6068_v43  ;;  %10107 = vrcp.f32 %v5929_v9 }
 0x695   : > { %v6241_v24 = vmul.f32 %v6225_v21, %v12158_v16  ;;  %v6211_v41 = vmul.f32 %v6195_v53, %v12198_v19  ;;  %v6181_v16 = vmul.f32 %v10100_v10, %v6101_v31  ;;  %v6055_v12 = vadd.f32 -0.28449672, %v6039_v0 }
 0x696   : > { %v12282_v62 = vmul.f32 0.70710677, %v12186_v57  ;;  %v6240_v58 = vmul.f32 %v6224_v29, %v12165_v47  ;;  %v6210_v19 = vmul.f32 %v6194_v3, %v12207_v14  ;;  %v6100_v63 = vmul.f32 %v12243_v48, %v6084_v50 }
 0x697   : > { %6274 = vrot.lane.b32.xlu1 %v6241_v24, %s10238_s21  ;;  %v6227_v6 = vadd.f32 1.0, %v6211_v41  ;;  %v6038_v42 = vmul.f32 %v12264_v52, %v6022_v1  ;;  %v5877_v9 = vsel %vm5861_vm15, 1.0, %v10239_v49  ;;  %v6197_v32 = vsub.f32 1.0, %v6181_v16 }
 0x698   : > { %v6071_v10 = vmul.f32 %v12257_v55, %v6055_v12  ;;  %v6226_v4 = vadd.f32 1.0, %v6210_v19  ;;  %v6180_v33 = vmul.f32 %v10102_v56, %v6100_v63  ;;  %v5828_v48 = vmul.f32 0.5, %v12156_v7 }
 0x699   : > { %v6243_v15 = vmul.f32 %v6227_v6, %v12179_v2  ;;  %v6054_v47 = vadd.f32 -0.28449672, %v6038_v42  ;;  %v6213_v14 = vmul.f32 %v6197_v32, %v5877_v9  ;;  %v5896_v2 = vand.u32 2147483647, %v12282_v62 }
 0x69a   : > { %v6087_v27 = vadd.f32 0.2548296, %v6071_v10  ;;  %v6242_v51 = vmul.f32 %v6226_v4, %v12181_v38  ;;  %v6196_v21 = vsub.f32 1.0, %v6180_v33  ;;  %v6121_v54 = vsub.f32 0.0, %v12250_v11  ;;  %v10106_v38 = vpop.eup %10105 }
 0x69b   : > { %6272 = vrot.lane.b32.xlu1 %v6240_v58, %s10238_s21  ;;  %6278 = vrot.lane.b32.xlu0 %v6243_v15, %s10238_s21  ;;  %v6070_v39 = vmul.f32 %v12264_v52, %v6054_v47  ;;  %v6229_v30 = vadd.f32 1.0, %v6213_v14  ;;  %v5876_v56 = vsel %vm5860_vm0, 1.0, %v10239_v49  ;;  %v5912_v29 = vmul.f32 0.3275911, %v5896_v2 }
 0x69c   : > { %v6103_v28 = vmul.f32 %v12257_v55, %v6087_v27  ;;  %v6212_v53 = vmul.f32 %v6196_v21, %v5876_v56  ;;  %v12305_v5 = vmul.f32 0.70710677, %v12203_v34  ;;  %v6137_v41 = vmul.f32 %v6121_v54, %v12250_v11 }
 0x69d   : > { %v6086_v7 = vadd.f32 0.2548296, %v6070_v39  ;;  %v6245_v18 = vmul.f32 %v6229_v30, %v12221_v25  ;;  %v5928_v46 = vadd.f32 1.0, %v5912_v29  ;;  %v5831_v6 = vmul.f32 0.5, %v12163_v13 }
 0x69e   : > { %v6183_v24 = vmul.f32 %v10104_v45, %v6103_v28  ;;  %v12310_v43 = vpop.eup %10107  ;;  %v6228_v55 = vadd.f32 1.0, %v6212_v53  ;;  %v5899_v31 = vand.u32 2147483647, %v12305_v5  ;;  %v5879_v45 = vsel %vm5863_vm2, 1.0, %v10239_v49 }
 0x69f   : > { %6276 = vrot.lane.b32.xlu1 %v6242_v51, %s10238_s21  ;;  %v6102_v59 = vmul.f32 %v12264_v52, %v6086_v7  ;;  %v5977_v3 = vmul.f32 1.0614054, %v12310_v43  ;;  %10109 = vrcp.f32 %v5928_v46  ;;  %6282 = vrot.lane.b32.xlu0 %v6245_v18, %s10238_s21  ;;  %v5878_v11 = vsel %vm5862_vm3, 1.0, %v10239_v49 }
 0x6a0   : > { %v6199_v0 = vsub.f32 1.0, %v6183_v24  ;;  %v6244_v25 = vmul.f32 %v6228_v55, %v5828_v48  ;;  %v5915_v1 = vmul.f32 0.3275911, %v5899_v31  ;;  %v6162_v58 = vmul.f32 1.442695, %v6137_v41 }
 0x6a1   : > { %v6182_v50 = vmul.f32 %v10106_v38, %v6102_v59  ;;  %v5993_v16 = vadd.f32 -1.4531521, %v5977_v3  ;;  %v12325_v63 = vmul.f32 0.70710677, %v12209_v22  ;;  %v6120_v15 = vsub.f32 0.0, %v5896_v2 }
 0x6a2   : > { %v6215_v52 = vmul.f32 %v6199_v0, %v5879_v45  ;;  %v5931_v19 = vadd.f32 1.0, %v5915_v1  ;;  %v12330_v13 = vmul.f32 0.70710677, %v12216_v17  ;;  %v5830_v4 = vmul.f32 0.5, %v12174_v61 }
 0x6a3   : > { %v6198_v12 = vsub.f32 1.0, %v6182_v50  ;;  %6280 = vrot.lane.b32.xlu1 %v6244_v25, %s10238_s21  ;;  %v6009_v42 = vmul.f32 %v12310_v43, %v5993_v16  ;;  %v5898_v23 = vand.u32 2147483647, %v12325_v63  ;;  %v6136_v48 = vmul.f32 %v6120_v15, %v5896_v2 }
 0x6a4   : > { %v6231_v37 = vadd.f32 1.0, %v6215_v52  ;;  %10111 = vrcp.f32 %v5931_v19  ;;  %v6123_v27 = vsub.f32 0.0, %v5899_v31  ;;  %v5901_v51 = vand.u32 2147483647, %v12330_v13 }
 0x6a5   : > { %v6214_v9 = vmul.f32 %v6198_v12, %v5878_v11  ;;  %v6025_v10 = vadd.f32 1.4214138, %v6009_v42  ;;  %10113 = vpow2.f32 %v6162_v58  ;;  %v5914_v47 = vmul.f32 0.3275911, %v5898_v23 }
 0x6a6   : > { %v6247_v32 = vmul.f32 %v6231_v37, %v5831_v6  ;;  %v5917_v56 = vmul.f32 0.3275911, %v5901_v51  ;;  %v12341_v61 = vmul.f32 0.70710677, %v12223_v36  ;;  %v6160_v29 = vmul.f32 1.442695, %v6136_v48 }
 0x6a7   : > { %v6230_v33 = vadd.f32 1.0, %v6214_v9  ;;  %v6041_v14 = vmul.f32 %v12310_v43, %v6025_v10  ;;  %v5930_v39 = vadd.f32 1.0, %v5914_v47  ;;  %v6139_v53 = vmul.f32 %v6123_v27, %v5899_v31 }
 0x6a8   : > { %6286 = vrot.lane.b32.xlu0 %v6247_v32, %s10238_s21  ;;  %v5933_v7 = vadd.f32 1.0, %v5917_v56  ;;  %v5900_v18 = vand.u32 2147483647, %v12341_v61  ;;  %v12347_v24 = vmul.f32 0.70710677, %v12229_v60  ;;  %v6122_v55 = vsub.f32 0.0, %v5898_v23 }
 0x6a9   : > { %v6246_v21 = vmul.f32 %v6230_v33, %v5830_v4  ;;  %v12337_v54 = vpop.eup %10109  ;;  %v6057_v30 = vadd.f32 -0.28449672, %v6041_v14  ;;  %10115 = vrcp.f32 %v5930_v39  ;;  %v6166_v25 = vmul.f32 1.442695, %v6139_v53 }
 0x6aa   : > { %v5976_v28 = vmul.f32 1.0614054, %v12337_v54  ;;  %10117 = vrcp.f32 %v5933_v7  ;;  %v5916_v0 = vmul.f32 0.3275911, %v5900_v18  ;;  %v12356_v6 = vand.u32 2147483647, %v12347_v24 }
 0x6ab   : > { %6284 = vrot.lane.b32.xlu1 %v6246_v21, %s10238_s21  ;;  %v6073_v2 = vmul.f32 %v12310_v43, %v6057_v30  ;;  %10119 = vpow2.f32 %v6160_v29  ;;  %v6138_v16 = vmul.f32 %v6122_v55, %v5898_v23  ;;  %v6125_v12 = vsub.f32 0.0, %v5901_v51 }
 0x6ac   : > { %v5992_v38 = vadd.f32 -1.4531521, %v5976_v28  ;;  %v5932_v1 = vadd.f32 1.0, %v5916_v0  ;;  %v5919_v19 = vmul.f32 0.3275911, %v12356_v6  ;;  %v5833_v37 = vmul.f32 0.5, %v12183_v35 }
 0x6ad   : > { %v6089_v46 = vadd.f32 0.2548296, %v6073_v2  ;;  %v5881_v23 = vsel %vm5865_vm4, 1.0, %v10239_v49  ;;  %v6164_v14 = vmul.f32 1.442695, %v6138_v16  ;;  %v6141_v35 = vmul.f32 %v6125_v12, %v5901_v51 }
 0x6ae   : > { %v12349_v59 = vpop.eup %10111  ;;  %v6008_v41 = vmul.f32 %v12337_v54, %v5992_v38  ;;  %10121 = vrcp.f32 %v5932_v1  ;;  %v5935_v10 = vadd.f32 1.0, %v5919_v19  ;;  %v6124_v56 = vsub.f32 0.0, %v5900_v18 }
 0x6af   : > { %v6105_v3 = vmul.f32 %v12310_v43, %v6089_v46  ;;  %v5979_v31 = vmul.f32 1.0614054, %v12349_v59  ;;  %v10114_v45 = vpop.eup %10113  ;;  %v12361_v43 = vmul.f32 0.70710677, %v12233_v40  ;;  %10123 = vpow2.f32 %v6166_v25 }
 0x6b0   : > { %v6024_v50 = vadd.f32 1.4214138, %v6008_v41  ;;  %10125 = vrcp.f32 %v5935_v10  ;;  %vm5864_vm5 = vcmp.ge.f32.partialorder %v12282_v62, 0.0  ;;  %v6170_v41 = vmul.f32 1.442695, %v6141_v35 }
 0x6b1   : > { %v6185_v52 = vmul.f32 %v10114_v45, %v6105_v3  ;;  %v5995_v11 = vadd.f32 -1.4531521, %v5979_v31  ;;  %v12373_v27 = vand.u32 2147483647, %v12361_v43  ;;  %10127 = vpow2.f32 %v6164_v14 }
 0x6b2   : > { %v6040_v58 = vmul.f32 %v12337_v54, %v6024_v50  ;;  %v6140_v25 = vmul.f32 %v6124_v56, %v5900_v18  ;;  %vm5867_vm6 = vcmp.ge.f32.partialorder %v12305_v5, 0.0  ;;  %v5832_v62 = vmul.f32 0.5, %v12186_v57 }
 0x6b3   : > { %v6201_v42 = vsub.f32 1.0, %v6185_v52  ;;  %v6011_v15 = vmul.f32 %v12349_v59, %v5995_v11  ;;  %v12365_v9 = vpop.eup %10115  ;;  %v5918_v29 = vmul.f32 0.3275911, %v12373_v27  ;;  %v6127_v52 = vsub.f32 0.0, %v12356_v6 }
 0x6b4   : > { %v6056_v32 = vadd.f32 -0.28449672, %v6040_v58  ;;  %v5978_v47 = vmul.f32 1.0614054, %v12365_v9  ;;  %v12375_v21 = vpop.eup %10117  ;;  %v6126_v57 = vsub.f32 0.0, %v12373_v27  ;;  %vm5866_vm7 = vcmp.ge.f32.partialorder %v12325_v63, 0.0 }
 0x6b5   : > { %v6217_v4 = vmul.f32 %v6201_v42, %v5881_v23  ;;  %v6027_v33 = vadd.f32 1.4214138, %v6011_v15  ;;  %v5981_v2 = vmul.f32 1.0614054, %v12375_v21  ;;  %v10120_v38 = vpop.eup %10119  ;;  %v5934_v0 = vadd.f32 1.0, %v5918_v29 }
 0x6b6   : > { %v6072_v48 = vmul.f32 %v12337_v54, %v6056_v32  ;;  %v5994_v30 = vadd.f32 -1.4531521, %v5978_v47  ;;  %v6168_v23 = vmul.f32 1.442695, %v6140_v25  ;;  %vm5869_vm8 = vcmp.ge.f32.partialorder %v12330_v13, 0.0 }
 0x6b7   : > { %v6233_v39 = vadd.f32 1.0, %v6217_v4  ;;  %v6043_v26 = vmul.f32 %v12349_v59, %v6027_v33  ;;  %v5997_v55 = vadd.f32 -1.4531521, %v5981_v2  ;;  %10129 = vrcp.f32 %v5934_v0 }
 0x6b8   : > { %v6088_v28 = vadd.f32 0.2548296, %v6072_v48  ;;  %v6010_v7 = vmul.f32 %v12365_v9, %v5994_v30  ;;  %v12385_v45 = vpop.eup %10121  ;;  %10131 = vpow2.f32 %v6170_v41  ;;  %v6143_v33 = vmul.f32 %v6127_v52, %v12356_v6 }
 0x6b9   : > { %v6249_v53 = vmul.f32 %v6233_v39, %v5833_v37  ;;  %v6059_v51 = vadd.f32 -0.28449672, %v6043_v26  ;;  %v6013_v1 = vmul.f32 %v12375_v21, %v5997_v55  ;;  %v5980_v12 = vmul.f32 1.0614054, %v12385_v45  ;;  %v10124_v18 = vpop.eup %10123 }
 0x6ba   : > { %v6104_v46 = vmul.f32 %v12337_v54, %v6088_v28  ;;  %v6026_v31 = vadd.f32 1.4214138, %v6010_v7  ;;  %v5880_v54 = vsel %vm5864_vm5, 1.0, %v10239_v49  ;;  %v12396_v32 = vpop.eup %10125  ;;  %v5883_v39 = vsel %vm5867_vm6, 1.0, %v10239_v49 }
 0x6bb   : > { %v6075_v3 = vmul.f32 %v12349_v59, %v6059_v51  ;;  %6290 = vrot.lane.b32.xlu0 %v6249_v53, %s10238_s21  ;;  %v6029_v19 = vadd.f32 1.4214138, %v6013_v1  ;;  %v5996_v15 = vadd.f32 -1.4531521, %v5980_v12  ;;  %v5983_v35 = vmul.f32 1.0614054, %v12396_v32  ;;  %v10128_v51 = vpop.eup %10127 }
 0x6bc   : > { %v6184_v50 = vmul.f32 %v10120_v38, %v6104_v46  ;;  %v6042_v16 = vmul.f32 %v12365_v9, %v6026_v31  ;;  %10133 = vpow2.f32 %v6168_v23  ;;  %v6174_v53 = vmul.f32 1.442695, %v6143_v33 }
 0x6bd   : > { %v6091_v11 = vadd.f32 0.2548296, %v6075_v3  ;;  %v6045_v4 = vmul.f32 %v12375_v21, %v6029_v19  ;;  %v6012_v48 = vmul.f32 %v12385_v45, %v5996_v15  ;;  %v5999_v29 = vadd.f32 -1.4531521, %v5983_v35 }
 0x6be   : > { %v6200_v58 = vsub.f32 1.0, %v6184_v50  ;;  %v6058_v42 = vadd.f32 -0.28449672, %v6042_v16  ;;  %v5835_v55 = vmul.f32 0.5, %v12203_v34  ;;  %v6142_v3 = vmul.f32 %v6126_v57, %v12373_v27 }
 0x6bf   : > { %v6107_v37 = vmul.f32 %v12349_v59, %v6091_v11  ;;  %v6061_v26 = vadd.f32 -0.28449672, %v6045_v4  ;;  %v6028_v28 = vadd.f32 1.4214138, %v6012_v48  ;;  %v6015_v0 = vmul.f32 %v12396_v32, %v5999_v29 }
 0x6c0   : > { %v6216_v10 = vmul.f32 %v6200_v58, %v5880_v54  ;;  %v6074_v14 = vmul.f32 %v12365_v9, %v6058_v42  ;;  %10135 = vpow2.f32 %v6174_v53  ;;  %v6172_v58 = vmul.f32 1.442695, %v6142_v3 }
 0x6c1   : > { %v6187_v47 = vmul.f32 %v10124_v18, %v6107_v37  ;;  %v6077_v2 = vmul.f32 %v12375_v21, %v6061_v26  ;;  %v6044_v5 = vmul.f32 %v12385_v45, %v6028_v28  ;;  %v12412_v46 = vpop.eup %10129  ;;  %v6031_v54 = vadd.f32 1.4214138, %v6015_v0 }
 0x6c2   : > { %v6232_v59 = vadd.f32 1.0, %v6216_v10  ;;  %v6090_v56 = vadd.f32 0.2548296, %v6074_v14  ;;  %v5982_v63 = vmul.f32 1.0614054, %v12412_v46  ;;  %v10132_v1 = vpop.eup %10131  ;;  %v5885_v4 = vsel %vm5869_vm8, 1.0, %v10239_v49 }
 0x6c3   : > { %v6203_v30 = vsub.f32 1.0, %v6187_v47  ;;  %v6093_v41 = vadd.f32 0.2548296, %v6077_v2  ;;  %v6060_v50 = vadd.f32 -0.28449672, %v6044_v5  ;;  %v6047_v18 = vmul.f32 %v12396_v32, %v6031_v54 }
 0x6c4   : > { %v6248_v6 = vmul.f32 %v6232_v59, %v5832_v62  ;;  %v6106_v38 = vmul.f32 %v12365_v9, %v6090_v56  ;;  %v5882_v9 = vsel %vm5866_vm7, 1.0, %v10239_v49  ;;  %v5998_v12 = vadd.f32 -1.4531521, %v5982_v63 }
 0x6c5   : > { %v6219_v7 = vmul.f32 %v6203_v30, %v5883_v39  ;;  %v6109_v52 = vmul.f32 %v12375_v21, %v6093_v41  ;;  %v6076_v16 = vmul.f32 %v12385_v45, %v6060_v50  ;;  %v5834_v21 = vmul.f32 0.5, %v12209_v22 }
 0x6c6   : > { %6288 = vrot.lane.b32.xlu1 %v6248_v6, %s10238_s21  ;;  %v6186_v25 = vmul.f32 %v10128_v51, %v6106_v38  ;;  %v6014_v42 = vmul.f32 %v12412_v46, %v5998_v12  ;;  %v6063_v23 = vadd.f32 -0.28449672, %v6047_v18  ;;  %v10134_v62 = vpop.eup %10133  ;;  %10137 = vpow2.f32 %v6172_v58  ;;  %v13112_v12 = vld [vmem:[#allocation41_spill] sm:$0xff] }
 0x6c7   : > { %v6235_v31 = vadd.f32 1.0, %v6219_v7  ;;  %v6189_v27 = vmul.f32 %v10132_v1, %v6109_v52  ;;  %v6092_v37 = vadd.f32 0.2548296, %v6076_v16  ;;  %vm5868_vm9 = vcmp.ge.f32.partialorder %v12341_v61, 0.0 }
 0x6c8   : > { %v6202_v11 = vsub.f32 1.0, %v6186_v25  ;;  %v6030_v33 = vadd.f32 1.4214138, %v6014_v42  ;;  %v6079_v14 = vmul.f32 %v12396_v32, %v6063_v23  ;;  %v5837_v22 = vmul.f32 0.5, %v12216_v17  ;;  %v13113_v42 = vld [vmem:[#allocation27_spill] sm:$0xff]  ;;  %v13115_v23 = vld [vmem:[#allocation46_spill] sm:$0xff] }
 0x6c9   : > { %v6251_v34 = vmul.f32 %v6235_v31, %v5835_v55  ;;  %v6205_v15 = vsub.f32 1.0, %v6189_v27  ;;  %v6108_v13 = vmul.f32 %v12385_v45, %v6092_v37  ;;  %v5884_v28 = vsel %vm5868_vm9, 1.0, %v10239_v49 }
 0x6ca   : > { %v6218_v19 = vmul.f32 %v6202_v11, %v5882_v9  ;;  %v6046_v59 = vmul.f32 %v12412_v46, %v6030_v33  ;;  %v6095_v26 = vadd.f32 0.2548296, %v6079_v14  ;;  %v10136_v45 = vpop.eup %10135  ;;  %vm5871_vm11 = vcmp.ge.f32.partialorder %v12347_v24, 0.0  ;;  %v13118_v33 = vld [vmem:[#allocation44_spill] sm:$0xff] }
 0x6cb   : > { %6294 = vrot.lane.b32.xlu0 %v6251_v34, %s10238_s21  ;;  %v6221_v47 = vmul.f32 %v6205_v15, %v5885_v4  ;;  %v6188_v35 = vmul.f32 %v10134_v62, %v6108_v13  ;;  %v5836_v17 = vmul.f32 0.5, %v12223_v36  ;;  %v5887_v5 = vsel %vm5871_vm11, 1.0, %v10239_v49  ;;  %v5791_v34 = vpop.permute.xlu0 %5790  ;;  %v13117_v13 = vld [vmem:[#allocation29_spill] sm:$0xff] }
 0x6cc   : > { %v6234_v10 = vadd.f32 1.0, %v6218_v19  ;;  %v6062_v30 = vadd.f32 -0.28449672, %v6046_v59  ;;  %v6111_v6 = vmul.f32 %v12396_v32, %v6095_v26  ;;  %vm5870_vm12 = vcmp.ge.f32.partialorder %v12361_v43, 0.0  ;;  %v5781_v43 = vpop.permute.xlu1 %5780  ;;  %v13120_v59 = vld [vmem:[#allocation32_spill] sm:$0xff] }
 0x6cd   : > { %v6237_v39 = vadd.f32 1.0, %v6221_v47  ;;  %v6204_v57 = vsub.f32 1.0, %v6188_v35  ;;  %v5839_v24 = vmul.f32 0.5, %v12229_v60  ;;  %v5886_v25 = vsel %vm5870_vm12, 1.0, %v10239_v49  ;;  %v13110_v49 = vld [vmem:[#allocation25_spill] sm:$0xff]  ;;  %v13119_v35 = vld [vmem:[#allocation26_spill] sm:$0xff] }
 0x6ce   : > { %v6250_v48 = vmul.f32 %v6234_v10, %v5834_v21  ;;  %v6078_v61 = vmul.f32 %v12412_v46, %v6062_v30  ;;  %v6191_v29 = vmul.f32 %v10136_v45, %v6111_v6  ;;  %v5838_v63 = vmul.f32 0.5, %v12233_v40  ;;  %v13111_v40 = vld [vmem:[#allocation23_spill] sm:$0xff]  ;;  %v13114_v21 = vld [vmem:[#allocation24_spill] sm:$0xff]  ;;  %v13122_v30 = vld [vmem:[#allocation30_spill] sm:$0xff] }
 0x6cf   : > { %v6253_v56 = vmul.f32 %v6237_v39, %v5837_v22  ;;  %v6220_v2 = vmul.f32 %v6204_v57, %v5884_v28  ;;  %v5809_v60 = vmul.f32 %v11786_v8, %v11778_v20  ;;  %v5808_v16 = vmul.f32 %v13110_v49, %v11789_v44  ;;  %v13116_v44 = vld [vmem:[#allocation28_spill] sm:$0xff]  ;;  %v13121_v57 = vld [vmem:[#allocation33_spill] sm:$0xff]  ;;  %v13123_v6 = vld [vmem:[#allocation31_spill] sm:$0xff] }
 0x6d0   : > { %6292 = vrot.lane.b32.xlu1 %v6250_v48, %s10238_s21  ;;  %v6094_v51 = vadd.f32 0.2548296, %v6078_v61  ;;  %v6207_v7 = vsub.f32 1.0, %v6191_v29  ;;  %v10138_v41 = vpop.eup %10137  ;;  %v5785_v9 = vpop.permute.xlu1 %5784  ;;  %v5811_v27 = vmul.f32 %v13112_v12, %v13111_v40  ;;  %v5810_v15 = vmul.f32 %v13114_v21, %v13113_v42  ;;  %v13133_v12 = vld [vmem:[#allocation42_spill] sm:$0xff] }
 0x6d1   : > { %6298 = vrot.lane.b32.xlu0 %v6253_v56, %s10238_s21  ;;  %v6236_v53 = vadd.f32 1.0, %v6220_v2  ;;  %v5813_v62 = vmul.f32 %v13116_v44, %v13115_v23  ;;  %v5812_v47 = vmul.f32 %v13118_v33, %v13117_v13  ;;  %v5815_v22 = vmul.f32 %v13120_v59, %v13119_v35  ;;  %v13124_v2 = vld [vmem:[#allocation34_spill] sm:$0xff] }
 0x6d2   : > { %v6110_v55 = vmul.f32 %v12412_v46, %v6094_v51  ;;  %v6223_v32 = vmul.f32 %v6207_v7, %v5887_v5  ;;  %v5814_v45 = vmul.f32 %v13122_v30, %v13121_v57  ;;  %v5817_v61 = vmul.f32 %v13124_v2, %v13123_v6  ;;  %v13125_v51 = vld [vmem:[#allocation36_spill] sm:$0xff]  ;;  %v13127_v5 = vld [vmem:[#allocation37_spill] sm:$0xff] }
 0x6d3   : > { %v6252_v38 = vmul.f32 %v6236_v53, %v5836_v17 }
 0x6d4   : > { %v6190_v0 = vmul.f32 %v10138_v41, %v6110_v55  ;;  %v6239_v3 = vadd.f32 1.0, %v6223_v32  ;;  %v12449_v52 = vpop.permute.xlu1 %5788 }
 0x6d5   : > { %6296 = vrot.lane.b32.xlu1 %v6252_v38, %s10238_s21  ;;  %v13126_v38 = vld [vmem:[#allocation35_spill] sm:$0xff] }
 0x6d6   : > { %v6206_v31 = vsub.f32 1.0, %v6190_v0  ;;  %v6255_v36 = vmul.f32 %v6239_v3, %v5839_v24  ;;  %v5819_v55 = vmul.f32 %v13127_v5, %v13126_v38  ;;  %v13128_v0 = vld [vmem:[#allocation38_spill] sm:$0xff] }
 0x6d7   : > { %v5818_v24 = vmul.f32 %v5781_v43, %v13128_v0 }
 0x6d8   : > { %v6222_v50 = vmul.f32 %v6206_v31, %v5886_v25  ;;  %6302 = vrot.lane.b32.xlu0 %v6255_v36, %s10238_s21  ;;  %v10139_v25 = vld [vmem:[%s10401_s15] ss:$0 sm:$0xff]  ;;  %s13138_s15 = sld [smem:[#allocation8_spill]] }
 0x6da   : > { %v6238_v46 = vadd.f32 1.0, %v6222_v50 }
 0x6dc   : > { %v6254_v1 = vmul.f32 %v6238_v46, %v5838_v63  ;;  %v2040_v46 = vsel %vm2006_vm1, %v10139_v25, 0.0 }
 0x6de   : > { %6300 = vrot.lane.b32.xlu1 %v6254_v1, %s10238_s21  ;;  %v13131_v1 = vld [vmem:[#allocation39_spill] sm:$0xff] }
 0x709   : > { %v6275_v54 = vpop.permute.xlu1 %6274 }
 0x70a   : > { %v6321_v11 = vmul.f32 %v6275_v54, %v5809_v60  ;;  %v12491_v54 = vand.u32 4294901760, %v2040_v46 }
 0x70c   : > { %6358 = vrot.lane.b32.xlu0 %v6321_v11, %s10238_s21  ;;  %v13132_v11 = vld [vmem:[#allocation40_spill] sm:$0xff]  ;;  %v12495_v40 = vsub.f32 %v2040_v46, %v12491_v54 }
 0x70d   : > { %v6273_v18 = vpop.permute.xlu1 %6272  ;;  %v6279_v19 = vpop.permute.xlu0 %6278  ;;  %v5820_v49 = vmul.f32 %v5785_v9, %v13132_v11 }
 0x70e   : > { %v6320_v58 = vmul.f32 %v6273_v18, %v5808_v16  ;;  %v6323_v37 = vmul.f32 %v6279_v19, %v5811_v27  ;;  %v5823_v27 = vmul.f32 %v13133_v12, %v5791_v34  ;;  %v6487_v19 = vand.u32 4294901760, %v12495_v40 }
 0x710   : > { %6356 = vrot.lane.b32.xlu1 %v6320_v58, %s10238_s21  ;;  %6362 = vrot.lane.b32.xlu0 %v6323_v37, %s10238_s21  ;;  %v13134_v37 = vld [vmem:[#allocation43_spill] sm:$0xff]  ;;  %v6488_v9 = vsub.f32 %v12495_v40, %v6487_v19 }
 0x711   : > { %v6277_v20 = vpop.permute.xlu1 %6276  ;;  %v6283_v10 = vpop.permute.xlu0 %6282  ;;  %v5822_v42 = vmul.f32 %v12449_v52, %v13134_v37 }
 0x712   : > { %v6322_v8 = vmul.f32 %v6277_v20, %v5810_v15  ;;  %v6325_v4 = vmul.f32 %v6283_v10, %v5813_v62  ;;  %v6489_v20 = vand.u32 4294901760, %v6488_v9 }
 0x714   : > { %6360 = vrot.lane.b32.xlu1 %v6322_v8, %s10238_s21  ;;  %6366 = vrot.lane.b32.xlu0 %v6325_v4, %s10238_s21 }
 0x715   : > { %v6281_v14 = vpop.permute.xlu1 %6280  ;;  %8906 = vmatprep.mubr.f32.mxu1 %v6489_v20 }
 0x716   : > { %v6324_v48 = vmul.f32 %v6281_v14, %v5812_v47 }
 0x718   : > { %6364 = vrot.lane.b32.xlu1 %v6324_v48, %s10238_s21 }
 0x71a   : > { %v6287_v39 = vpop.permute.xlu0 %6286 }
 0x71b   : > { %v6327_v26 = vmul.f32 %v6287_v39, %v5815_v22 }
 0x71d   : > { %6370 = vrot.lane.b32.xlu0 %v6327_v26, %s10238_s21  ;;  %v6285_v56 = vpop.permute.xlu1 %6284 }
 0x71e   : > { %v6326_v28 = vmul.f32 %v6285_v56, %v5814_v45 }
 0x720   : > { %6368 = vrot.lane.b32.xlu1 %v6326_v28, %s10238_s21 }
 0x72d   : > { %v6291_v29 = vpop.permute.xlu0 %6290 }
 0x72e   : > { %v6329_v17 = vmul.f32 %v6291_v29, %v5817_v61 }
 0x730   : > { %6374 = vrot.lane.b32.xlu0 %v6329_v17, %s10238_s21 }
 0x738   : > { %v6289_v53 = vpop.permute.xlu1 %6288 }
 0x739   : > { %v6328_v7 = vmul.f32 %v6289_v53, %v13125_v51 }
 0x73b   : > { %6372 = vrot.lane.b32.xlu1 %v6328_v7, %s10238_s21 }
 0x73d   : > { %v6295_v41 = vpop.permute.xlu0 %6294 }
 0x73e   : > { %v6331_v32 = vmul.f32 %v6295_v41, %v5819_v55 }
 0x740   : > { %6378 = vrot.lane.b32.xlu0 %v6331_v32, %s10238_s21 }
 0x742   : > { %v6293_v3 = vpop.permute.xlu1 %6292 }
 0x743   : > { %v6330_v31 = vmul.f32 %v6293_v3, %v5818_v24  ;;  %v6299_v36 = vpop.permute.xlu0 %6298 }
 0x744   : > { %v6333_v60 = vmul.f32 %v6299_v36, %v13131_v1 }
 0x745   : > { %6376 = vrot.lane.b32.xlu1 %v6330_v31, %s10238_s21 }
 0x746   : > { %6382 = vrot.lane.b32.xlu0 %v6333_v60, %s10238_s21 }
 0x747   : > { %v6297_v16 = vpop.permute.xlu1 %6296 }
 0x748   : > { %v6332_v43 = vmul.f32 %v6297_v16, %v5820_v49 }
 0x74a   : > { %6380 = vrot.lane.b32.xlu1 %v6332_v43, %s10238_s21  ;;  %v6303_v18 = vpop.permute.xlu0 %6302 }
 0x74b   : > { %v6335_v58 = vmul.f32 %v6303_v18, %v5823_v27 }
 0x74d   : > { %6386 = vrot.lane.b32.xlu0 %v6335_v58, %s10238_s21 }
 0x750   : > { %v6301_v21 = vpop.permute.xlu1 %6300 }
 0x751   : > { %v6334_v15 = vmul.f32 %v6301_v21, %v5822_v42 }
 0x753   : > { %6384 = vrot.lane.b32.xlu1 %v6334_v15, %s10238_s21  ;;  %s7337_s21 = sshll.u32 %s10222_s25, 9  ;;  %s13142_s25 = sand.u32 1, %s13138_s15  }
 0x754   : > { %s12749_s30 = scalar_lea.hbm %s13140_s24, %s7337_s21  ;;  %s12759_s17 = scalar_lea.sflag [#allocation5], %s13142_s25 }
 0x77e   : > { %v6359_v34 = vpop.permute.xlu0 %6358 }
 0x77f   : > { %v6408_v8 = vand.u32 4294901760, %v6359_v34 }
 0x781   : > { %v6534_v23 = vsub.f32 %v6359_v34, %v6408_v8 }
 0x782   : > { %v6357_v44 = vpop.permute.xlu1 %6356  ;;  %v6363_v4 = vpop.permute.xlu0 %6362 }
 0x783   : > { %v6535_v62 = vand.u32 4294901760, %v6534_v23  ;;  %v6405_v10 = vand.u32 4294901760, %v6357_v44  ;;  %v6414_v13 = vand.u32 4294901760, %v6363_v4 }
 0x785   : > { %v12507_v33 = vpack.c.bf16 %v6408_v8, %v6405_v10  ;;  %v6527_v52 = vsub.f32 %v6357_v44, %v6405_v10  ;;  %v6536_v47 = vsub.f32 %v6534_v23, %v6535_v62  ;;  %v6548_v14 = vsub.f32 %v6363_v4, %v6414_v13 }
 0x786   : > { %v6361_v48 = vpop.permute.xlu1 %6360  ;;  %v6367_v45 = vpop.permute.xlu0 %6366 }
 0x787   : > { %v6528_v35 = vand.u32 4294901760, %v6527_v52  ;;  %v6411_v59 = vand.u32 4294901760, %v6361_v48  ;;  %9487 = vmatprep.subr.bf16.mxu1 %v12507_v33  ;;  %v12510_v22 = vpack.c.bf16 %v6534_v23, %v6527_v52  ;;  %v6549_v39 = vand.u32 4294901760, %v6548_v14 }
 0x788   : > { %9489 = vmatpush3.bf16.msra.mxu1 %v12507_v33  ;;  %v6420_v28 = vand.u32 4294901760, %v6367_v45  ;;  %v6537_v6 = vand.u32 4294901760, %v6536_v47 }
 0x789   : > { %v6529_v26 = vsub.f32 %v6527_v52, %v6528_v35  ;;  %v12513_v57 = vpack.c.bf16 %v6414_v13, %v6411_v59  ;;  %v6541_v30 = vsub.f32 %v6361_v48, %v6411_v59  ;;  %v12515_v56 = vpack.c.bf16 %v6535_v62, %v6528_v35 }
 0x78a   : > { %v6550_v2 = vsub.f32 %v6548_v14, %v6549_v39  ;;  %v6562_v53 = vsub.f32 %v6367_v45, %v6420_v28  ;;  %v6365_v51 = vpop.permute.xlu1 %6364 }
 0x78b   : > { %v6542_v61 = vand.u32 4294901760, %v6541_v30  ;;  %9491 = vmatprep.subr.bf16.mxu1 %v12513_v57  ;;  %v6530_v29 = vand.u32 4294901760, %v6529_v26  ;;  %v12518_v17 = vpack.c.bf16 %v6548_v14, %v6541_v30  ;;  %v6417_v38 = vand.u32 4294901760, %v6365_v51 }
 0x78c   : > { %9493 = vmatpush3.bf16.msra.mxu1 %v12513_v57  ;;  %v6563_v41 = vand.u32 4294901760, %v6562_v53  ;;  %v6551_v3 = vand.u32 4294901760, %v6550_v2 }
 0x78d   : > { %v6543_v7 = vsub.f32 %v6541_v30, %v6542_v61  ;;  %v12521_v5 = vpack.c.bf16 %v6537_v6, %v6530_v29  ;;  %v12523_v55 = vpack.c.bf16 %v6549_v39, %v6542_v61  ;;  %v12525_v32 = vpack.c.bf16 %v6420_v28, %v6417_v38 }
 0x78e   : > { %v6555_v0 = vsub.f32 %v6365_v51, %v6417_v38  ;;  %v6564_v31 = vsub.f32 %v6562_v53, %v6563_v41  ;;  %v13135_v51 = vld [vmem:[#allocation20_spill] sm:$0xff] }
 0x78f   : > { %v6544_v24 = vand.u32 4294901760, %v6543_v7  ;;  %v6371_v25 = vpop.permute.xlu0 %6370  ;;  %9495 = vmatprep.subr.bf16.mxu1 %v12525_v32  ;;  %v12572_v7 = vand.u32 4294901760, %v13135_v51 }
 0x790   : > { %v6556_v36 = vand.u32 4294901760, %v6555_v0  ;;  %v12530_v63 = vpack.c.bf16 %v6562_v53, %v6555_v0  ;;  %v6426_v46 = vand.u32 4294901760, %v6371_v25  ;;  %9497 = vmatpush3.bf16.msra.mxu1 %v12525_v32  ;;  %v6565_v12 = vand.u32 4294901760, %v6564_v31 }
 0x791   : > { %v12528_v50 = vpack.c.bf16 %v6551_v3, %v6544_v24 }
 0x792   : > { %v6557_v1 = vsub.f32 %v6555_v0, %v6556_v36  ;;  %v12533_v60 = vpack.c.bf16 %v6563_v41, %v6556_v36  ;;  %v6576_v11 = vsub.f32 %v6371_v25, %v6426_v46  ;;  %v6369_v49 = vpop.permute.xlu1 %6368  ;;  %v13136_v41 = vld [vmem:[#allocation21_spill] sm:$0xff]  ;;  %v12583_v36 = vsub.f32 %v13135_v51, %v12572_v7  ;;  %v13137_v25 = vld [vmem:[#allocation22_spill] sm:$0xff] }
 0x793   : > { %v6423_v16 = vand.u32 4294901760, %v6369_v49  ;;  %v12577_v0 = vand.u32 4294901760, %v13136_v41 }
 0x794   : > { %v6558_v43 = vand.u32 4294901760, %v6557_v1  ;;  %v6577_v27 = vand.u32 4294901760, %v6576_v11 }
 0x795   : > { %v12535_v18 = vpack.c.bf16 %v6426_v46, %v6423_v16  ;;  %v6569_v58 = vsub.f32 %v6369_v49, %v6423_v16  ;;  %v12586_v46 = vand.u32 4294901760, %v13137_v25  ;;  %v12594_v49 = vsub.f32 %v13136_v41, %v12577_v0 }
 0x796   : > { %v12537_v37 = vpack.c.bf16 %v6565_v12, %v6558_v43  ;;  %v6578_v42 = vsub.f32 %v6576_v11, %v6577_v27 }
 0x797   : > { %v6570_v9 = vand.u32 4294901760, %v6569_v58  ;;  %9499 = vmatprep.subr.bf16.mxu1 %v12535_v18  ;;  %v12540_v21 = vpack.c.bf16 %v6576_v11, %v6569_v58 }
 0x798   : > { %9501 = vmatpush3.bf16.msra.mxu1 %v12535_v18  ;;  %v6579_v8 = vand.u32 4294901760, %v6578_v42 }
 0x799   : > { %v6571_v15 = vsub.f32 %v6569_v58, %v6570_v9  ;;  %v12543_v20 = vpack.c.bf16 %v6577_v27, %v6570_v9  ;;  %v6497_v27 = vand.u32 4294901760, %v12583_v36  ;;  %v12603_v58 = vsub.f32 %v13137_v25, %v12586_v46 }
 0x79b   : > { %v6572_v34 = vand.u32 4294901760, %v6571_v15  ;;  %v6507_v15 = vand.u32 4294901760, %v12594_v49 }
 0x79d   : > { %v12545_v23 = vpack.c.bf16 %v6579_v8, %v6572_v34  ;;  %v6498_v8 = vsub.f32 %v12583_v36, %v6497_v27 }
 0x7a2   : > { %v6375_v44 = vpop.permute.xlu0 %6374 }
 0x7a3   : > { %v6432_v62 = vand.u32 4294901760, %v6375_v44 }
 0x7a5   : > { %v12547_v4 = vsub.f32 %v6375_v44, %v6432_v62 }
 0x7a7   : > { %v6591_v14 = vand.u32 4294901760, %v12547_v4 }
 0x7a9   : > { %v6592_v25 = vsub.f32 %v12547_v4, %v6591_v14 }
 0x7ad   : > { %v6373_v10 = vpop.permute.xlu1 %6372 }
 0x7ae   : > { %v6429_v13 = vand.u32 4294901760, %v6373_v10 }
 0x7b0   : > { %v12549_v52 = vpack.c.bf16 %v6432_v62, %v6429_v13  ;;  %v12551_v47 = vsub.f32 %v6373_v10, %v6429_v13  ;;  %v6517_v10 = vand.u32 4294901760, %v12603_v58  ;;  %v6508_v13 = vsub.f32 %v12594_v49, %v6507_v15 }
 0x7b2   : > { %v6584_v48 = vand.u32 4294901760, %v12551_v47  ;;  %v6379_v35 = vpop.permute.xlu0 %6378  ;;  %9503 = vmatprep.subr.bf16.mxu1 %v12549_v52  ;;  %v6509_v51 = vand.u32 4294901760, %v6508_v13 }
 0x7b3   : > { %9505 = vmatpush3.bf16.msra.mxu1 %v12549_v52  ;;  %v6438_v39 = vand.u32 4294901760, %v6379_v35 }
 0x7b4   : > { %v12559_v59 = vpack.c.bf16 %v6591_v14, %v6584_v48 }
 0x7b5   : > { %v12561_v30 = vsub.f32 %v6379_v35, %v6438_v39 }
 0x7b7   : > { %v6377_v26 = vpop.permute.xlu1 %6376  ;;  %v6605_v61 = vand.u32 4294901760, %v12561_v30 }
 0x7b8   : > { %v6435_v45 = vand.u32 4294901760, %v6377_v26  ;;  %v6383_v2 = vpop.permute.xlu0 %6382 }
 0x7b9   : > { %v6444_v53 = vand.u32 4294901760, %v6383_v2 }
 0x7ba   : > { %v12563_v28 = vpack.c.bf16 %v6438_v39, %v6435_v45  ;;  %v12565_v6 = vsub.f32 %v6377_v26, %v6435_v45  ;;  %v6499_v26 = vand.u32 4294901760, %v6498_v8 }
 0x7bb   : > { %v12579_v3 = vsub.f32 %v6383_v2, %v6444_v53 }
 0x7bc   : > { %v6598_v29 = vand.u32 4294901760, %v12565_v6  ;;  %9507 = vmatprep.subr.bf16.mxu1 %v12563_v28  ;;  %v6381_v24 = vpop.permute.xlu1 %6380 }
 0x7bd   : > { %9509 = vmatpush3.bf16.msra.mxu1 %v12563_v28  ;;  %v6441_v31 = vand.u32 4294901760, %v6381_v24  ;;  %v6619_v16 = vand.u32 4294901760, %v12579_v3 }
 0x7be   : > { %v12574_v38 = vpack.c.bf16 %v6605_v61, %v6598_v29 }
 0x7bf   : > { %v12588_v1 = vpack.c.bf16 %v6444_v53, %v6441_v31  ;;  %v12590_v11 = vsub.f32 %v6381_v24, %v6441_v31  ;;  %v6387_v12 = vpop.permute.xlu0 %6386  ;;  %v6518_v53 = vsub.f32 %v12603_v58, %v6517_v10  ;;  %v6585_v31 = vsub.f32 %v12551_v47, %v6584_v48 }
 0x7c0   : > { %v6450_v42 = vand.u32 4294901760, %v6387_v12  ;;  %v6593_v48 = vand.u32 4294901760, %v6592_v25  ;;  %v6620_v14 = vsub.f32 %v12579_v3, %v6619_v16 }
 0x7c1   : > { %v6612_v43 = vand.u32 4294901760, %v12590_v11  ;;  %9511 = vmatprep.subr.bf16.mxu1 %v12588_v1  ;;  %v6519_v24 = vand.u32 4294901760, %v6518_v53 }
 0x7c2   : > { %9513 = vmatpush3.bf16.msra.mxu1 %v12588_v1  ;;  %v12611_v44 = vsub.f32 %v6387_v12, %v6450_v42  ;;  %v6599_v12 = vsub.f32 %v12565_v6, %v6598_v29 }
 0x7c3   : > { %v12605_v9 = vpack.c.bf16 %v6619_v16, %v6612_v43 }
 0x7c4   : > { %v6633_v45 = vand.u32 4294901760, %v12611_v44  ;;  %v6600_v8 = vand.u32 4294901760, %v6599_v12 }
 0x7c5   : > { %v6385_v34 = vpop.permute.xlu1 %6384 }
 0x7c6   : > { %v6447_v62 = vand.u32 4294901760, %v6385_v34 }
 0x7c8   : > { %v12617_v35 = vpack.c.bf16 %v6450_v42, %v6447_v62  ;;  %v12619_v39 = vsub.f32 %v6385_v34, %v6447_v62  ;;  %v6586_v42 = vand.u32 4294901760, %v6585_v31 }
 0x7ca   : > { %v6626_v2 = vand.u32 4294901760, %v12619_v39  ;;  %9515 = vmatprep.subr.bf16.mxu1 %v12617_v35  ;;  %v9534_v34 = vpack.c.bf16 %v6593_v48, %v6586_v42 }
 0x7cb   : > { %9517 = vmatpush3.bf16.msra.mxu1 %v12617_v35 }
 0x7cc   : > { %9519 = vmatprep.subr.bf16.mxu1 %v12521_v5  ;;  %v12629_v41 = vpack.c.bf16 %v6633_v45, %v6626_v2  ;;  %v6627_v29 = vsub.f32 %v12619_v39, %v6626_v2 }
 0x7ce   : > { %8907 = vmatmul.mubr.f32.vlgmr.msra.gmra.mrb[22].mxu1 %v6499_v26  ;;  %v6628_v53 = vand.u32 4294901760, %v6627_v29 }
 0x7cf   : > { %9521 = vmatpush3.bf16.msra.mxu1 %v12521_v5  ;;  %8909 = vmatprep.mubr.f32.mxu1 %v6509_v51  ;;  %v6606_v5 = vsub.f32 %v12561_v30, %v6605_v61  ;;  %v6621_v61 = vand.u32 4294901760, %v6620_v14 }
 0x7d0   : > { %9523 = vmatprep.subr.bf16.mxu1 %v12528_v50 }
 0x7d1   : > { %v6607_v62 = vand.u32 4294901760, %v6606_v5 }
 0x7d2   : > { %8910 = vmatmul.mubr.f32.gmra.mrb[24].mxu1 %v6519_v24 }
 0x7d3   : > { %9525 = vmatpush3.bf16.msra.mxu1 %v12528_v50  ;;  %8944 = vmatprep.mubr.f32.mxu1 %v12491_v54  ;;  %v6613_v50 = vsub.f32 %v12590_v11, %v6612_v43  ;;  %v9538_v13 = vpack.c.bf16 %v6607_v62, %v6600_v8 }
 0x7d4   : > { %9527 = vmatprep.subr.bf16.mxu1 %v12537_v37 }
 0x7d5   : > { %v6614_v26 = vand.u32 4294901760, %v6613_v50 }
 0x7d7   : > { %9529 = vmatpush3.bf16.msra.mxu1 %v12537_v37  ;;  %v6634_v37 = vsub.f32 %v12611_v44, %v6633_v45  ;;  %v9542_v51 = vpack.c.bf16 %v6621_v61, %v6614_v26 }
 0x7d8   : > { %9531 = vmatprep.subr.bf16.mxu1 %v12545_v23 }
 0x7d9   : > { %v6635_v43 = vand.u32 4294901760, %v6634_v37 }
 0x7db   : > { %9533 = vmatpush3.bf16.msra.mxu1 %v12545_v23  ;;  %v9546_v24 = vpack.c.bf16 %v6635_v43, %v6628_v53  ;;  %v9566_v23 = vpack.c.bf16 %v12547_v4, %v12551_v47 }
 0x7dc   : > { %9535 = vmatprep.subr.bf16.mxu1 %v9534_v34 }
 0x7df   : > { %9537 = vmatpush3.bf16.msra.mxu1 %v9534_v34 }
 0x7e0   : > { %9539 = vmatprep.subr.bf16.mxu1 %v9538_v13 }
 0x7e3   : > { %9541 = vmatpush3.bf16.msra.mxu1 %v9538_v13 }
 0x7e4   : > { %9543 = vmatprep.subr.bf16.mxu1 %v9542_v51 }
 0x7e7   : > { %9545 = vmatpush3.bf16.msra.mxu1 %v9542_v51 }
 0x7e8   : > { %9547 = vmatprep.subr.bf16.mxu1 %v9546_v24 }
 0x7eb   : > { %9549 = vmatpush3.bf16.msra.mxu1 %v9546_v24 }
 0x7ec   : > { %9551 = vmatprep.subr.bf16.mxu1 %v12510_v22 }
 0x7ee   : > { %8945 = vmatmul.mubr.f32.vlgmr.msra.gmra.mrb[22].mxu1 %v12572_v7 }
 0x7ef   : > { %9553 = vmatpush3.bf16.msra.mxu1 %v12510_v22  ;;  %8947 = vmatprep.mubr.f32.mxu1 %v12577_v0  ;;  %v9570_v22 = vpack.c.bf16 %v12561_v30, %v12565_v6 }
 0x7f0   : > { %9555 = vmatprep.subr.bf16.mxu1 %v12518_v17 }
 0x7f2   : > { %8948 = vmatmul.mubr.f32.gmra.mrb[24].mxu1 %v12586_v46 }
 0x7f3   : > { %9557 = vmatpush3.bf16.msra.mxu1 %v12518_v17  ;;  %8982 = vmatprep.mubr.f32.mxu1 %v12495_v40  ;;  %v9574_v17 = vpack.c.bf16 %v12579_v3, %v12590_v11  ;;  %v6336_v40 = vld [vmem:[%s10403_s22] sm:$0xff] }
 0x7f4   : > { %9559 = vmatprep.subr.bf16.mxu1 %v12530_v63 }
 0x7f7   : > { %9561 = vmatpush3.bf16.msra.mxu1 %v12530_v63  ;;  %v9578_v63 = vpack.c.bf16 %v12611_v44, %v12619_v39 }
 0x7f8   : > { %9563 = vmatprep.subr.bf16.mxu1 %v12540_v21 }
 0x7fb   : > { %9565 = vmatpush3.bf16.msra.mxu1 %v12540_v21 }
 0x7fc   : > { %9567 = vmatprep.subr.bf16.mxu1 %v9566_v23 }
 0x7ff   : > { %9569 = vmatpush3.bf16.msra.mxu1 %v9566_v23 }
 0x800   : > { %9571 = vmatprep.subr.bf16.mxu1 %v9570_v22 }
 0x803   : > { %9573 = vmatpush3.bf16.msra.mxu1 %v9570_v22 }
 0x804   : > { %9575 = vmatprep.subr.bf16.mxu1 %v9574_v17 }
 0x807   : > { %9577 = vmatpush3.bf16.msra.mxu1 %v9574_v17 }
 0x808   : > { %9579 = vmatprep.subr.bf16.mxu1 %v9578_v63 }
 0x80b   : > { %9581 = vmatpush3.bf16.msra.mxu1 %v9578_v63 }
 0x80c   : > { %9583 = vmatprep.subr.bf16.mxu1 %v12507_v33 }
 0x80e   : > { %8983 = vmatmul.mubr.f32.vlgmr.msra.gmra.mrb[22].mxu1 %v12583_v36 }
 0x80f   : > { %9585 = vmatpush3.bf16.msra.mxu1 %v12507_v33  ;;  %8985 = vmatprep.mubr.f32.mxu1 %v12594_v49 }
 0x810   : > { %9587 = vmatprep.subr.bf16.mxu1 %v12513_v57 }
 0x812   : > { %8986 = vmatmul.mubr.f32.gmra.mrb[24].mxu1 %v12603_v58 }
 0x813   : > { %9589 = vmatpush3.bf16.msra.mxu1 %v12513_v57  ;;  %9020 = vmatprep.mubr.f32.mxu1 %v6487_v19 }
 0x814   : > { %9591 = vmatprep.subr.bf16.mxu1 %v12525_v32 }
 0x817   : > { %9593 = vmatpush3.bf16.msra.mxu1 %v12525_v32 }
 0x818   : > { %9595 = vmatprep.subr.bf16.mxu1 %v12535_v18 }
 0x81b   : > { %9597 = vmatpush3.bf16.msra.mxu1 %v12535_v18 }
 0x81c   : > { %9599 = vmatprep.subr.bf16.mxu1 %v12549_v52 }
 0x81f   : > { %9601 = vmatpush3.bf16.msra.mxu1 %v12549_v52 }
 0x820   : > { %9603 = vmatprep.subr.bf16.mxu1 %v12563_v28 }
 0x823   : > { %9605 = vmatpush3.bf16.msra.mxu1 %v12563_v28 }
 0x824   : > { %9607 = vmatprep.subr.bf16.mxu1 %v12588_v1 }
 0x827   : > { %9609 = vmatpush3.bf16.msra.mxu1 %v12588_v1 }
 0x828   : > { %9611 = vmatprep.subr.bf16.mxu1 %v12617_v35 }
 0x82b   : > { %9613 = vmatpush3.bf16.msra.mxu1 %v12617_v35 }
 0x82c   : > { %9615 = vmatprep.subr.bf16.mxu1 %v12515_v56 }
 0x82e   : > { %9021 = vmatmul.mubr.f32.vlgmr.msra.gmra.mrb[22].mxu1 %v6497_v27 }
 0x82f   : > { %9617 = vmatpush3.bf16.msra.mxu1 %v12515_v56  ;;  %9023 = vmatprep.mubr.f32.mxu1 %v6507_v15 }
 0x830   : > { %9619 = vmatprep.subr.bf16.mxu1 %v12523_v55 }
 0x832   : > { %9024 = vmatmul.mubr.f32.gmra.mrb[24].mxu1 %v6517_v10 }
 0x833   : > { %9621 = vmatpush3.bf16.msra.mxu1 %v12523_v55  ;;  %9058 = vmatprep.mubr.f32.mxu1 %v12491_v54  ;;  %v6339_v55 = vld [vmem:[%s10403_s22 + $0x18] sm:$0xff] }
 0x834   : > { %9623 = vmatprep.subr.bf16.mxu1 %v12533_v60 }
 0x837   : > { %9625 = vmatpush3.bf16.msra.mxu1 %v12533_v60 }
 0x838   : > { %9627 = vmatprep.subr.bf16.mxu1 %v12543_v20 }
 0x83b   : > { %9629 = vmatpush3.bf16.msra.mxu1 %v12543_v20 }
 0x83c   : > { %9631 = vmatprep.subr.bf16.mxu1 %v12559_v59 }
 0x83f   : > { %9633 = vmatpush3.bf16.msra.mxu1 %v12559_v59 }
 0x840   : > { %9635 = vmatprep.subr.bf16.mxu1 %v12574_v38 }
 0x843   : > { %9637 = vmatpush3.bf16.msra.mxu1 %v12574_v38 }
 0x844   : > { %9639 = vmatprep.subr.bf16.mxu1 %v12605_v9 }
 0x847   : > { %9641 = vmatpush3.bf16.msra.mxu1 %v12605_v9 }
 0x848   : > { %9643 = vmatprep.subr.bf16.mxu1 %v12629_v41 }
 0x84b   : > { %9645 = vmatpush3.bf16.msra.mxu1 %v12629_v41 }
 0x84c   : > { %9647 = vmatprep.subr.bf16.mxu1 %v12507_v33 }
 0x84e   : > { %9059 = vmatmul.mubr.f32.vlgmr.msra.gmra.mrb[22].mxu1 %v12572_v7 }
 0x84f   : > { %9649 = vmatpush3.bf16.msra.mxu1 %v12507_v33  ;;  %9061 = vmatprep.mubr.f32.mxu1 %v12577_v0 }
 0x850   : > { %9651 = vmatprep.subr.bf16.mxu1 %v12513_v57 }
 0x852   : > { %9062 = vmatmul.mubr.f32.gmra.mrb[24].mxu1 %v12586_v46 }
 0x853   : > { %9653 = vmatpush3.bf16.msra.mxu1 %v12513_v57  ;;  %9096 = vmatprep.mubr.f32.mxu1 %v12491_v54  ;;  %v6337_v54 = vld [vmem:[%s10403_s22 + $0x8] sm:$0xff] }
 0x854   : > { %9655 = vmatprep.subr.bf16.mxu1 %v12525_v32 }
 0x857   : > { %9657 = vmatpush3.bf16.msra.mxu1 %v12525_v32  ;;  %v6338_v32 = vld [vmem:[%s10403_s22 + $0x10] sm:$0xff] }
 0x858   : > { %9659 = vmatprep.subr.bf16.mxu1 %v12535_v18 }
 0x85b   : > { %9661 = vmatpush3.bf16.msra.mxu1 %v12535_v18 }
 0x85c   : > { %9663 = vmatprep.subr.bf16.mxu1 %v12549_v52 }
 0x85f   : > { %9665 = vmatpush3.bf16.msra.mxu1 %v12549_v52 }
 0x860   : > { %9667 = vmatprep.subr.bf16.mxu1 %v12563_v28 }
 0x863   : > { %9669 = vmatpush3.bf16.msra.mxu1 %v12563_v28 }
 0x864   : > { %9671 = vmatprep.subr.bf16.mxu1 %v12588_v1 }
 0x867   : > { %9673 = vmatpush3.bf16.msra.mxu1 %v12588_v1 }
 0x868   : > { %9675 = vmatprep.subr.bf16.mxu1 %v12617_v35 }
 0x86b   : > { %9677 = vmatpush3.bf16.msra.mxu1 %v12617_v35 }
 0x86e   : > { %9097 = vmatmul.mubr.f32.vlgmr.msra.gmra.mrb[22].mxu1 %v12572_v7 }
 0x86f   : > { %9099 = vmatprep.mubr.f32.mxu1 %v12577_v0 }
 0x872   : > { %9100 = vmatmul.mubr.f32.gmra.mrb[24].mxu1 %v12586_v46 }
 0x941   : > { %v9098_v19 = vpop.f32.mrb[22].mxu1 }
 0x942   : > { %v7175_v33 = vadd.f32 %v9098_v19, %v6337_v54  ;;  %v7152_v57 = vpop.f32.mrb[23].mxu1 }
 0x943   : > { %v7174_v56 = vadd.f32 %v7152_v57, %v6336_v40 }
 0x944   : > { %7179 = vst.msk [vmem:[%s10403_s22 + $0x8] sm:$0xff] %vm4497_vm10, %v7175_v33 }
 0x945   : > { %7178 = vst.msk [vmem:[%s10403_s22] sm:$0xff] %vm4497_vm10, %v7174_v56  ;;  %v9101_v60 = vpop.f32.mrb[24].mxu1 }
 0x946   : > { %v7177_v18 = vadd.f32 %v9101_v60, %v6339_v55  ;;  %v7164_v21 = vpop.f32.mrb[25].mxu1 }
 0x947   : > { %v7176_v20 = vadd.f32 %v7164_v21, %v6338_v32 }
 0x948   : > { %7181 = vst.msk [vmem:[%s10403_s22 + $0x18] sm:$0xff] %vm4497_vm10, %v7177_v18 }
 0x949   : > { %7180 = vst.msk [vmem:[%s10403_s22 + $0x10] sm:$0xff] %vm4497_vm10, %v7176_v20 }
 0x94a   : > { %10153 = shalt.err (!%p10150_p8)
}
 0x94b   : > { %s10154_s22 = scalar_lea.hbm %s12749_s30, 512  ;;  %s10158_s27 = scalar_lea.hbm %s13141_s19, 1024 }
 0x94c   : > { %p10155_p10 = scmp.ne.s32.totalorder %s12749_s30, %s10154_s22  ;;  %p10159_p13 = scmp.lt.u32.totalorder %s12749_s30, %s13141_s19 }
 0x94d   : > { %p10160_p0 = scmp.lt.u32.totalorder %s10158_s27, %s10154_s22  ;;  %p10162_p2 = scmp.lt.u32.totalorder %s10154_s22, %s12749_s30 }
 0x94e   : > { %p10156_p11 = pnand %p10155_p10, %p10357_p3 }
 0x94f   : > { %p10161_p1 = por %p10160_p0, %p10159_p13 }
 0x950   : > { %p10157_p12 = pneg %p10156_p11 }
 0x951   : > { %p10163_p4 = por %p10162_p2, %p10161_p1 }
 0x953   : > { %p10164_p5 = pnand %p10163_p4, %p10157_p12 }
 0x955   : > { %10167 = shalt.err (!%p10164_p5)
}
 0x956   : > { %s10241_s12 = smov 128   ;;  %s10242_s28 = smov 8  }
 0x957   : > { %9990 = dma.vmem_to_hbm [thread:$0]  (%p10357_p3), %s12751_s20, 512, %s12749_s30, %s12759_s17, %s10241_s12, %s10241_s12, %s10242_s28  }
 0x958 PF: > { %s13143_s24 = sld [smem:[#allocation12_spill]]  ;;  %s13144_s25 = sld [smem:[#allocation7_spill]] }
 0x95e   : > { %p9996_p6 = scmp.ge.s32.totalorder %s13143_s24, 2  ;;  %s7211_s29 = sand.u32 1, %s13144_s25  }
 0x95f   : > { %s7212_s26 = scalar_lea.sflag [#allocation5], %s7211_s29 }
 0x960   : > { %p9993_p7 = pnand %p9996_p6, %p10367_p9 }
 0x962   : > { %10201 = dma.done.wait (!%p9993_p7), %s7212_s26, 512  }
 0x963   : > { %10203 = vsyncadd (!%p9993_p7), %s7212_s26, 4294966784  ;;  %s25_s28 = sadd.s32 1, %s13143_s24   ;;  %s13146_s21 = sld [smem:[#allocation8_spill]] }
 0x964   : > { %p22_p8 = scmp.ge.s32.totalorder %s25_s28, 6   ;;  %s13147_s22 = sld [smem:[#allocation9_spill]] }
 0x965   : > { %s13148_s23 = sld [smem:[#allocation17_spill]]  ;;  %s13149_s24 = sld [smem:[#allocation10_spill]] }
 0x966   : > { %s13150_s25 = sld [smem:[#allocation11_spill]]  ;;  %s13151_s26 = sld [smem:[#allocation13_spill]] }
 0x967   : > { %s13152_s27 = sld [smem:[#allocation15_spill]]  ;;  %24 = sbr.rel (!%p22_p8) target bundleno = 7 (0x7), region = 116 }
 0x96e   :  { %7217 = vsyncpa [#allocation5], 1 }
 0x96f   :  { %7219 = vsyncpa [#allocation5 + $0x1], 1 }

</bundles_post_ra>
